<compile_context>
chip_gen: v7x
topology: tpu7x:2x2x1
jax: 0.10.0
libtpu: 0.0.40
codegen_flags: <defaults>
</compile_context>

<pallas_src>
import functools
import math

import jax
import jax.numpy as jnp
from jax import lax
from jax.experimental import pallas as pl
from jax.experimental.pallas import tpu as pltpu  # noqa: F401  (TPU backend)


def _encoder_stack_kernel(x_ref, w_in_ref, b_in_ref, w_out_ref, b_out_ref,
                          ln_w_ref, ln_b_ref, o_ref, *, nhead, n_layers):
    """Fused n_layers x (MultiheadAttention + shared LayerNorm).

    Shapes (all resident in VMEM, single kernel invocation):
      x_ref:     (N, L, E)            activations, attention runs over L
      w_in_ref:  (n_layers, 3E, E)    PyTorch in_proj_weight per layer
      b_in_ref:  (n_layers, 1, 3E)    PyTorch in_proj_bias per layer
      w_out_ref: (n_layers, E, E)     out_proj.weight per layer
      b_out_ref: (n_layers, 1, E)     out_proj.bias per layer
      ln_w_ref:  (1, E), ln_b_ref: (1, E)   shared LayerNorm params
    """
    N, L, E = x_ref.shape
    head_dim = E // nhead
    scale = 1.0 / math.sqrt(head_dim)

    # Hoisted once (not per layer): shared LayerNorm params.
    ln_w = ln_w_ref[...].astype(jnp.float32)          # (1, E)
    ln_b = ln_b_ref[...].astype(jnp.float32)          # (1, E)

    x = x_ref[...].astype(jnp.float32)                # (N, L, E)

    for layer in range(n_layers):                     # static unrolled loop
        w_in = w_in_ref[layer].astype(jnp.float32)    # (3E, E)
        b_in = b_in_ref[layer].astype(jnp.float32)    # (1, 3E)
        w_out = w_out_ref[layer].astype(jnp.float32)  # (E, E)
        b_out = b_out_ref[layer].astype(jnp.float32)  # (1, E)

        # qkv = x @ w_in.T + b_in, batched over all N*L rows in one matmul.
        x2d = x.reshape(N * L, E)
        qkv = lax.dot_general(x2d, w_in, (((1,), (1,)), ((), ())),
                              preferred_element_type=jnp.float32) + b_in
        qkv = qkv.reshape(N, L, 3 * E)
        q = qkv[..., 0:E] * scale                     # (N, L, E)
        k = qkv[..., E:2 * E]
        v = qkv[..., 2 * E:3 * E]

        # Per-head attention, batched over N; head outputs kept in registers.
        head_outs = []
        for h in range(nhead):
            lo = h * head_dim
            hi = lo + head_dim
            qh = q[..., lo:hi]                        # (N, L, hd)
            kh = k[..., lo:hi]
            vh = v[..., lo:hi]
            s = jnp.einsum('nqd,nkd->nqk', qh, kh,
                           preferred_element_type=jnp.float32)   # (N, L, L)
            s = s - jnp.max(s, axis=-1, keepdims=True)
            p = jnp.exp(s)
            denom = jnp.sum(p, axis=-1, keepdims=True)
            p = p * pl.reciprocal(denom, approx=True)
            head_outs.append(jnp.einsum('nqk,nkd->nqd', p, vh,
                                        preferred_element_type=jnp.float32))
        attn = jnp.concatenate(head_outs, axis=-1)    # (N, L, E)

        # Out projection, batched over all N*L rows.
        y = lax.dot_general(attn.reshape(N * L, E), w_out,
                            (((1,), (1,)), ((), ())),
                            preferred_element_type=jnp.float32) + b_out

        # Shared LayerNorm (eps=1e-5, biased variance) — matches nn.LayerNorm.
        mu = jnp.mean(y, axis=-1, keepdims=True)
        var = jnp.mean((y - mu) ** 2, axis=-1, keepdims=True)
        yn = (y - mu) * lax.rsqrt(var + 1e-5)
        yn = yn * ln_w + ln_b
        x = yn.reshape(N, L, E)

    o_ref[...] = x.astype(o_ref.dtype)


@functools.partial(jax.jit, static_argnames=("nhead",))
def tune_encoder_time_forward(x_lne, params, nhead):
    """x_lne: (L, N, E) as the PyTorch module expects (batch_first=False).

    Returns (L, N, E). Dropout(p=0.5) is identity (inference mode).
    """
    L, N, E = x_lne.shape
    n_layers = params["w_in"].shape[0]
    x_nle = jnp.transpose(x_lne, (1, 0, 2))           # (N, L, E) kernel layout

    kernel = functools.partial(_encoder_stack_kernel,
                               nhead=nhead, n_layers=n_layers)
    # Single invocation, no grid: every array (activations + all 5 layers of
    # weights, ~70 KB total) sits whole in VMEM; block == full array shape.
    out = pl.pallas_call(
        kernel,
        out_shape=jax.ShapeDtypeStruct((N, L, E), x_nle.dtype),
    )(x_nle, params["w_in"], params["b_in"], params["w_out"], params["b_out"],
      params["ln_w"], params["ln_b"])

    return jnp.transpose(out, (1, 0, 2))              # back to (L, N, E)


def init_params(key, d_model, n_layers):
    """Deterministic synthetic params; one shared LayerNorm (as in PyTorch)."""
    k1, k2, k3, k4 = jax.random.split(key, 4)
    return dict(
        w_in=jax.random.normal(k1, (n_layers, 3 * d_model, d_model),
                               jnp.float32) * 0.1,
        b_in=jax.random.normal(k2, (n_layers, 1, 3 * d_model),
                               jnp.float32) * 0.01,
        w_out=jax.random.normal(k3, (n_layers, d_model, d_model),
                                jnp.float32) * 0.1,
        b_out=jax.random.normal(k4, (n_layers, 1, d_model),
                                jnp.float32) * 0.01,
        ln_w=jnp.ones((1, d_model), jnp.float32),     # nn.LayerNorm default init
        ln_b=jnp.zeros((1, d_model), jnp.float32),
    )


if __name__ == "__main__":
    # Small shapes consistent with the module: seq L=8, batch N=2, d_model=32.
    L, N = 8, 2
    d_model, nhead, n_layers = 32, 4, 5

    key = jax.random.PRNGKey(0)
    kx, kp = jax.random.split(key)
    x = jax.random.normal(kx, (L, N, d_model), jnp.float32)
    params = init_params(kp, d_model, n_layers)

    out = tune_encoder_time_forward(x, params, nhead)
    jax.block_until_ready(out)

    assert out.shape == (L, N, d_model), out.shape
    assert bool(jnp.all(jnp.isfinite(out)))
    print("KERNEL_OK")
</pallas_src>

<mosaic_0001>
module attributes {stable_mosaic.version = 11 : i64} {
  func.func @_encoder_stack_kernel(%arg0: memref<2x8x32xf32, #tpu.memory_space<vmem>>, %arg1: memref<5x96x32xf32, #tpu.memory_space<vmem>>, %arg2: memref<5x1x96xf32, #tpu.memory_space<vmem>>, %arg3: memref<5x32x32xf32, #tpu.memory_space<vmem>>, %arg4: memref<5x1x32xf32, #tpu.memory_space<vmem>>, %arg5: memref<1x32xf32, #tpu.memory_space<vmem>>, %arg6: memref<1x32xf32, #tpu.memory_space<vmem>>, %arg7: memref<2x8x32xf32, #tpu.memory_space<vmem>>) attributes {dimension_semantics = [], scalar_prefetch = 0 : i64, scratch_operands = 0 : i64, tpu.core_type = #tpu.core_type<tc>} {
    %c0 = arith.constant 0 : index
    %c0_0 = arith.constant 0 : index
    %0 = vector.load %arg5[%c0, %c0_0] : memref<1x32xf32, #tpu.memory_space<vmem>>, vector<1x32xf32>
    %c0_1 = arith.constant 0 : index
    %c0_2 = arith.constant 0 : index
    %1 = vector.load %arg6[%c0_1, %c0_2] : memref<1x32xf32, #tpu.memory_space<vmem>>, vector<1x32xf32>
    %c0_3 = arith.constant 0 : index
    %c0_4 = arith.constant 0 : index
    %c0_5 = arith.constant 0 : index
    %2 = vector.load %arg0[%c0_3, %c0_4, %c0_5] : memref<2x8x32xf32, #tpu.memory_space<vmem>>, vector<2x8x32xf32>
    %c0_6 = arith.constant 0 : index
    %c0_7 = arith.constant 0 : index
    %c0_8 = arith.constant 0 : index
    %3 = vector.load %arg1[%c0_6, %c0_7, %c0_8] : memref<5x96x32xf32, #tpu.memory_space<vmem>>, vector<1x96x32xf32>
    %4 = vector.shape_cast %3 : vector<1x96x32xf32> to vector<96x32xf32>
    %c0_9 = arith.constant 0 : index
    %c0_10 = arith.constant 0 : index
    %c0_11 = arith.constant 0 : index
    %5 = vector.load %arg2[%c0_9, %c0_10, %c0_11] : memref<5x1x96xf32, #tpu.memory_space<vmem>>, vector<1x1x96xf32>
    %6 = vector.shape_cast %5 : vector<1x1x96xf32> to vector<1x96xf32>
    %c0_12 = arith.constant 0 : index
    %c0_13 = arith.constant 0 : index
    %c0_14 = arith.constant 0 : index
    %7 = vector.load %arg3[%c0_12, %c0_13, %c0_14] : memref<5x32x32xf32, #tpu.memory_space<vmem>>, vector<1x32x32xf32>
    %8 = vector.shape_cast %7 : vector<1x32x32xf32> to vector<32x32xf32>
    %c0_15 = arith.constant 0 : index
    %c0_16 = arith.constant 0 : index
    %c0_17 = arith.constant 0 : index
    %9 = vector.load %arg4[%c0_15, %c0_16, %c0_17] : memref<5x1x32xf32, #tpu.memory_space<vmem>>, vector<1x1x32xf32>
    %10 = vector.shape_cast %9 : vector<1x1x32xf32> to vector<1x32xf32>
    %11 = vector.shape_cast %2 : vector<2x8x32xf32> to vector<16x32xf32>
    %cst = arith.constant dense<0.000000e+00> : vector<16x96xf32>
    %12 = tpu.matmul %11, %4, %cst {dimension_numbers = #tpu.dot_dimension_numbers<[1], [1], [0], [0], [0, 0, 1, 0], [], []>} : vector<16x32xf32>, vector<96x32xf32>, vector<16x96xf32> -> vector<16x96xf32>
    %13 = vector.broadcast %6 : vector<1x96xf32> to vector<16x96xf32>
    %14 = arith.addf %12, %13 : vector<16x96xf32>
    %15 = vector.shape_cast %14 : vector<16x96xf32> to vector<2x8x96xf32>
    %16 = vector.extract_strided_slice %15 {offsets = [0, 0, 0], sizes = [2, 8, 32], strides = [1, 1, 1]} : vector<2x8x96xf32> to vector<2x8x32xf32>
    %cst_18 = arith.constant 0.353553385 : f32
    %17 = vector.broadcast %cst_18 : f32 to vector<2x8x32xf32>
    %18 = arith.mulf %16, %17 : vector<2x8x32xf32>
    %19 = vector.extract_strided_slice %15 {offsets = [0, 0, 32], sizes = [2, 8, 32], strides = [1, 1, 1]} : vector<2x8x96xf32> to vector<2x8x32xf32>
    %20 = vector.extract_strided_slice %15 {offsets = [0, 0, 64], sizes = [2, 8, 32], strides = [1, 1, 1]} : vector<2x8x96xf32> to vector<2x8x32xf32>
    %21 = vector.extract_strided_slice %18 {offsets = [0, 0, 0], sizes = [2, 8, 8], strides = [1, 1, 1]} : vector<2x8x32xf32> to vector<2x8x8xf32>
    %22 = vector.extract_strided_slice %19 {offsets = [0, 0, 0], sizes = [2, 8, 8], strides = [1, 1, 1]} : vector<2x8x32xf32> to vector<2x8x8xf32>
    %23 = vector.extract_strided_slice %20 {offsets = [0, 0, 0], sizes = [2, 8, 8], strides = [1, 1, 1]} : vector<2x8x32xf32> to vector<2x8x8xf32>
    "tpu.trace_start"() <{level = 10 : i32, message = "nqd,nkd->nqk"}> : () -> ()
    %cst_19 = arith.constant dense<0.000000e+00> : vector<2x8x8xf32>
    %24 = tpu.matmul %21, %22, %cst_19 {dimension_numbers = #tpu.dot_dimension_numbers<[2], [2], [1], [1], [0, 0, 0, 1, 1, 1], [0], [0]>} : vector<2x8x8xf32>, vector<2x8x8xf32>, vector<2x8x8xf32> -> vector<2x8x8xf32>
    "tpu.trace_stop"() : () -> ()
    %cst_20 = arith.constant dense<0xFF800000> : vector<2x8xf32>
    %25 = vector.multi_reduction <maximumf>, %24, %cst_20 [2] : vector<2x8x8xf32> to vector<2x8xf32>
    %26 = vector.shape_cast %25 : vector<2x8xf32> to vector<2x8x1xf32>
    %27 = vector.broadcast %26 : vector<2x8x1xf32> to vector<2x8x8xf32>
    %28 = arith.subf %24, %27 : vector<2x8x8xf32>
    %29 = math.exp %28 : vector<2x8x8xf32>
    %cst_21 = arith.constant dense<0.000000e+00> : vector<2x8xf32>
    %30 = vector.multi_reduction <add>, %29, %cst_21 [2] : vector<2x8x8xf32> to vector<2x8xf32>
    %31 = vector.shape_cast %30 : vector<2x8xf32> to vector<2x8x1xf32>
    %32 = tpu.reciprocal %31 {approx = true} : vector<2x8x1xf32> -> vector<2x8x1xf32>
    %33 = vector.broadcast %32 : vector<2x8x1xf32> to vector<2x8x8xf32>
    %34 = arith.mulf %29, %33 : vector<2x8x8xf32>
    "tpu.trace_start"() <{level = 10 : i32, message = "nqk,nkd->nqd"}> : () -> ()
    %cst_22 = arith.constant dense<0.000000e+00> : vector<2x8x8xf32>
    %35 = tpu.matmul %34, %23, %cst_22 {dimension_numbers = #tpu.dot_dimension_numbers<[2], [1], [1], [2], [0, 0, 0, 1, 1, 2], [0], [0]>} : vector<2x8x8xf32>, vector<2x8x8xf32>, vector<2x8x8xf32> -> vector<2x8x8xf32>
    "tpu.trace_stop"() : () -> ()
    %36 = vector.extract_strided_slice %18 {offsets = [0, 0, 8], sizes = [2, 8, 8], strides = [1, 1, 1]} : vector<2x8x32xf32> to vector<2x8x8xf32>
    %37 = vector.extract_strided_slice %19 {offsets = [0, 0, 8], sizes = [2, 8, 8], strides = [1, 1, 1]} : vector<2x8x32xf32> to vector<2x8x8xf32>
    %38 = vector.extract_strided_slice %20 {offsets = [0, 0, 8], sizes = [2, 8, 8], strides = [1, 1, 1]} : vector<2x8x32xf32> to vector<2x8x8xf32>
    "tpu.trace_start"() <{level = 10 : i32, message = "nqd,nkd->nqk"}> : () -> ()
    %cst_23 = arith.constant dense<0.000000e+00> : vector<2x8x8xf32>
    %39 = tpu.matmul %36, %37, %cst_23 {dimension_numbers = #tpu.dot_dimension_numbers<[2], [2], [1], [1], [0, 0, 0, 1, 1, 1], [0], [0]>} : vector<2x8x8xf32>, vector<2x8x8xf32>, vector<2x8x8xf32> -> vector<2x8x8xf32>
    "tpu.trace_stop"() : () -> ()
    %cst_24 = arith.constant dense<0xFF800000> : vector<2x8xf32>
    %40 = vector.multi_reduction <maximumf>, %39, %cst_24 [2] : vector<2x8x8xf32> to vector<2x8xf32>
    %41 = vector.shape_cast %40 : vector<2x8xf32> to vector<2x8x1xf32>
    %42 = vector.broadcast %41 : vector<2x8x1xf32> to vector<2x8x8xf32>
    %43 = arith.subf %39, %42 : vector<2x8x8xf32>
    %44 = math.exp %43 : vector<2x8x8xf32>
    %cst_25 = arith.constant dense<0.000000e+00> : vector<2x8xf32>
    %45 = vector.multi_reduction <add>, %44, %cst_25 [2] : vector<2x8x8xf32> to vector<2x8xf32>
    %46 = vector.shape_cast %45 : vector<2x8xf32> to vector<2x8x1xf32>
    %47 = tpu.reciprocal %46 {approx = true} : vector<2x8x1xf32> -> vector<2x8x1xf32>
    %48 = vector.broadcast %47 : vector<2x8x1xf32> to vector<2x8x8xf32>
    %49 = arith.mulf %44, %48 : vector<2x8x8xf32>
    "tpu.trace_start"() <{level = 10 : i32, message = "nqk,nkd->nqd"}> : () -> ()
    %cst_26 = arith.constant dense<0.000000e+00> : vector<2x8x8xf32>
    %50 = tpu.matmul %49, %38, %cst_26 {dimension_numbers = #tpu.dot_dimension_numbers<[2], [1], [1], [2], [0, 0, 0, 1, 1, 2], [0], [0]>} : vector<2x8x8xf32>, vector<2x8x8xf32>, vector<2x8x8xf32> -> vector<2x8x8xf32>
    "tpu.trace_stop"() : () -> ()
    %51 = vector.extract_strided_slice %18 {offsets = [0, 0, 16], sizes = [2, 8, 8], strides = [1, 1, 1]} : vector<2x8x32xf32> to vector<2x8x8xf32>
    %52 = vector.extract_strided_slice %19 {offsets = [0, 0, 16], sizes = [2, 8, 8], strides = [1, 1, 1]} : vector<2x8x32xf32> to vector<2x8x8xf32>
    %53 = vector.extract_strided_slice %20 {offsets = [0, 0, 16], sizes = [2, 8, 8], strides = [1, 1, 1]} : vector<2x8x32xf32> to vector<2x8x8xf32>
    "tpu.trace_start"() <{level = 10 : i32, message = "nqd,nkd->nqk"}> : () -> ()
    %cst_27 = arith.constant dense<0.000000e+00> : vector<2x8x8xf32>
    %54 = tpu.matmul %51, %52, %cst_27 {dimension_numbers = #tpu.dot_dimension_numbers<[2], [2], [1], [1], [0, 0, 0, 1, 1, 1], [0], [0]>} : vector<2x8x8xf32>, vector<2x8x8xf32>, vector<2x8x8xf32> -> vector<2x8x8xf32>
    "tpu.trace_stop"() : () -> ()
    %cst_28 = arith.constant dense<0xFF800000> : vector<2x8xf32>
    %55 = vector.multi_reduction <maximumf>, %54, %cst_28 [2] : vector<2x8x8xf32> to vector<2x8xf32>
    %56 = vector.shape_cast %55 : vector<2x8xf32> to vector<2x8x1xf32>
    %57 = vector.broadcast %56 : vector<2x8x1xf32> to vector<2x8x8xf32>
    %58 = arith.subf %54, %57 : vector<2x8x8xf32>
    %59 = math.exp %58 : vector<2x8x8xf32>
    %cst_29 = arith.constant dense<0.000000e+00> : vector<2x8xf32>
    %60 = vector.multi_reduction <add>, %59, %cst_29 [2] : vector<2x8x8xf32> to vector<2x8xf32>
    %61 = vector.shape_cast %60 : vector<2x8xf32> to vector<2x8x1xf32>
    %62 = tpu.reciprocal %61 {approx = true} : vector<2x8x1xf32> -> vector<2x8x1xf32>
    %63 = vector.broadcast %62 : vector<2x8x1xf32> to vector<2x8x8xf32>
    %64 = arith.mulf %59, %63 : vector<2x8x8xf32>
    "tpu.trace_start"() <{level = 10 : i32, message = "nqk,nkd->nqd"}> : () -> ()
    %cst_30 = arith.constant dense<0.000000e+00> : vector<2x8x8xf32>
    %65 = tpu.matmul %64, %53, %cst_30 {dimension_numbers = #tpu.dot_dimension_numbers<[2], [1], [1], [2], [0, 0, 0, 1, 1, 2], [0], [0]>} : vector<2x8x8xf32>, vector<2x8x8xf32>, vector<2x8x8xf32> -> vector<2x8x8xf32>
    "tpu.trace_stop"() : () -> ()
    %66 = vector.extract_strided_slice %18 {offsets = [0, 0, 24], sizes = [2, 8, 8], strides = [1, 1, 1]} : vector<2x8x32xf32> to vector<2x8x8xf32>
    %67 = vector.extract_strided_slice %19 {offsets = [0, 0, 24], sizes = [2, 8, 8], strides = [1, 1, 1]} : vector<2x8x32xf32> to vector<2x8x8xf32>
    %68 = vector.extract_strided_slice %20 {offsets = [0, 0, 24], sizes = [2, 8, 8], strides = [1, 1, 1]} : vector<2x8x32xf32> to vector<2x8x8xf32>
    "tpu.trace_start"() <{level = 10 : i32, message = "nqd,nkd->nqk"}> : () -> ()
    %cst_31 = arith.constant dense<0.000000e+00> : vector<2x8x8xf32>
    %69 = tpu.matmul %66, %67, %cst_31 {dimension_numbers = #tpu.dot_dimension_numbers<[2], [2], [1], [1], [0, 0, 0, 1, 1, 1], [0], [0]>} : vector<2x8x8xf32>, vector<2x8x8xf32>, vector<2x8x8xf32> -> vector<2x8x8xf32>
    "tpu.trace_stop"() : () -> ()
    %cst_32 = arith.constant dense<0xFF800000> : vector<2x8xf32>
    %70 = vector.multi_reduction <maximumf>, %69, %cst_32 [2] : vector<2x8x8xf32> to vector<2x8xf32>
    %71 = vector.shape_cast %70 : vector<2x8xf32> to vector<2x8x1xf32>
    %72 = vector.broadcast %71 : vector<2x8x1xf32> to vector<2x8x8xf32>
    %73 = arith.subf %69, %72 : vector<2x8x8xf32>
    %74 = math.exp %73 : vector<2x8x8xf32>
    %cst_33 = arith.constant dense<0.000000e+00> : vector<2x8xf32>
    %75 = vector.multi_reduction <add>, %74, %cst_33 [2] : vector<2x8x8xf32> to vector<2x8xf32>
    %76 = vector.shape_cast %75 : vector<2x8xf32> to vector<2x8x1xf32>
    %77 = tpu.reciprocal %76 {approx = true} : vector<2x8x1xf32> -> vector<2x8x1xf32>
    %78 = vector.broadcast %77 : vector<2x8x1xf32> to vector<2x8x8xf32>
    %79 = arith.mulf %74, %78 : vector<2x8x8xf32>
    "tpu.trace_start"() <{level = 10 : i32, message = "nqk,nkd->nqd"}> : () -> ()
    %cst_34 = arith.constant dense<0.000000e+00> : vector<2x8x8xf32>
    %80 = tpu.matmul %79, %68, %cst_34 {dimension_numbers = #tpu.dot_dimension_numbers<[2], [1], [1], [2], [0, 0, 0, 1, 1, 2], [0], [0]>} : vector<2x8x8xf32>, vector<2x8x8xf32>, vector<2x8x8xf32> -> vector<2x8x8xf32>
    "tpu.trace_stop"() : () -> ()
    %81 = tpu.concatenate %35, %50, %65, %80 in 2 : vector<2x8x8xf32>, vector<2x8x8xf32>, vector<2x8x8xf32>, vector<2x8x8xf32> -> vector<2x8x32xf32>
    %82 = vector.shape_cast %81 : vector<2x8x32xf32> to vector<16x32xf32>
    %cst_35 = arith.constant dense<0.000000e+00> : vector<16x32xf32>
    %83 = tpu.matmul %82, %8, %cst_35 {dimension_numbers = #tpu.dot_dimension_numbers<[1], [1], [0], [0], [0, 0, 1, 0], [], []>} : vector<16x32xf32>, vector<32x32xf32>, vector<16x32xf32> -> vector<16x32xf32>
    %84 = vector.broadcast %10 : vector<1x32xf32> to vector<16x32xf32>
    %85 = arith.addf %83, %84 : vector<16x32xf32>
    %cst_36 = arith.constant dense<0.000000e+00> : vector<16xf32>
    %86 = vector.multi_reduction <add>, %85, %cst_36 [1] : vector<16x32xf32> to vector<16xf32>
    %87 = vector.shape_cast %86 : vector<16xf32> to vector<16x1xf32>
    %cst_37 = arith.constant 3.200000e+01 : f32
    %88 = vector.broadcast %cst_37 : f32 to vector<16x1xf32>
    %89 = arith.divf %87, %88 : vector<16x1xf32>
    %90 = vector.broadcast %89 : vector<16x1xf32> to vector<16x32xf32>
    %91 = arith.subf %85, %90 : vector<16x32xf32>
    %92 = arith.mulf %91, %91 : vector<16x32xf32>
    %cst_38 = arith.constant dense<0.000000e+00> : vector<16xf32>
    %93 = vector.multi_reduction <add>, %92, %cst_38 [1] : vector<16x32xf32> to vector<16xf32>
    %94 = vector.shape_cast %93 : vector<16xf32> to vector<16x1xf32>
    %cst_39 = arith.constant 3.200000e+01 : f32
    %95 = vector.broadcast %cst_39 : f32 to vector<16x1xf32>
    %96 = arith.divf %94, %95 : vector<16x1xf32>
    %97 = vector.broadcast %89 : vector<16x1xf32> to vector<16x32xf32>
    %98 = arith.subf %85, %97 : vector<16x32xf32>
    %cst_40 = arith.constant 9.99999974E-6 : f32
    %99 = vector.broadcast %cst_40 : f32 to vector<16x1xf32>
    %100 = arith.addf %96, %99 : vector<16x1xf32>
    %101 = math.rsqrt %100 : vector<16x1xf32>
    %102 = vector.broadcast %101 : vector<16x1xf32> to vector<16x32xf32>
    %103 = arith.mulf %98, %102 : vector<16x32xf32>
    %104 = vector.broadcast %0 : vector<1x32xf32> to vector<16x32xf32>
    %105 = arith.mulf %103, %104 : vector<16x32xf32>
    %106 = vector.broadcast %1 : vector<1x32xf32> to vector<16x32xf32>
    %107 = arith.addf %105, %106 : vector<16x32xf32>
    %108 = vector.shape_cast %107 : vector<16x32xf32> to vector<2x8x32xf32>
    %c1 = arith.constant 1 : index
    %c0_41 = arith.constant 0 : index
    %c0_42 = arith.constant 0 : index
    %109 = vector.load %arg1[%c1, %c0_41, %c0_42] : memref<5x96x32xf32, #tpu.memory_space<vmem>>, vector<1x96x32xf32>
    %110 = vector.shape_cast %109 : vector<1x96x32xf32> to vector<96x32xf32>
    %c1_43 = arith.constant 1 : index
    %c0_44 = arith.constant 0 : index
    %c0_45 = arith.constant 0 : index
    %111 = vector.load %arg2[%c1_43, %c0_44, %c0_45] : memref<5x1x96xf32, #tpu.memory_space<vmem>>, vector<1x1x96xf32>
    %112 = vector.shape_cast %111 : vector<1x1x96xf32> to vector<1x96xf32>
    %c1_46 = arith.constant 1 : index
    %c0_47 = arith.constant 0 : index
    %c0_48 = arith.constant 0 : index
    %113 = vector.load %arg3[%c1_46, %c0_47, %c0_48] : memref<5x32x32xf32, #tpu.memory_space<vmem>>, vector<1x32x32xf32>
    %114 = vector.shape_cast %113 : vector<1x32x32xf32> to vector<32x32xf32>
    %c1_49 = arith.constant 1 : index
    %c0_50 = arith.constant 0 : index
    %c0_51 = arith.constant 0 : index
    %115 = vector.load %arg4[%c1_49, %c0_50, %c0_51] : memref<5x1x32xf32, #tpu.memory_space<vmem>>, vector<1x1x32xf32>
    %116 = vector.shape_cast %115 : vector<1x1x32xf32> to vector<1x32xf32>
    %117 = vector.shape_cast %108 : vector<2x8x32xf32> to vector<16x32xf32>
    %cst_52 = arith.constant dense<0.000000e+00> : vector<16x96xf32>
    %118 = tpu.matmul %117, %110, %cst_52 {dimension_numbers = #tpu.dot_dimension_numbers<[1], [1], [0], [0], [0, 0, 1, 0], [], []>} : vector<16x32xf32>, vector<96x32xf32>, vector<16x96xf32> -> vector<16x96xf32>
    %119 = vector.broadcast %112 : vector<1x96xf32> to vector<16x96xf32>
    %120 = arith.addf %118, %119 : vector<16x96xf32>
    %121 = vector.shape_cast %120 : vector<16x96xf32> to vector<2x8x96xf32>
    %122 = vector.extract_strided_slice %121 {offsets = [0, 0, 0], sizes = [2, 8, 32], strides = [1, 1, 1]} : vector<2x8x96xf32> to vector<2x8x32xf32>
    %cst_53 = arith.constant 0.353553385 : f32
    %123 = vector.broadcast %cst_53 : f32 to vector<2x8x32xf32>
    %124 = arith.mulf %122, %123 : vector<2x8x32xf32>
    %125 = vector.extract_strided_slice %121 {offsets = [0, 0, 32], sizes = [2, 8, 32], strides = [1, 1, 1]} : vector<2x8x96xf32> to vector<2x8x32xf32>
    %126 = vector.extract_strided_slice %121 {offsets = [0, 0, 64], sizes = [2, 8, 32], strides = [1, 1, 1]} : vector<2x8x96xf32> to vector<2x8x32xf32>
    %127 = vector.extract_strided_slice %124 {offsets = [0, 0, 0], sizes = [2, 8, 8], strides = [1, 1, 1]} : vector<2x8x32xf32> to vector<2x8x8xf32>
    %128 = vector.extract_strided_slice %125 {offsets = [0, 0, 0], sizes = [2, 8, 8], strides = [1, 1, 1]} : vector<2x8x32xf32> to vector<2x8x8xf32>
    %129 = vector.extract_strided_slice %126 {offsets = [0, 0, 0], sizes = [2, 8, 8], strides = [1, 1, 1]} : vector<2x8x32xf32> to vector<2x8x8xf32>
    "tpu.trace_start"() <{level = 10 : i32, message = "nqd,nkd->nqk"}> : () -> ()
    %cst_54 = arith.constant dense<0.000000e+00> : vector<2x8x8xf32>
    %130 = tpu.matmul %127, %128, %cst_54 {dimension_numbers = #tpu.dot_dimension_numbers<[2], [2], [1], [1], [0, 0, 0, 1, 1, 1], [0], [0]>} : vector<2x8x8xf32>, vector<2x8x8xf32>, vector<2x8x8xf32> -> vector<2x8x8xf32>
    "tpu.trace_stop"() : () -> ()
    %cst_55 = arith.constant dense<0xFF800000> : vector<2x8xf32>
    %131 = vector.multi_reduction <maximumf>, %130, %cst_55 [2] : vector<2x8x8xf32> to vector<2x8xf32>
    %132 = vector.shape_cast %131 : vector<2x8xf32> to vector<2x8x1xf32>
    %133 = vector.broadcast %132 : vector<2x8x1xf32> to vector<2x8x8xf32>
    %134 = arith.subf %130, %133 : vector<2x8x8xf32>
    %135 = math.exp %134 : vector<2x8x8xf32>
    %cst_56 = arith.constant dense<0.000000e+00> : vector<2x8xf32>
    %136 = vector.multi_reduction <add>, %135, %cst_56 [2] : vector<2x8x8xf32> to vector<2x8xf32>
    %137 = vector.shape_cast %136 : vector<2x8xf32> to vector<2x8x1xf32>
    %138 = tpu.reciprocal %137 {approx = true} : vector<2x8x1xf32> -> vector<2x8x1xf32>
    %139 = vector.broadcast %138 : vector<2x8x1xf32> to vector<2x8x8xf32>
    %140 = arith.mulf %135, %139 : vector<2x8x8xf32>
    "tpu.trace_start"() <{level = 10 : i32, message = "nqk,nkd->nqd"}> : () -> ()
    %cst_57 = arith.constant dense<0.000000e+00> : vector<2x8x8xf32>
    %141 = tpu.matmul %140, %129, %cst_57 {dimension_numbers = #tpu.dot_dimension_numbers<[2], [1], [1], [2], [0, 0, 0, 1, 1, 2], [0], [0]>} : vector<2x8x8xf32>, vector<2x8x8xf32>, vector<2x8x8xf32> -> vector<2x8x8xf32>
    "tpu.trace_stop"() : () -> ()
    %142 = vector.extract_strided_slice %124 {offsets = [0, 0, 8], sizes = [2, 8, 8], strides = [1, 1, 1]} : vector<2x8x32xf32> to vector<2x8x8xf32>
    %143 = vector.extract_strided_slice %125 {offsets = [0, 0, 8], sizes = [2, 8, 8], strides = [1, 1, 1]} : vector<2x8x32xf32> to vector<2x8x8xf32>
    %144 = vector.extract_strided_slice %126 {offsets = [0, 0, 8], sizes = [2, 8, 8], strides = [1, 1, 1]} : vector<2x8x32xf32> to vector<2x8x8xf32>
    "tpu.trace_start"() <{level = 10 : i32, message = "nqd,nkd->nqk"}> : () -> ()
    %cst_58 = arith.constant dense<0.000000e+00> : vector<2x8x8xf32>
    %145 = tpu.matmul %142, %143, %cst_58 {dimension_numbers = #tpu.dot_dimension_numbers<[2], [2], [1], [1], [0, 0, 0, 1, 1, 1], [0], [0]>} : vector<2x8x8xf32>, vector<2x8x8xf32>, vector<2x8x8xf32> -> vector<2x8x8xf32>
    "tpu.trace_stop"() : () -> ()
    %cst_59 = arith.constant dense<0xFF800000> : vector<2x8xf32>
    %146 = vector.multi_reduction <maximumf>, %145, %cst_59 [2] : vector<2x8x8xf32> to vector<2x8xf32>
    %147 = vector.shape_cast %146 : vector<2x8xf32> to vector<2x8x1xf32>
    %148 = vector.broadcast %147 : vector<2x8x1xf32> to vector<2x8x8xf32>
    %149 = arith.subf %145, %148 : vector<2x8x8xf32>
    %150 = math.exp %149 : vector<2x8x8xf32>
    %cst_60 = arith.constant dense<0.000000e+00> : vector<2x8xf32>
    %151 = vector.multi_reduction <add>, %150, %cst_60 [2] : vector<2x8x8xf32> to vector<2x8xf32>
    %152 = vector.shape_cast %151 : vector<2x8xf32> to vector<2x8x1xf32>
    %153 = tpu.reciprocal %152 {approx = true} : vector<2x8x1xf32> -> vector<2x8x1xf32>
    %154 = vector.broadcast %153 : vector<2x8x1xf32> to vector<2x8x8xf32>
    %155 = arith.mulf %150, %154 : vector<2x8x8xf32>
    "tpu.trace_start"() <{level = 10 : i32, message = "nqk,nkd->nqd"}> : () -> ()
    %cst_61 = arith.constant dense<0.000000e+00> : vector<2x8x8xf32>
    %156 = tpu.matmul %155, %144, %cst_61 {dimension_numbers = #tpu.dot_dimension_numbers<[2], [1], [1], [2], [0, 0, 0, 1, 1, 2], [0], [0]>} : vector<2x8x8xf32>, vector<2x8x8xf32>, vector<2x8x8xf32> -> vector<2x8x8xf32>
    "tpu.trace_stop"() : () -> ()
    %157 = vector.extract_strided_slice %124 {offsets = [0, 0, 16], sizes = [2, 8, 8], strides = [1, 1, 1]} : vector<2x8x32xf32> to vector<2x8x8xf32>
    %158 = vector.extract_strided_slice %125 {offsets = [0, 0, 16], sizes = [2, 8, 8], strides = [1, 1, 1]} : vector<2x8x32xf32> to vector<2x8x8xf32>
    %159 = vector.extract_strided_slice %126 {offsets = [0, 0, 16], sizes = [2, 8, 8], strides = [1, 1, 1]} : vector<2x8x32xf32> to vector<2x8x8xf32>
    "tpu.trace_start"() <{level = 10 : i32, message = "nqd,nkd->nqk"}> : () -> ()
    %cst_62 = arith.constant dense<0.000000e+00> : vector<2x8x8xf32>
    %160 = tpu.matmul %157, %158, %cst_62 {dimension_numbers = #tpu.dot_dimension_numbers<[2], [2], [1], [1], [0, 0, 0, 1, 1, 1], [0], [0]>} : vector<2x8x8xf32>, vector<2x8x8xf32>, vector<2x8x8xf32> -> vector<2x8x8xf32>
    "tpu.trace_stop"() : () -> ()
    %cst_63 = arith.constant dense<0xFF800000> : vector<2x8xf32>
    %161 = vector.multi_reduction <maximumf>, %160, %cst_63 [2] : vector<2x8x8xf32> to vector<2x8xf32>
    %162 = vector.shape_cast %161 : vector<2x8xf32> to vector<2x8x1xf32>
    %163 = vector.broadcast %162 : vector<2x8x1xf32> to vector<2x8x8xf32>
    %164 = arith.subf %160, %163 : vector<2x8x8xf32>
    %165 = math.exp %164 : vector<2x8x8xf32>
    %cst_64 = arith.constant dense<0.000000e+00> : vector<2x8xf32>
    %166 = vector.multi_reduction <add>, %165, %cst_64 [2] : vector<2x8x8xf32> to vector<2x8xf32>
    %167 = vector.shape_cast %166 : vector<2x8xf32> to vector<2x8x1xf32>
    %168 = tpu.reciprocal %167 {approx = true} : vector<2x8x1xf32> -> vector<2x8x1xf32>
    %169 = vector.broadcast %168 : vector<2x8x1xf32> to vector<2x8x8xf32>
    %170 = arith.mulf %165, %169 : vector<2x8x8xf32>
    "tpu.trace_start"() <{level = 10 : i32, message = "nqk,nkd->nqd"}> : () -> ()
    %cst_65 = arith.constant dense<0.000000e+00> : vector<2x8x8xf32>
    %171 = tpu.matmul %170, %159, %cst_65 {dimension_numbers = #tpu.dot_dimension_numbers<[2], [1], [1], [2], [0, 0, 0, 1, 1, 2], [0], [0]>} : vector<2x8x8xf32>, vector<2x8x8xf32>, vector<2x8x8xf32> -> vector<2x8x8xf32>
    "tpu.trace_stop"() : () -> ()
    %172 = vector.extract_strided_slice %124 {offsets = [0, 0, 24], sizes = [2, 8, 8], strides = [1, 1, 1]} : vector<2x8x32xf32> to vector<2x8x8xf32>
    %173 = vector.extract_strided_slice %125 {offsets = [0, 0, 24], sizes = [2, 8, 8], strides = [1, 1, 1]} : vector<2x8x32xf32> to vector<2x8x8xf32>
    %174 = vector.extract_strided_slice %126 {offsets = [0, 0, 24], sizes = [2, 8, 8], strides = [1, 1, 1]} : vector<2x8x32xf32> to vector<2x8x8xf32>
    "tpu.trace_start"() <{level = 10 : i32, message = "nqd,nkd->nqk"}> : () -> ()
    %cst_66 = arith.constant dense<0.000000e+00> : vector<2x8x8xf32>
    %175 = tpu.matmul %172, %173, %cst_66 {dimension_numbers = #tpu.dot_dimension_numbers<[2], [2], [1], [1], [0, 0, 0, 1, 1, 1], [0], [0]>} : vector<2x8x8xf32>, vector<2x8x8xf32>, vector<2x8x8xf32> -> vector<2x8x8xf32>
    "tpu.trace_stop"() : () -> ()
    %cst_67 = arith.constant dense<0xFF800000> : vector<2x8xf32>
    %176 = vector.multi_reduction <maximumf>, %175, %cst_67 [2] : vector<2x8x8xf32> to vector<2x8xf32>
    %177 = vector.shape_cast %176 : vector<2x8xf32> to vector<2x8x1xf32>
    %178 = vector.broadcast %177 : vector<2x8x1xf32> to vector<2x8x8xf32>
    %179 = arith.subf %175, %178 : vector<2x8x8xf32>
    %180 = math.exp %179 : vector<2x8x8xf32>
    %cst_68 = arith.constant dense<0.000000e+00> : vector<2x8xf32>
    %181 = vector.multi_reduction <add>, %180, %cst_68 [2] : vector<2x8x8xf32> to vector<2x8xf32>
    %182 = vector.shape_cast %181 : vector<2x8xf32> to vector<2x8x1xf32>
    %183 = tpu.reciprocal %182 {approx = true} : vector<2x8x1xf32> -> vector<2x8x1xf32>
    %184 = vector.broadcast %183 : vector<2x8x1xf32> to vector<2x8x8xf32>
    %185 = arith.mulf %180, %184 : vector<2x8x8xf32>
    "tpu.trace_start"() <{level = 10 : i32, message = "nqk,nkd->nqd"}> : () -> ()
    %cst_69 = arith.constant dense<0.000000e+00> : vector<2x8x8xf32>
    %186 = tpu.matmul %185, %174, %cst_69 {dimension_numbers = #tpu.dot_dimension_numbers<[2], [1], [1], [2], [0, 0, 0, 1, 1, 2], [0], [0]>} : vector<2x8x8xf32>, vector<2x8x8xf32>, vector<2x8x8xf32> -> vector<2x8x8xf32>
    "tpu.trace_stop"() : () -> ()
    %187 = tpu.concatenate %141, %156, %171, %186 in 2 : vector<2x8x8xf32>, vector<2x8x8xf32>, vector<2x8x8xf32>, vector<2x8x8xf32> -> vector<2x8x32xf32>
    %188 = vector.shape_cast %187 : vector<2x8x32xf32> to vector<16x32xf32>
    %cst_70 = arith.constant dense<0.000000e+00> : vector<16x32xf32>
    %189 = tpu.matmul %188, %114, %cst_70 {dimension_numbers = #tpu.dot_dimension_numbers<[1], [1], [0], [0], [0, 0, 1, 0], [], []>} : vector<16x32xf32>, vector<32x32xf32>, vector<16x32xf32> -> vector<16x32xf32>
    %190 = vector.broadcast %116 : vector<1x32xf32> to vector<16x32xf32>
    %191 = arith.addf %189, %190 : vector<16x32xf32>
    %cst_71 = arith.constant dense<0.000000e+00> : vector<16xf32>
    %192 = vector.multi_reduction <add>, %191, %cst_71 [1] : vector<16x32xf32> to vector<16xf32>
    %193 = vector.shape_cast %192 : vector<16xf32> to vector<16x1xf32>
    %cst_72 = arith.constant 3.200000e+01 : f32
    %194 = vector.broadcast %cst_72 : f32 to vector<16x1xf32>
    %195 = arith.divf %193, %194 : vector<16x1xf32>
    %196 = vector.broadcast %195 : vector<16x1xf32> to vector<16x32xf32>
    %197 = arith.subf %191, %196 : vector<16x32xf32>
    %198 = arith.mulf %197, %197 : vector<16x32xf32>
    %cst_73 = arith.constant dense<0.000000e+00> : vector<16xf32>
    %199 = vector.multi_reduction <add>, %198, %cst_73 [1] : vector<16x32xf32> to vector<16xf32>
    %200 = vector.shape_cast %199 : vector<16xf32> to vector<16x1xf32>
    %cst_74 = arith.constant 3.200000e+01 : f32
    %201 = vector.broadcast %cst_74 : f32 to vector<16x1xf32>
    %202 = arith.divf %200, %201 : vector<16x1xf32>
    %203 = vector.broadcast %195 : vector<16x1xf32> to vector<16x32xf32>
    %204 = arith.subf %191, %203 : vector<16x32xf32>
    %cst_75 = arith.constant 9.99999974E-6 : f32
    %205 = vector.broadcast %cst_75 : f32 to vector<16x1xf32>
    %206 = arith.addf %202, %205 : vector<16x1xf32>
    %207 = math.rsqrt %206 : vector<16x1xf32>
    %208 = vector.broadcast %207 : vector<16x1xf32> to vector<16x32xf32>
    %209 = arith.mulf %204, %208 : vector<16x32xf32>
    %210 = vector.broadcast %0 : vector<1x32xf32> to vector<16x32xf32>
    %211 = arith.mulf %209, %210 : vector<16x32xf32>
    %212 = vector.broadcast %1 : vector<1x32xf32> to vector<16x32xf32>
    %213 = arith.addf %211, %212 : vector<16x32xf32>
    %214 = vector.shape_cast %213 : vector<16x32xf32> to vector<2x8x32xf32>
    %c2 = arith.constant 2 : index
    %c0_76 = arith.constant 0 : index
    %c0_77 = arith.constant 0 : index
    %215 = vector.load %arg1[%c2, %c0_76, %c0_77] : memref<5x96x32xf32, #tpu.memory_space<vmem>>, vector<1x96x32xf32>
    %216 = vector.shape_cast %215 : vector<1x96x32xf32> to vector<96x32xf32>
    %c2_78 = arith.constant 2 : index
    %c0_79 = arith.constant 0 : index
    %c0_80 = arith.constant 0 : index
    %217 = vector.load %arg2[%c2_78, %c0_79, %c0_80] : memref<5x1x96xf32, #tpu.memory_space<vmem>>, vector<1x1x96xf32>
    %218 = vector.shape_cast %217 : vector<1x1x96xf32> to vector<1x96xf32>
    %c2_81 = arith.constant 2 : index
    %c0_82 = arith.constant 0 : index
    %c0_83 = arith.constant 0 : index
    %219 = vector.load %arg3[%c2_81, %c0_82, %c0_83] : memref<5x32x32xf32, #tpu.memory_space<vmem>>, vector<1x32x32xf32>
    %220 = vector.shape_cast %219 : vector<1x32x32xf32> to vector<32x32xf32>
    %c2_84 = arith.constant 2 : index
    %c0_85 = arith.constant 0 : index
    %c0_86 = arith.constant 0 : index
    %221 = vector.load %arg4[%c2_84, %c0_85, %c0_86] : memref<5x1x32xf32, #tpu.memory_space<vmem>>, vector<1x1x32xf32>
    %222 = vector.shape_cast %221 : vector<1x1x32xf32> to vector<1x32xf32>
    %223 = vector.shape_cast %214 : vector<2x8x32xf32> to vector<16x32xf32>
    %cst_87 = arith.constant dense<0.000000e+00> : vector<16x96xf32>
    %224 = tpu.matmul %223, %216, %cst_87 {dimension_numbers = #tpu.dot_dimension_numbers<[1], [1], [0], [0], [0, 0, 1, 0], [], []>} : vector<16x32xf32>, vector<96x32xf32>, vector<16x96xf32> -> vector<16x96xf32>
    %225 = vector.broadcast %218 : vector<1x96xf32> to vector<16x96xf32>
    %226 = arith.addf %224, %225 : vector<16x96xf32>
    %227 = vector.shape_cast %226 : vector<16x96xf32> to vector<2x8x96xf32>
    %228 = vector.extract_strided_slice %227 {offsets = [0, 0, 0], sizes = [2, 8, 32], strides = [1, 1, 1]} : vector<2x8x96xf32> to vector<2x8x32xf32>
    %cst_88 = arith.constant 0.353553385 : f32
    %229 = vector.broadcast %cst_88 : f32 to vector<2x8x32xf32>
    %230 = arith.mulf %228, %229 : vector<2x8x32xf32>
    %231 = vector.extract_strided_slice %227 {offsets = [0, 0, 32], sizes = [2, 8, 32], strides = [1, 1, 1]} : vector<2x8x96xf32> to vector<2x8x32xf32>
    %232 = vector.extract_strided_slice %227 {offsets = [0, 0, 64], sizes = [2, 8, 32], strides = [1, 1, 1]} : vector<2x8x96xf32> to vector<2x8x32xf32>
    %233 = vector.extract_strided_slice %230 {offsets = [0, 0, 0], sizes = [2, 8, 8], strides = [1, 1, 1]} : vector<2x8x32xf32> to vector<2x8x8xf32>
    %234 = vector.extract_strided_slice %231 {offsets = [0, 0, 0], sizes = [2, 8, 8], strides = [1, 1, 1]} : vector<2x8x32xf32> to vector<2x8x8xf32>
    %235 = vector.extract_strided_slice %232 {offsets = [0, 0, 0], sizes = [2, 8, 8], strides = [1, 1, 1]} : vector<2x8x32xf32> to vector<2x8x8xf32>
    "tpu.trace_start"() <{level = 10 : i32, message = "nqd,nkd->nqk"}> : () -> ()
    %cst_89 = arith.constant dense<0.000000e+00> : vector<2x8x8xf32>
    %236 = tpu.matmul %233, %234, %cst_89 {dimension_numbers = #tpu.dot_dimension_numbers<[2], [2], [1], [1], [0, 0, 0, 1, 1, 1], [0], [0]>} : vector<2x8x8xf32>, vector<2x8x8xf32>, vector<2x8x8xf32> -> vector<2x8x8xf32>
    "tpu.trace_stop"() : () -> ()
    %cst_90 = arith.constant dense<0xFF800000> : vector<2x8xf32>
    %237 = vector.multi_reduction <maximumf>, %236, %cst_90 [2] : vector<2x8x8xf32> to vector<2x8xf32>
    %238 = vector.shape_cast %237 : vector<2x8xf32> to vector<2x8x1xf32>
    %239 = vector.broadcast %238 : vector<2x8x1xf32> to vector<2x8x8xf32>
    %240 = arith.subf %236, %239 : vector<2x8x8xf32>
    %241 = math.exp %240 : vector<2x8x8xf32>
    %cst_91 = arith.constant dense<0.000000e+00> : vector<2x8xf32>
    %242 = vector.multi_reduction <add>, %241, %cst_91 [2] : vector<2x8x8xf32> to vector<2x8xf32>
    %243 = vector.shape_cast %242 : vector<2x8xf32> to vector<2x8x1xf32>
    %244 = tpu.reciprocal %243 {approx = true} : vector<2x8x1xf32> -> vector<2x8x1xf32>
    %245 = vector.broadcast %244 : vector<2x8x1xf32> to vector<2x8x8xf32>
    %246 = arith.mulf %241, %245 : vector<2x8x8xf32>
    "tpu.trace_start"() <{level = 10 : i32, message = "nqk,nkd->nqd"}> : () -> ()
    %cst_92 = arith.constant dense<0.000000e+00> : vector<2x8x8xf32>
    %247 = tpu.matmul %246, %235, %cst_92 {dimension_numbers = #tpu.dot_dimension_numbers<[2], [1], [1], [2], [0, 0, 0, 1, 1, 2], [0], [0]>} : vector<2x8x8xf32>, vector<2x8x8xf32>, vector<2x8x8xf32> -> vector<2x8x8xf32>
    "tpu.trace_stop"() : () -> ()
    %248 = vector.extract_strided_slice %230 {offsets = [0, 0, 8], sizes = [2, 8, 8], strides = [1, 1, 1]} : vector<2x8x32xf32> to vector<2x8x8xf32>
    %249 = vector.extract_strided_slice %231 {offsets = [0, 0, 8], sizes = [2, 8, 8], strides = [1, 1, 1]} : vector<2x8x32xf32> to vector<2x8x8xf32>
    %250 = vector.extract_strided_slice %232 {offsets = [0, 0, 8], sizes = [2, 8, 8], strides = [1, 1, 1]} : vector<2x8x32xf32> to vector<2x8x8xf32>
    "tpu.trace_start"() <{level = 10 : i32, message = "nqd,nkd->nqk"}> : () -> ()
    %cst_93 = arith.constant dense<0.000000e+00> : vector<2x8x8xf32>
    %251 = tpu.matmul %248, %249, %cst_93 {dimension_numbers = #tpu.dot_dimension_numbers<[2], [2], [1], [1], [0, 0, 0, 1, 1, 1], [0], [0]>} : vector<2x8x8xf32>, vector<2x8x8xf32>, vector<2x8x8xf32> -> vector<2x8x8xf32>
    "tpu.trace_stop"() : () -> ()
    %cst_94 = arith.constant dense<0xFF800000> : vector<2x8xf32>
    %252 = vector.multi_reduction <maximumf>, %251, %cst_94 [2] : vector<2x8x8xf32> to vector<2x8xf32>
    %253 = vector.shape_cast %252 : vector<2x8xf32> to vector<2x8x1xf32>
    %254 = vector.broadcast %253 : vector<2x8x1xf32> to vector<2x8x8xf32>
    %255 = arith.subf %251, %254 : vector<2x8x8xf32>
    %256 = math.exp %255 : vector<2x8x8xf32>
    %cst_95 = arith.constant dense<0.000000e+00> : vector<2x8xf32>
    %257 = vector.multi_reduction <add>, %256, %cst_95 [2] : vector<2x8x8xf32> to vector<2x8xf32>
    %258 = vector.shape_cast %257 : vector<2x8xf32> to vector<2x8x1xf32>
    %259 = tpu.reciprocal %258 {approx = true} : vector<2x8x1xf32> -> vector<2x8x1xf32>
    %260 = vector.broadcast %259 : vector<2x8x1xf32> to vector<2x8x8xf32>
    %261 = arith.mulf %256, %260 : vector<2x8x8xf32>
    "tpu.trace_start"() <{level = 10 : i32, message = "nqk,nkd->nqd"}> : () -> ()
    %cst_96 = arith.constant dense<0.000000e+00> : vector<2x8x8xf32>
    %262 = tpu.matmul %261, %250, %cst_96 {dimension_numbers = #tpu.dot_dimension_numbers<[2], [1], [1], [2], [0, 0, 0, 1, 1, 2], [0], [0]>} : vector<2x8x8xf32>, vector<2x8x8xf32>, vector<2x8x8xf32> -> vector<2x8x8xf32>
    "tpu.trace_stop"() : () -> ()
    %263 = vector.extract_strided_slice %230 {offsets = [0, 0, 16], sizes = [2, 8, 8], strides = [1, 1, 1]} : vector<2x8x32xf32> to vector<2x8x8xf32>
    %264 = vector.extract_strided_slice %231 {offsets = [0, 0, 16], sizes = [2, 8, 8], strides = [1, 1, 1]} : vector<2x8x32xf32> to vector<2x8x8xf32>
    %265 = vector.extract_strided_slice %232 {offsets = [0, 0, 16], sizes = [2, 8, 8], strides = [1, 1, 1]} : vector<2x8x32xf32> to vector<2x8x8xf32>
    "tpu.trace_start"() <{level = 10 : i32, message = "nqd,nkd->nqk"}> : () -> ()
    %cst_97 = arith.constant dense<0.000000e+00> : vector<2x8x8xf32>
    %266 = tpu.matmul %263, %264, %cst_97 {dimension_numbers = #tpu.dot_dimension_numbers<[2], [2], [1], [1], [0, 0, 0, 1, 1, 1], [0], [0]>} : vector<2x8x8xf32>, vector<2x8x8xf32>, vector<2x8x8xf32> -> vector<2x8x8xf32>
    "tpu.trace_stop"() : () -> ()
    %cst_98 = arith.constant dense<0xFF800000> : vector<2x8xf32>
    %267 = vector.multi_reduction <maximumf>, %266, %cst_98 [2] : vector<2x8x8xf32> to vector<2x8xf32>
    %268 = vector.shape_cast %267 : vector<2x8xf32> to vector<2x8x1xf32>
    %269 = vector.broadcast %268 : vector<2x8x1xf32> to vector<2x8x8xf32>
    %270 = arith.subf %266, %269 : vector<2x8x8xf32>
    %271 = math.exp %270 : vector<2x8x8xf32>
    %cst_99 = arith.constant dense<0.000000e+00> : vector<2x8xf32>
    %272 = vector.multi_reduction <add>, %271, %cst_99 [2] : vector<2x8x8xf32> to vector<2x8xf32>
    %273 = vector.shape_cast %272 : vector<2x8xf32> to vector<2x8x1xf32>
    %274 = tpu.reciprocal %273 {approx = true} : vector<2x8x1xf32> -> vector<2x8x1xf32>
    %275 = vector.broadcast %274 : vector<2x8x1xf32> to vector<2x8x8xf32>
    %276 = arith.mulf %271, %275 : vector<2x8x8xf32>
    "tpu.trace_start"() <{level = 10 : i32, message = "nqk,nkd->nqd"}> : () -> ()
    %cst_100 = arith.constant dense<0.000000e+00> : vector<2x8x8xf32>
    %277 = tpu.matmul %276, %265, %cst_100 {dimension_numbers = #tpu.dot_dimension_numbers<[2], [1], [1], [2], [0, 0, 0, 1, 1, 2], [0], [0]>} : vector<2x8x8xf32>, vector<2x8x8xf32>, vector<2x8x8xf32> -> vector<2x8x8xf32>
    "tpu.trace_stop"() : () -> ()
    %278 = vector.extract_strided_slice %230 {offsets = [0, 0, 24], sizes = [2, 8, 8], strides = [1, 1, 1]} : vector<2x8x32xf32> to vector<2x8x8xf32>
    %279 = vector.extract_strided_slice %231 {offsets = [0, 0, 24], sizes = [2, 8, 8], strides = [1, 1, 1]} : vector<2x8x32xf32> to vector<2x8x8xf32>
    %280 = vector.extract_strided_slice %232 {offsets = [0, 0, 24], sizes = [2, 8, 8], strides = [1, 1, 1]} : vector<2x8x32xf32> to vector<2x8x8xf32>
    "tpu.trace_start"() <{level = 10 : i32, message = "nqd,nkd->nqk"}> : () -> ()
    %cst_101 = arith.constant dense<0.000000e+00> : vector<2x8x8xf32>
    %281 = tpu.matmul %278, %279, %cst_101 {dimension_numbers = #tpu.dot_dimension_numbers<[2], [2], [1], [1], [0, 0, 0, 1, 1, 1], [0], [0]>} : vector<2x8x8xf32>, vector<2x8x8xf32>, vector<2x8x8xf32> -> vector<2x8x8xf32>
    "tpu.trace_stop"() : () -> ()
    %cst_102 = arith.constant dense<0xFF800000> : vector<2x8xf32>
    %282 = vector.multi_reduction <maximumf>, %281, %cst_102 [2] : vector<2x8x8xf32> to vector<2x8xf32>
    %283 = vector.shape_cast %282 : vector<2x8xf32> to vector<2x8x1xf32>
    %284 = vector.broadcast %283 : vector<2x8x1xf32> to vector<2x8x8xf32>
    %285 = arith.subf %281, %284 : vector<2x8x8xf32>
    %286 = math.exp %285 : vector<2x8x8xf32>
    %cst_103 = arith.constant dense<0.000000e+00> : vector<2x8xf32>
    %287 = vector.multi_reduction <add>, %286, %cst_103 [2] : vector<2x8x8xf32> to vector<2x8xf32>
    %288 = vector.shape_cast %287 : vector<2x8xf32> to vector<2x8x1xf32>
    %289 = tpu.reciprocal %288 {approx = true} : vector<2x8x1xf32> -> vector<2x8x1xf32>
    %290 = vector.broadcast %289 : vector<2x8x1xf32> to vector<2x8x8xf32>
    %291 = arith.mulf %286, %290 : vector<2x8x8xf32>
    "tpu.trace_start"() <{level = 10 : i32, message = "nqk,nkd->nqd"}> : () -> ()
    %cst_104 = arith.constant dense<0.000000e+00> : vector<2x8x8xf32>
    %292 = tpu.matmul %291, %280, %cst_104 {dimension_numbers = #tpu.dot_dimension_numbers<[2], [1], [1], [2], [0, 0, 0, 1, 1, 2], [0], [0]>} : vector<2x8x8xf32>, vector<2x8x8xf32>, vector<2x8x8xf32> -> vector<2x8x8xf32>
    "tpu.trace_stop"() : () -> ()
    %293 = tpu.concatenate %247, %262, %277, %292 in 2 : vector<2x8x8xf32>, vector<2x8x8xf32>, vector<2x8x8xf32>, vector<2x8x8xf32> -> vector<2x8x32xf32>
    %294 = vector.shape_cast %293 : vector<2x8x32xf32> to vector<16x32xf32>
    %cst_105 = arith.constant dense<0.000000e+00> : vector<16x32xf32>
    %295 = tpu.matmul %294, %220, %cst_105 {dimension_numbers = #tpu.dot_dimension_numbers<[1], [1], [0], [0], [0, 0, 1, 0], [], []>} : vector<16x32xf32>, vector<32x32xf32>, vector<16x32xf32> -> vector<16x32xf32>
    %296 = vector.broadcast %222 : vector<1x32xf32> to vector<16x32xf32>
    %297 = arith.addf %295, %296 : vector<16x32xf32>
    %cst_106 = arith.constant dense<0.000000e+00> : vector<16xf32>
    %298 = vector.multi_reduction <add>, %297, %cst_106 [1] : vector<16x32xf32> to vector<16xf32>
    %299 = vector.shape_cast %298 : vector<16xf32> to vector<16x1xf32>
    %cst_107 = arith.constant 3.200000e+01 : f32
    %300 = vector.broadcast %cst_107 : f32 to vector<16x1xf32>
    %301 = arith.divf %299, %300 : vector<16x1xf32>
    %302 = vector.broadcast %301 : vector<16x1xf32> to vector<16x32xf32>
    %303 = arith.subf %297, %302 : vector<16x32xf32>
    %304 = arith.mulf %303, %303 : vector<16x32xf32>
    %cst_108 = arith.constant dense<0.000000e+00> : vector<16xf32>
    %305 = vector.multi_reduction <add>, %304, %cst_108 [1] : vector<16x32xf32> to vector<16xf32>
    %306 = vector.shape_cast %305 : vector<16xf32> to vector<16x1xf32>
    %cst_109 = arith.constant 3.200000e+01 : f32
    %307 = vector.broadcast %cst_109 : f32 to vector<16x1xf32>
    %308 = arith.divf %306, %307 : vector<16x1xf32>
    %309 = vector.broadcast %301 : vector<16x1xf32> to vector<16x32xf32>
    %310 = arith.subf %297, %309 : vector<16x32xf32>
    %cst_110 = arith.constant 9.99999974E-6 : f32
    %311 = vector.broadcast %cst_110 : f32 to vector<16x1xf32>
    %312 = arith.addf %308, %311 : vector<16x1xf32>
    %313 = math.rsqrt %312 : vector<16x1xf32>
    %314 = vector.broadcast %313 : vector<16x1xf32> to vector<16x32xf32>
    %315 = arith.mulf %310, %314 : vector<16x32xf32>
    %316 = vector.broadcast %0 : vector<1x32xf32> to vector<16x32xf32>
    %317 = arith.mulf %315, %316 : vector<16x32xf32>
    %318 = vector.broadcast %1 : vector<1x32xf32> to vector<16x32xf32>
    %319 = arith.addf %317, %318 : vector<16x32xf32>
    %320 = vector.shape_cast %319 : vector<16x32xf32> to vector<2x8x32xf32>
    %c3 = arith.constant 3 : index
    %c0_111 = arith.constant 0 : index
    %c0_112 = arith.constant 0 : index
    %321 = vector.load %arg1[%c3, %c0_111, %c0_112] : memref<5x96x32xf32, #tpu.memory_space<vmem>>, vector<1x96x32xf32>
    %322 = vector.shape_cast %321 : vector<1x96x32xf32> to vector<96x32xf32>
    %c3_113 = arith.constant 3 : index
    %c0_114 = arith.constant 0 : index
    %c0_115 = arith.constant 0 : index
    %323 = vector.load %arg2[%c3_113, %c0_114, %c0_115] : memref<5x1x96xf32, #tpu.memory_space<vmem>>, vector<1x1x96xf32>
    %324 = vector.shape_cast %323 : vector<1x1x96xf32> to vector<1x96xf32>
    %c3_116 = arith.constant 3 : index
    %c0_117 = arith.constant 0 : index
    %c0_118 = arith.constant 0 : index
    %325 = vector.load %arg3[%c3_116, %c0_117, %c0_118] : memref<5x32x32xf32, #tpu.memory_space<vmem>>, vector<1x32x32xf32>
    %326 = vector.shape_cast %325 : vector<1x32x32xf32> to vector<32x32xf32>
    %c3_119 = arith.constant 3 : index
    %c0_120 = arith.constant 0 : index
    %c0_121 = arith.constant 0 : index
    %327 = vector.load %arg4[%c3_119, %c0_120, %c0_121] : memref<5x1x32xf32, #tpu.memory_space<vmem>>, vector<1x1x32xf32>
    %328 = vector.shape_cast %327 : vector<1x1x32xf32> to vector<1x32xf32>
    %329 = vector.shape_cast %320 : vector<2x8x32xf32> to vector<16x32xf32>
    %cst_122 = arith.constant dense<0.000000e+00> : vector<16x96xf32>
    %330 = tpu.matmul %329, %322, %cst_122 {dimension_numbers = #tpu.dot_dimension_numbers<[1], [1], [0], [0], [0, 0, 1, 0], [], []>} : vector<16x32xf32>, vector<96x32xf32>, vector<16x96xf32> -> vector<16x96xf32>
    %331 = vector.broadcast %324 : vector<1x96xf32> to vector<16x96xf32>
    %332 = arith.addf %330, %331 : vector<16x96xf32>
    %333 = vector.shape_cast %332 : vector<16x96xf32> to vector<2x8x96xf32>
    %334 = vector.extract_strided_slice %333 {offsets = [0, 0, 0], sizes = [2, 8, 32], strides = [1, 1, 1]} : vector<2x8x96xf32> to vector<2x8x32xf32>
    %cst_123 = arith.constant 0.353553385 : f32
    %335 = vector.broadcast %cst_123 : f32 to vector<2x8x32xf32>
    %336 = arith.mulf %334, %335 : vector<2x8x32xf32>
    %337 = vector.extract_strided_slice %333 {offsets = [0, 0, 32], sizes = [2, 8, 32], strides = [1, 1, 1]} : vector<2x8x96xf32> to vector<2x8x32xf32>
    %338 = vector.extract_strided_slice %333 {offsets = [0, 0, 64], sizes = [2, 8, 32], strides = [1, 1, 1]} : vector<2x8x96xf32> to vector<2x8x32xf32>
    %339 = vector.extract_strided_slice %336 {offsets = [0, 0, 0], sizes = [2, 8, 8], strides = [1, 1, 1]} : vector<2x8x32xf32> to vector<2x8x8xf32>
    %340 = vector.extract_strided_slice %337 {offsets = [0, 0, 0], sizes = [2, 8, 8], strides = [1, 1, 1]} : vector<2x8x32xf32> to vector<2x8x8xf32>
    %341 = vector.extract_strided_slice %338 {offsets = [0, 0, 0], sizes = [2, 8, 8], strides = [1, 1, 1]} : vector<2x8x32xf32> to vector<2x8x8xf32>
    "tpu.trace_start"() <{level = 10 : i32, message = "nqd,nkd->nqk"}> : () -> ()
    %cst_124 = arith.constant dense<0.000000e+00> : vector<2x8x8xf32>
    %342 = tpu.matmul %339, %340, %cst_124 {dimension_numbers = #tpu.dot_dimension_numbers<[2], [2], [1], [1], [0, 0, 0, 1, 1, 1], [0], [0]>} : vector<2x8x8xf32>, vector<2x8x8xf32>, vector<2x8x8xf32> -> vector<2x8x8xf32>
    "tpu.trace_stop"() : () -> ()
    %cst_125 = arith.constant dense<0xFF800000> : vector<2x8xf32>
    %343 = vector.multi_reduction <maximumf>, %342, %cst_125 [2] : vector<2x8x8xf32> to vector<2x8xf32>
    %344 = vector.shape_cast %343 : vector<2x8xf32> to vector<2x8x1xf32>
    %345 = vector.broadcast %344 : vector<2x8x1xf32> to vector<2x8x8xf32>
    %346 = arith.subf %342, %345 : vector<2x8x8xf32>
    %347 = math.exp %346 : vector<2x8x8xf32>
    %cst_126 = arith.constant dense<0.000000e+00> : vector<2x8xf32>
    %348 = vector.multi_reduction <add>, %347, %cst_126 [2] : vector<2x8x8xf32> to vector<2x8xf32>
    %349 = vector.shape_cast %348 : vector<2x8xf32> to vector<2x8x1xf32>
    %350 = tpu.reciprocal %349 {approx = true} : vector<2x8x1xf32> -> vector<2x8x1xf32>
    %351 = vector.broadcast %350 : vector<2x8x1xf32> to vector<2x8x8xf32>
    %352 = arith.mulf %347, %351 : vector<2x8x8xf32>
    "tpu.trace_start"() <{level = 10 : i32, message = "nqk,nkd->nqd"}> : () -> ()
    %cst_127 = arith.constant dense<0.000000e+00> : vector<2x8x8xf32>
    %353 = tpu.matmul %352, %341, %cst_127 {dimension_numbers = #tpu.dot_dimension_numbers<[2], [1], [1], [2], [0, 0, 0, 1, 1, 2], [0], [0]>} : vector<2x8x8xf32>, vector<2x8x8xf32>, vector<2x8x8xf32> -> vector<2x8x8xf32>
    "tpu.trace_stop"() : () -> ()
    %354 = vector.extract_strided_slice %336 {offsets = [0, 0, 8], sizes = [2, 8, 8], strides = [1, 1, 1]} : vector<2x8x32xf32> to vector<2x8x8xf32>
    %355 = vector.extract_strided_slice %337 {offsets = [0, 0, 8], sizes = [2, 8, 8], strides = [1, 1, 1]} : vector<2x8x32xf32> to vector<2x8x8xf32>
    %356 = vector.extract_strided_slice %338 {offsets = [0, 0, 8], sizes = [2, 8, 8], strides = [1, 1, 1]} : vector<2x8x32xf32> to vector<2x8x8xf32>
    "tpu.trace_start"() <{level = 10 : i32, message = "nqd,nkd->nqk"}> : () -> ()
    %cst_128 = arith.constant dense<0.000000e+00> : vector<2x8x8xf32>
    %357 = tpu.matmul %354, %355, %cst_128 {dimension_numbers = #tpu.dot_dimension_numbers<[2], [2], [1], [1], [0, 0, 0, 1, 1, 1], [0], [0]>} : vector<2x8x8xf32>, vector<2x8x8xf32>, vector<2x8x8xf32> -> vector<2x8x8xf32>
    "tpu.trace_stop"() : () -> ()
    %cst_129 = arith.constant dense<0xFF800000> : vector<2x8xf32>
    %358 = vector.multi_reduction <maximumf>, %357, %cst_129 [2] : vector<2x8x8xf32> to vector<2x8xf32>
    %359 = vector.shape_cast %358 : vector<2x8xf32> to vector<2x8x1xf32>
    %360 = vector.broadcast %359 : vector<2x8x1xf32> to vector<2x8x8xf32>
    %361 = arith.subf %357, %360 : vector<2x8x8xf32>
    %362 = math.exp %361 : vector<2x8x8xf32>
    %cst_130 = arith.constant dense<0.000000e+00> : vector<2x8xf32>
    %363 = vector.multi_reduction <add>, %362, %cst_130 [2] : vector<2x8x8xf32> to vector<2x8xf32>
    %364 = vector.shape_cast %363 : vector<2x8xf32> to vector<2x8x1xf32>
    %365 = tpu.reciprocal %364 {approx = true} : vector<2x8x1xf32> -> vector<2x8x1xf32>
    %366 = vector.broadcast %365 : vector<2x8x1xf32> to vector<2x8x8xf32>
    %367 = arith.mulf %362, %366 : vector<2x8x8xf32>
    "tpu.trace_start"() <{level = 10 : i32, message = "nqk,nkd->nqd"}> : () -> ()
    %cst_131 = arith.constant dense<0.000000e+00> : vector<2x8x8xf32>
    %368 = tpu.matmul %367, %356, %cst_131 {dimension_numbers = #tpu.dot_dimension_numbers<[2], [1], [1], [2], [0, 0, 0, 1, 1, 2], [0], [0]>} : vector<2x8x8xf32>, vector<2x8x8xf32>, vector<2x8x8xf32> -> vector<2x8x8xf32>
    "tpu.trace_stop"() : () -> ()
    %369 = vector.extract_strided_slice %336 {offsets = [0, 0, 16], sizes = [2, 8, 8], strides = [1, 1, 1]} : vector<2x8x32xf32> to vector<2x8x8xf32>
    %370 = vector.extract_strided_slice %337 {offsets = [0, 0, 16], sizes = [2, 8, 8], strides = [1, 1, 1]} : vector<2x8x32xf32> to vector<2x8x8xf32>
    %371 = vector.extract_strided_slice %338 {offsets = [0, 0, 16], sizes = [2, 8, 8], strides = [1, 1, 1]} : vector<2x8x32xf32> to vector<2x8x8xf32>
    "tpu.trace_start"() <{level = 10 : i32, message = "nqd,nkd->nqk"}> : () -> ()
    %cst_132 = arith.constant dense<0.000000e+00> : vector<2x8x8xf32>
    %372 = tpu.matmul %369, %370, %cst_132 {dimension_numbers = #tpu.dot_dimension_numbers<[2], [2], [1], [1], [0, 0, 0, 1, 1, 1], [0], [0]>} : vector<2x8x8xf32>, vector<2x8x8xf32>, vector<2x8x8xf32> -> vector<2x8x8xf32>
    "tpu.trace_stop"() : () -> ()
    %cst_133 = arith.constant dense<0xFF800000> : vector<2x8xf32>
    %373 = vector.multi_reduction <maximumf>, %372, %cst_133 [2] : vector<2x8x8xf32> to vector<2x8xf32>
    %374 = vector.shape_cast %373 : vector<2x8xf32> to vector<2x8x1xf32>
    %375 = vector.broadcast %374 : vector<2x8x1xf32> to vector<2x8x8xf32>
    %376 = arith.subf %372, %375 : vector<2x8x8xf32>
    %377 = math.exp %376 : vector<2x8x8xf32>
    %cst_134 = arith.constant dense<0.000000e+00> : vector<2x8xf32>
    %378 = vector.multi_reduction <add>, %377, %cst_134 [2] : vector<2x8x8xf32> to vector<2x8xf32>
    %379 = vector.shape_cast %378 : vector<2x8xf32> to vector<2x8x1xf32>
    %380 = tpu.reciprocal %379 {approx = true} : vector<2x8x1xf32> -> vector<2x8x1xf32>
    %381 = vector.broadcast %380 : vector<2x8x1xf32> to vector<2x8x8xf32>
    %382 = arith.mulf %377, %381 : vector<2x8x8xf32>
    "tpu.trace_start"() <{level = 10 : i32, message = "nqk,nkd->nqd"}> : () -> ()
    %cst_135 = arith.constant dense<0.000000e+00> : vector<2x8x8xf32>
    %383 = tpu.matmul %382, %371, %cst_135 {dimension_numbers = #tpu.dot_dimension_numbers<[2], [1], [1], [2], [0, 0, 0, 1, 1, 2], [0], [0]>} : vector<2x8x8xf32>, vector<2x8x8xf32>, vector<2x8x8xf32> -> vector<2x8x8xf32>
    "tpu.trace_stop"() : () -> ()
    %384 = vector.extract_strided_slice %336 {offsets = [0, 0, 24], sizes = [2, 8, 8], strides = [1, 1, 1]} : vector<2x8x32xf32> to vector<2x8x8xf32>
    %385 = vector.extract_strided_slice %337 {offsets = [0, 0, 24], sizes = [2, 8, 8], strides = [1, 1, 1]} : vector<2x8x32xf32> to vector<2x8x8xf32>
    %386 = vector.extract_strided_slice %338 {offsets = [0, 0, 24], sizes = [2, 8, 8], strides = [1, 1, 1]} : vector<2x8x32xf32> to vector<2x8x8xf32>
    "tpu.trace_start"() <{level = 10 : i32, message = "nqd,nkd->nqk"}> : () -> ()
    %cst_136 = arith.constant dense<0.000000e+00> : vector<2x8x8xf32>
    %387 = tpu.matmul %384, %385, %cst_136 {dimension_numbers = #tpu.dot_dimension_numbers<[2], [2], [1], [1], [0, 0, 0, 1, 1, 1], [0], [0]>} : vector<2x8x8xf32>, vector<2x8x8xf32>, vector<2x8x8xf32> -> vector<2x8x8xf32>
    "tpu.trace_stop"() : () -> ()
    %cst_137 = arith.constant dense<0xFF800000> : vector<2x8xf32>
    %388 = vector.multi_reduction <maximumf>, %387, %cst_137 [2] : vector<2x8x8xf32> to vector<2x8xf32>
    %389 = vector.shape_cast %388 : vector<2x8xf32> to vector<2x8x1xf32>
    %390 = vector.broadcast %389 : vector<2x8x1xf32> to vector<2x8x8xf32>
    %391 = arith.subf %387, %390 : vector<2x8x8xf32>
    %392 = math.exp %391 : vector<2x8x8xf32>
    %cst_138 = arith.constant dense<0.000000e+00> : vector<2x8xf32>
    %393 = vector.multi_reduction <add>, %392, %cst_138 [2] : vector<2x8x8xf32> to vector<2x8xf32>
    %394 = vector.shape_cast %393 : vector<2x8xf32> to vector<2x8x1xf32>
    %395 = tpu.reciprocal %394 {approx = true} : vector<2x8x1xf32> -> vector<2x8x1xf32>
    %396 = vector.broadcast %395 : vector<2x8x1xf32> to vector<2x8x8xf32>
    %397 = arith.mulf %392, %396 : vector<2x8x8xf32>
    "tpu.trace_start"() <{level = 10 : i32, message = "nqk,nkd->nqd"}> : () -> ()
    %cst_139 = arith.constant dense<0.000000e+00> : vector<2x8x8xf32>
    %398 = tpu.matmul %397, %386, %cst_139 {dimension_numbers = #tpu.dot_dimension_numbers<[2], [1], [1], [2], [0, 0, 0, 1, 1, 2], [0], [0]>} : vector<2x8x8xf32>, vector<2x8x8xf32>, vector<2x8x8xf32> -> vector<2x8x8xf32>
    "tpu.trace_stop"() : () -> ()
    %399 = tpu.concatenate %353, %368, %383, %398 in 2 : vector<2x8x8xf32>, vector<2x8x8xf32>, vector<2x8x8xf32>, vector<2x8x8xf32> -> vector<2x8x32xf32>
    %400 = vector.shape_cast %399 : vector<2x8x32xf32> to vector<16x32xf32>
    %cst_140 = arith.constant dense<0.000000e+00> : vector<16x32xf32>
    %401 = tpu.matmul %400, %326, %cst_140 {dimension_numbers = #tpu.dot_dimension_numbers<[1], [1], [0], [0], [0, 0, 1, 0], [], []>} : vector<16x32xf32>, vector<32x32xf32>, vector<16x32xf32> -> vector<16x32xf32>
    %402 = vector.broadcast %328 : vector<1x32xf32> to vector<16x32xf32>
    %403 = arith.addf %401, %402 : vector<16x32xf32>
    %cst_141 = arith.constant dense<0.000000e+00> : vector<16xf32>
    %404 = vector.multi_reduction <add>, %403, %cst_141 [1] : vector<16x32xf32> to vector<16xf32>
    %405 = vector.shape_cast %404 : vector<16xf32> to vector<16x1xf32>
    %cst_142 = arith.constant 3.200000e+01 : f32
    %406 = vector.broadcast %cst_142 : f32 to vector<16x1xf32>
    %407 = arith.divf %405, %406 : vector<16x1xf32>
    %408 = vector.broadcast %407 : vector<16x1xf32> to vector<16x32xf32>
    %409 = arith.subf %403, %408 : vector<16x32xf32>
    %410 = arith.mulf %409, %409 : vector<16x32xf32>
    %cst_143 = arith.constant dense<0.000000e+00> : vector<16xf32>
    %411 = vector.multi_reduction <add>, %410, %cst_143 [1] : vector<16x32xf32> to vector<16xf32>
    %412 = vector.shape_cast %411 : vector<16xf32> to vector<16x1xf32>
    %cst_144 = arith.constant 3.200000e+01 : f32
    %413 = vector.broadcast %cst_144 : f32 to vector<16x1xf32>
    %414 = arith.divf %412, %413 : vector<16x1xf32>
    %415 = vector.broadcast %407 : vector<16x1xf32> to vector<16x32xf32>
    %416 = arith.subf %403, %415 : vector<16x32xf32>
    %cst_145 = arith.constant 9.99999974E-6 : f32
    %417 = vector.broadcast %cst_145 : f32 to vector<16x1xf32>
    %418 = arith.addf %414, %417 : vector<16x1xf32>
    %419 = math.rsqrt %418 : vector<16x1xf32>
    %420 = vector.broadcast %419 : vector<16x1xf32> to vector<16x32xf32>
    %421 = arith.mulf %416, %420 : vector<16x32xf32>
    %422 = vector.broadcast %0 : vector<1x32xf32> to vector<16x32xf32>
    %423 = arith.mulf %421, %422 : vector<16x32xf32>
    %424 = vector.broadcast %1 : vector<1x32xf32> to vector<16x32xf32>
    %425 = arith.addf %423, %424 : vector<16x32xf32>
    %426 = vector.shape_cast %425 : vector<16x32xf32> to vector<2x8x32xf32>
    %c4 = arith.constant 4 : index
    %c0_146 = arith.constant 0 : index
    %c0_147 = arith.constant 0 : index
    %427 = vector.load %arg1[%c4, %c0_146, %c0_147] : memref<5x96x32xf32, #tpu.memory_space<vmem>>, vector<1x96x32xf32>
    %428 = vector.shape_cast %427 : vector<1x96x32xf32> to vector<96x32xf32>
    %c4_148 = arith.constant 4 : index
    %c0_149 = arith.constant 0 : index
    %c0_150 = arith.constant 0 : index
    %429 = vector.load %arg2[%c4_148, %c0_149, %c0_150] : memref<5x1x96xf32, #tpu.memory_space<vmem>>, vector<1x1x96xf32>
    %430 = vector.shape_cast %429 : vector<1x1x96xf32> to vector<1x96xf32>
    %c4_151 = arith.constant 4 : index
    %c0_152 = arith.constant 0 : index
    %c0_153 = arith.constant 0 : index
    %431 = vector.load %arg3[%c4_151, %c0_152, %c0_153] : memref<5x32x32xf32, #tpu.memory_space<vmem>>, vector<1x32x32xf32>
    %432 = vector.shape_cast %431 : vector<1x32x32xf32> to vector<32x32xf32>
    %c4_154 = arith.constant 4 : index
    %c0_155 = arith.constant 0 : index
    %c0_156 = arith.constant 0 : index
    %433 = vector.load %arg4[%c4_154, %c0_155, %c0_156] : memref<5x1x32xf32, #tpu.memory_space<vmem>>, vector<1x1x32xf32>
    %434 = vector.shape_cast %433 : vector<1x1x32xf32> to vector<1x32xf32>
    %435 = vector.shape_cast %426 : vector<2x8x32xf32> to vector<16x32xf32>
    %cst_157 = arith.constant dense<0.000000e+00> : vector<16x96xf32>
    %436 = tpu.matmul %435, %428, %cst_157 {dimension_numbers = #tpu.dot_dimension_numbers<[1], [1], [0], [0], [0, 0, 1, 0], [], []>} : vector<16x32xf32>, vector<96x32xf32>, vector<16x96xf32> -> vector<16x96xf32>
    %437 = vector.broadcast %430 : vector<1x96xf32> to vector<16x96xf32>
    %438 = arith.addf %436, %437 : vector<16x96xf32>
    %439 = vector.shape_cast %438 : vector<16x96xf32> to vector<2x8x96xf32>
    %440 = vector.extract_strided_slice %439 {offsets = [0, 0, 0], sizes = [2, 8, 32], strides = [1, 1, 1]} : vector<2x8x96xf32> to vector<2x8x32xf32>
    %cst_158 = arith.constant 0.353553385 : f32
    %441 = vector.broadcast %cst_158 : f32 to vector<2x8x32xf32>
    %442 = arith.mulf %440, %441 : vector<2x8x32xf32>
    %443 = vector.extract_strided_slice %439 {offsets = [0, 0, 32], sizes = [2, 8, 32], strides = [1, 1, 1]} : vector<2x8x96xf32> to vector<2x8x32xf32>
    %444 = vector.extract_strided_slice %439 {offsets = [0, 0, 64], sizes = [2, 8, 32], strides = [1, 1, 1]} : vector<2x8x96xf32> to vector<2x8x32xf32>
    %445 = vector.extract_strided_slice %442 {offsets = [0, 0, 0], sizes = [2, 8, 8], strides = [1, 1, 1]} : vector<2x8x32xf32> to vector<2x8x8xf32>
    %446 = vector.extract_strided_slice %443 {offsets = [0, 0, 0], sizes = [2, 8, 8], strides = [1, 1, 1]} : vector<2x8x32xf32> to vector<2x8x8xf32>
    %447 = vector.extract_strided_slice %444 {offsets = [0, 0, 0], sizes = [2, 8, 8], strides = [1, 1, 1]} : vector<2x8x32xf32> to vector<2x8x8xf32>
    "tpu.trace_start"() <{level = 10 : i32, message = "nqd,nkd->nqk"}> : () -> ()
    %cst_159 = arith.constant dense<0.000000e+00> : vector<2x8x8xf32>
    %448 = tpu.matmul %445, %446, %cst_159 {dimension_numbers = #tpu.dot_dimension_numbers<[2], [2], [1], [1], [0, 0, 0, 1, 1, 1], [0], [0]>} : vector<2x8x8xf32>, vector<2x8x8xf32>, vector<2x8x8xf32> -> vector<2x8x8xf32>
    "tpu.trace_stop"() : () -> ()
    %cst_160 = arith.constant dense<0xFF800000> : vector<2x8xf32>
    %449 = vector.multi_reduction <maximumf>, %448, %cst_160 [2] : vector<2x8x8xf32> to vector<2x8xf32>
    %450 = vector.shape_cast %449 : vector<2x8xf32> to vector<2x8x1xf32>
    %451 = vector.broadcast %450 : vector<2x8x1xf32> to vector<2x8x8xf32>
    %452 = arith.subf %448, %451 : vector<2x8x8xf32>
    %453 = math.exp %452 : vector<2x8x8xf32>
    %cst_161 = arith.constant dense<0.000000e+00> : vector<2x8xf32>
    %454 = vector.multi_reduction <add>, %453, %cst_161 [2] : vector<2x8x8xf32> to vector<2x8xf32>
    %455 = vector.shape_cast %454 : vector<2x8xf32> to vector<2x8x1xf32>
    %456 = tpu.reciprocal %455 {approx = true} : vector<2x8x1xf32> -> vector<2x8x1xf32>
    %457 = vector.broadcast %456 : vector<2x8x1xf32> to vector<2x8x8xf32>
    %458 = arith.mulf %453, %457 : vector<2x8x8xf32>
    "tpu.trace_start"() <{level = 10 : i32, message = "nqk,nkd->nqd"}> : () -> ()
    %cst_162 = arith.constant dense<0.000000e+00> : vector<2x8x8xf32>
    %459 = tpu.matmul %458, %447, %cst_162 {dimension_numbers = #tpu.dot_dimension_numbers<[2], [1], [1], [2], [0, 0, 0, 1, 1, 2], [0], [0]>} : vector<2x8x8xf32>, vector<2x8x8xf32>, vector<2x8x8xf32> -> vector<2x8x8xf32>
    "tpu.trace_stop"() : () -> ()
    %460 = vector.extract_strided_slice %442 {offsets = [0, 0, 8], sizes = [2, 8, 8], strides = [1, 1, 1]} : vector<2x8x32xf32> to vector<2x8x8xf32>
    %461 = vector.extract_strided_slice %443 {offsets = [0, 0, 8], sizes = [2, 8, 8], strides = [1, 1, 1]} : vector<2x8x32xf32> to vector<2x8x8xf32>
    %462 = vector.extract_strided_slice %444 {offsets = [0, 0, 8], sizes = [2, 8, 8], strides = [1, 1, 1]} : vector<2x8x32xf32> to vector<2x8x8xf32>
    "tpu.trace_start"() <{level = 10 : i32, message = "nqd,nkd->nqk"}> : () -> ()
    %cst_163 = arith.constant dense<0.000000e+00> : vector<2x8x8xf32>
    %463 = tpu.matmul %460, %461, %cst_163 {dimension_numbers = #tpu.dot_dimension_numbers<[2], [2], [1], [1], [0, 0, 0, 1, 1, 1], [0], [0]>} : vector<2x8x8xf32>, vector<2x8x8xf32>, vector<2x8x8xf32> -> vector<2x8x8xf32>
    "tpu.trace_stop"() : () -> ()
    %cst_164 = arith.constant dense<0xFF800000> : vector<2x8xf32>
    %464 = vector.multi_reduction <maximumf>, %463, %cst_164 [2] : vector<2x8x8xf32> to vector<2x8xf32>
    %465 = vector.shape_cast %464 : vector<2x8xf32> to vector<2x8x1xf32>
    %466 = vector.broadcast %465 : vector<2x8x1xf32> to vector<2x8x8xf32>
    %467 = arith.subf %463, %466 : vector<2x8x8xf32>
    %468 = math.exp %467 : vector<2x8x8xf32>
    %cst_165 = arith.constant dense<0.000000e+00> : vector<2x8xf32>
    %469 = vector.multi_reduction <add>, %468, %cst_165 [2] : vector<2x8x8xf32> to vector<2x8xf32>
    %470 = vector.shape_cast %469 : vector<2x8xf32> to vector<2x8x1xf32>
    %471 = tpu.reciprocal %470 {approx = true} : vector<2x8x1xf32> -> vector<2x8x1xf32>
    %472 = vector.broadcast %471 : vector<2x8x1xf32> to vector<2x8x8xf32>
    %473 = arith.mulf %468, %472 : vector<2x8x8xf32>
    "tpu.trace_start"() <{level = 10 : i32, message = "nqk,nkd->nqd"}> : () -> ()
    %cst_166 = arith.constant dense<0.000000e+00> : vector<2x8x8xf32>
    %474 = tpu.matmul %473, %462, %cst_166 {dimension_numbers = #tpu.dot_dimension_numbers<[2], [1], [1], [2], [0, 0, 0, 1, 1, 2], [0], [0]>} : vector<2x8x8xf32>, vector<2x8x8xf32>, vector<2x8x8xf32> -> vector<2x8x8xf32>
    "tpu.trace_stop"() : () -> ()
    %475 = vector.extract_strided_slice %442 {offsets = [0, 0, 16], sizes = [2, 8, 8], strides = [1, 1, 1]} : vector<2x8x32xf32> to vector<2x8x8xf32>
    %476 = vector.extract_strided_slice %443 {offsets = [0, 0, 16], sizes = [2, 8, 8], strides = [1, 1, 1]} : vector<2x8x32xf32> to vector<2x8x8xf32>
    %477 = vector.extract_strided_slice %444 {offsets = [0, 0, 16], sizes = [2, 8, 8], strides = [1, 1, 1]} : vector<2x8x32xf32> to vector<2x8x8xf32>
    "tpu.trace_start"() <{level = 10 : i32, message = "nqd,nkd->nqk"}> : () -> ()
    %cst_167 = arith.constant dense<0.000000e+00> : vector<2x8x8xf32>
    %478 = tpu.matmul %475, %476, %cst_167 {dimension_numbers = #tpu.dot_dimension_numbers<[2], [2], [1], [1], [0, 0, 0, 1, 1, 1], [0], [0]>} : vector<2x8x8xf32>, vector<2x8x8xf32>, vector<2x8x8xf32> -> vector<2x8x8xf32>
    "tpu.trace_stop"() : () -> ()
    %cst_168 = arith.constant dense<0xFF800000> : vector<2x8xf32>
    %479 = vector.multi_reduction <maximumf>, %478, %cst_168 [2] : vector<2x8x8xf32> to vector<2x8xf32>
    %480 = vector.shape_cast %479 : vector<2x8xf32> to vector<2x8x1xf32>
    %481 = vector.broadcast %480 : vector<2x8x1xf32> to vector<2x8x8xf32>
    %482 = arith.subf %478, %481 : vector<2x8x8xf32>
    %483 = math.exp %482 : vector<2x8x8xf32>
    %cst_169 = arith.constant dense<0.000000e+00> : vector<2x8xf32>
    %484 = vector.multi_reduction <add>, %483, %cst_169 [2] : vector<2x8x8xf32> to vector<2x8xf32>
    %485 = vector.shape_cast %484 : vector<2x8xf32> to vector<2x8x1xf32>
    %486 = tpu.reciprocal %485 {approx = true} : vector<2x8x1xf32> -> vector<2x8x1xf32>
    %487 = vector.broadcast %486 : vector<2x8x1xf32> to vector<2x8x8xf32>
    %488 = arith.mulf %483, %487 : vector<2x8x8xf32>
    "tpu.trace_start"() <{level = 10 : i32, message = "nqk,nkd->nqd"}> : () -> ()
    %cst_170 = arith.constant dense<0.000000e+00> : vector<2x8x8xf32>
    %489 = tpu.matmul %488, %477, %cst_170 {dimension_numbers = #tpu.dot_dimension_numbers<[2], [1], [1], [2], [0, 0, 0, 1, 1, 2], [0], [0]>} : vector<2x8x8xf32>, vector<2x8x8xf32>, vector<2x8x8xf32> -> vector<2x8x8xf32>
    "tpu.trace_stop"() : () -> ()
    %490 = vector.extract_strided_slice %442 {offsets = [0, 0, 24], sizes = [2, 8, 8], strides = [1, 1, 1]} : vector<2x8x32xf32> to vector<2x8x8xf32>
    %491 = vector.extract_strided_slice %443 {offsets = [0, 0, 24], sizes = [2, 8, 8], strides = [1, 1, 1]} : vector<2x8x32xf32> to vector<2x8x8xf32>
    %492 = vector.extract_strided_slice %444 {offsets = [0, 0, 24], sizes = [2, 8, 8], strides = [1, 1, 1]} : vector<2x8x32xf32> to vector<2x8x8xf32>
    "tpu.trace_start"() <{level = 10 : i32, message = "nqd,nkd->nqk"}> : () -> ()
    %cst_171 = arith.constant dense<0.000000e+00> : vector<2x8x8xf32>
    %493 = tpu.matmul %490, %491, %cst_171 {dimension_numbers = #tpu.dot_dimension_numbers<[2], [2], [1], [1], [0, 0, 0, 1, 1, 1], [0], [0]>} : vector<2x8x8xf32>, vector<2x8x8xf32>, vector<2x8x8xf32> -> vector<2x8x8xf32>
    "tpu.trace_stop"() : () -> ()
    %cst_172 = arith.constant dense<0xFF800000> : vector<2x8xf32>
    %494 = vector.multi_reduction <maximumf>, %493, %cst_172 [2] : vector<2x8x8xf32> to vector<2x8xf32>
    %495 = vector.shape_cast %494 : vector<2x8xf32> to vector<2x8x1xf32>
    %496 = vector.broadcast %495 : vector<2x8x1xf32> to vector<2x8x8xf32>
    %497 = arith.subf %493, %496 : vector<2x8x8xf32>
    %498 = math.exp %497 : vector<2x8x8xf32>
    %cst_173 = arith.constant dense<0.000000e+00> : vector<2x8xf32>
    %499 = vector.multi_reduction <add>, %498, %cst_173 [2] : vector<2x8x8xf32> to vector<2x8xf32>
    %500 = vector.shape_cast %499 : vector<2x8xf32> to vector<2x8x1xf32>
    %501 = tpu.reciprocal %500 {approx = true} : vector<2x8x1xf32> -> vector<2x8x1xf32>
    %502 = vector.broadcast %501 : vector<2x8x1xf32> to vector<2x8x8xf32>
    %503 = arith.mulf %498, %502 : vector<2x8x8xf32>
    "tpu.trace_start"() <{level = 10 : i32, message = "nqk,nkd->nqd"}> : () -> ()
    %cst_174 = arith.constant dense<0.000000e+00> : vector<2x8x8xf32>
    %504 = tpu.matmul %503, %492, %cst_174 {dimension_numbers = #tpu.dot_dimension_numbers<[2], [1], [1], [2], [0, 0, 0, 1, 1, 2], [0], [0]>} : vector<2x8x8xf32>, vector<2x8x8xf32>, vector<2x8x8xf32> -> vector<2x8x8xf32>
    "tpu.trace_stop"() : () -> ()
    %505 = tpu.concatenate %459, %474, %489, %504 in 2 : vector<2x8x8xf32>, vector<2x8x8xf32>, vector<2x8x8xf32>, vector<2x8x8xf32> -> vector<2x8x32xf32>
    %506 = vector.shape_cast %505 : vector<2x8x32xf32> to vector<16x32xf32>
    %cst_175 = arith.constant dense<0.000000e+00> : vector<16x32xf32>
    %507 = tpu.matmul %506, %432, %cst_175 {dimension_numbers = #tpu.dot_dimension_numbers<[1], [1], [0], [0], [0, 0, 1, 0], [], []>} : vector<16x32xf32>, vector<32x32xf32>, vector<16x32xf32> -> vector<16x32xf32>
    %508 = vector.broadcast %434 : vector<1x32xf32> to vector<16x32xf32>
    %509 = arith.addf %507, %508 : vector<16x32xf32>
    %cst_176 = arith.constant dense<0.000000e+00> : vector<16xf32>
    %510 = vector.multi_reduction <add>, %509, %cst_176 [1] : vector<16x32xf32> to vector<16xf32>
    %511 = vector.shape_cast %510 : vector<16xf32> to vector<16x1xf32>
    %cst_177 = arith.constant 3.200000e+01 : f32
    %512 = vector.broadcast %cst_177 : f32 to vector<16x1xf32>
    %513 = arith.divf %511, %512 : vector<16x1xf32>
    %514 = vector.broadcast %513 : vector<16x1xf32> to vector<16x32xf32>
    %515 = arith.subf %509, %514 : vector<16x32xf32>
    %516 = arith.mulf %515, %515 : vector<16x32xf32>
    %cst_178 = arith.constant dense<0.000000e+00> : vector<16xf32>
    %517 = vector.multi_reduction <add>, %516, %cst_178 [1] : vector<16x32xf32> to vector<16xf32>
    %518 = vector.shape_cast %517 : vector<16xf32> to vector<16x1xf32>
    %cst_179 = arith.constant 3.200000e+01 : f32
    %519 = vector.broadcast %cst_179 : f32 to vector<16x1xf32>
    %520 = arith.divf %518, %519 : vector<16x1xf32>
    %521 = vector.broadcast %513 : vector<16x1xf32> to vector<16x32xf32>
    %522 = arith.subf %509, %521 : vector<16x32xf32>
    %cst_180 = arith.constant 9.99999974E-6 : f32
    %523 = vector.broadcast %cst_180 : f32 to vector<16x1xf32>
    %524 = arith.addf %520, %523 : vector<16x1xf32>
    %525 = math.rsqrt %524 : vector<16x1xf32>
    %526 = vector.broadcast %525 : vector<16x1xf32> to vector<16x32xf32>
    %527 = arith.mulf %522, %526 : vector<16x32xf32>
    %528 = vector.broadcast %0 : vector<1x32xf32> to vector<16x32xf32>
    %529 = arith.mulf %527, %528 : vector<16x32xf32>
    %530 = vector.broadcast %1 : vector<1x32xf32> to vector<16x32xf32>
    %531 = arith.addf %529, %530 : vector<16x32xf32>
    %532 = vector.shape_cast %531 : vector<16x32xf32> to vector<2x8x32xf32>
    %c0_181 = arith.constant 0 : index
    %c0_182 = arith.constant 0 : index
    %c0_183 = arith.constant 0 : index
    %533 = vector.load %arg7[%c0_181, %c0_182, %c0_183] : memref<2x8x32xf32, #tpu.memory_space<vmem>>, vector<2x8x32xf32>
    tpu.vector_store %arg7[%c0_181, %c0_182, %c0_183], %532 {strides = array<i32>} : memref<2x8x32xf32, #tpu.memory_space<vmem>>, vector<2x8x32xf32>,
    return
  }
}

</mosaic_0001>

<bundles_post_ra>
// kernel: tune_encoder_time_forward.1
= control target key start
LH: loop header
LB: loop body
LE: loop exit
PB: predicated region body
PF: predicated region fallthrough
CT: control target
= control target key end

     0   :  { %vm54_vm0 = vcmask 261120   ;;  %v9773_v21 = vmov 0.0   ;;  %vm9774_vm2 = vmmov 0   ;;  %s9775_s8 = smov 96   ;;  %vm177_vm3 = vcmask 64512   ;;  %s9777_s9 = smov 88   ;;  %s11177_s1 = inlined_call_operand.vmem [shape: f32[5,96,32], index: 1, kind: input, shape index: {}]   ;;  %s11178_s0 = inlined_call_operand.vmem [shape: f32[2,8,32], index: 0, kind: input, shape index: {}]   ;;  %s11179_s2 = inlined_call_operand.vmem [shape: f32[5,1,96], index: 2, kind: input, shape index: {}]   ;;  %s11180_s3 = inlined_call_operand.vmem [shape: f32[5,32,32], index: 3, kind: input, shape index: {}]   ;;  %s11181_s4 = inlined_call_operand.vmem [shape: f32[5,1,32], index: 4, kind: input, shape index: {}]   ;;  %s11182_s5 = inlined_call_operand.vmem [shape: f32[1,32], index: 5, kind: input, shape index: {}]   ;;  %s11183_s6 = inlined_call_operand.vmem [shape: f32[1,32], index: 6, kind: input, shape index: {}]   ;;  %s11184_s7 = inlined_call_operand.vmem [shape: f32[2,8,32], index: 7, kind: output, shape index: {}]  }
   0x1   :  { %v30_v0 = vld [vmem:[%s11177_s1] sm:$0xff]  ;;  %v31_v1 = vld [vmem:[%s11177_s1 + $0x8] sm:$0xff]  ;;  %vm9837_vm1 = vmpackc.low %vm54_vm0, %vm54_vm0  ;;  %8770 = vmatprep.subr.mxu1 %v9773_v21  ;;  %8772 = vmatprep.mubr.msk.f32.mxu1 %vm9774_vm2, %v9773_v21  ;;  %s9778_s10 = smov 120   ;;  %s9779_s11 = smov 56   ;;  %vm1524_vm4 = vcmask 195584   ;;  %vm1521_vm5 = vcmask 130048  }
   0x2   :  { %v9333_v3 = vpack.c.bf16 %v31_v1, %v30_v0  ;;  %v32_v4 = vld [vmem:[%s11177_s1 + $0x10] sm:$0xff]  ;;  %v33_v5 = vld [vmem:[%s11177_s1 + $0x18] sm:$0xff]  ;;  %v28_v7 = vld [vmem:[%s11178_s0] sm:$0xff]  ;;  %s9780_s12 = smov 80   ;;  %s9781_s13 = smov 112  }
   0x3   :  { %v9339_v6 = vpack.c.bf16 %v33_v5, %v32_v4  ;;  %8767 = vmatprep.mubr.msk.f32.mxu0 %vm54_vm0, %v28_v7  ;;  %v34_v8 = vld [vmem:[%s11177_s1 + $0x20] sm:$0xff]  ;;  %v35_v9 = vld [vmem:[%s11177_s1 + $0x28] sm:$0xff]  ;;  %v36_v11 = vld [vmem:[%s11177_s1 + $0x30] sm:$0xff]  ;;  %s9782_s14 = smov 48   ;;  %s9783_s15 = smov 72  }
   0x4   :  { %9335 = vmatprep.subr.msk.bf16.mxu0 %vm9837_vm1, %v9333_v3  ;;  %v9345_v10 = vpack.c.bf16 %v35_v9, %v34_v8  ;;  %v37_v12 = vld [vmem:[%s11177_s1 + $0x38] sm:$0xff]  ;;  %v38_v14 = vld [vmem:[%s11177_s1 + $0x40] sm:$0xff]  ;;  %v39_v15 = vld [vmem:[%s11177_s1 + $0x48] sm:$0xff]  ;;  %s9784_s16 = smov 104   ;;  %s9785_s17 = smov 40  }
   0x5   :  { %9338 = vmatpush3.bf16.xpose.msk.msra.mxu0 %vm9837_vm1, %v9333_v3  ;;  %v9351_v13 = vpack.c.bf16 %v37_v12, %v36_v11  ;;  %v9357_v16 = vpack.c.bf16 %v39_v15, %v38_v14  ;;  %v40_v17 = vld [vmem:[%s11177_s1 + $0x50] sm:$0xff]  ;;  %v41_v18 = vld [vmem:[%s11177_s1 + $0x58] sm:$0xff]  ;;  %v29_v20 = vld [vmem:[%s11178_s0 + $0x8] sm:$0xff]  ;;  %s9776_s0 = smov 64   ;;  %s9786_s18 = smov 8  }
   0x6   :  { %9341 = vmatprep.subr.msk.bf16.mxu0 %vm9837_vm1, %v9339_v6  ;;  %v9363_v19 = vpack.c.bf16 %v41_v18, %v40_v17  ;;  %v8179_v22 = vld [vmem:[%s11179_s2] ss:$0 sm:$0xff]  ;;  %s9787_s19 = smov 16   ;;  %s9788_s28 = smov 24  }
   0xd   :  { %9344 = vmatpush3.bf16.xpose.msk.msra.mxu0 %vm9837_vm1, %v9339_v6 }
   0xe   :  { %9347 = vmatprep.subr.msk.bf16.mxu0 %vm9837_vm1, %v9345_v10 }
  0x15   :  { %9350 = vmatpush3.bf16.xpose.msk.msra.mxu0 %vm9837_vm1, %v9345_v10 }
  0x16   :  { %9353 = vmatprep.subr.msk.bf16.mxu0 %vm9837_vm1, %v9351_v13 }
  0x1d   :  { %9356 = vmatpush3.bf16.xpose.msk.msra.mxu0 %vm9837_vm1, %v9351_v13 }
  0x1e   :  { %9359 = vmatprep.subr.msk.bf16.mxu0 %vm9837_vm1, %v9357_v16 }
  0x25   :  { %9362 = vmatpush3.bf16.xpose.msk.msra.mxu0 %vm9837_vm1, %v9357_v16 }
  0x26   :  { %9365 = vmatprep.subr.msk.bf16.mxu0 %vm9837_vm1, %v9363_v19 }
  0x2d   :  { %9368 = vmatpush3.bf16.xpose.msk.msra.mxu0 %vm9837_vm1, %v9363_v19 }
  0x34   :  { %8768 = vmatmul.mubr.msk.f32.vlgmr.msra.gmra.mrb[0].mxu0 %vm54_vm0, %v29_v20 }
 0x107   :  { %v8769_v23 = vpop.f32.mrb[0].mxu0 }
 0x108   :  { %v163_v24 = vpop.f32.mrb[1].mxu0  ;;  %v9913_v26 = vadd.f32 %v8769_v23, %v8179_v22 }
 0x109   :  { %v9909_v25 = vadd.f32 %v8179_v22, %v163_v24 }
 0x10a   :  { %v9928_v30 = vmul.f32 0.35355338, %v9913_v26 }
 0x10b   :  { %175 = vrot.lane.b32.xlu0 %v9909_v25, %s9775_s8  ;;  %v9920_v28 = vmul.f32 0.35355338, %v9909_v25 }
 0x10f   :  { %254 = vrot.lane.b32.xlu0 %v9913_v26, %s9775_s8 }
 0x17d   :  { %v176_v27 = vpop.permute.xlu0 %175 }
 0x17e   :  { %8771 = vmatpush3.xpose.msk.msra.mxu1 %vm177_vm3, %v176_v27 }
 0x17f   :  { %8775 = vmatprep.subr.mxu1 %v9773_v21 }
 0x181   :  { %v255_v29 = vpop.permute.xlu0 %254  ;;  %8773 = vmatmul.mubr.msk.f32.vlgmr.msra.gmra.mrb[0].mxu1 %vm177_vm3, %v9920_v28 }
 0x182   :  { %8776 = vmatpush3.xpose.msk.msra.mxu1 %vm177_vm3, %v255_v29  ;;  %8777 = vmatprep.mubr.msk.f32.mxu1 %vm9774_vm2, %v9773_v21 }
 0x183   :  { %8780 = vmatprep.subr.mxu1 %v9773_v21 }
 0x185   :  { %8778 = vmatmul.mubr.msk.f32.vlgmr.msra.gmra.mrb[2].mxu1 %vm177_vm3, %v9928_v30 }
 0x186   :  { %8782 = vmatprep.mubr.msk.f32.mxu1 %vm9774_vm2, %v9773_v21 }
 0x254   :  { %v249_v31 = vpop.f32.mrb[0].mxu1 }
 0x255   :  { %v8774_v32 = vpop.f32.mrb[1].mxu1  ;;  %v331_v33 = vsel %vm177_vm3, %v249_v31, -inf }
 0x256   :  { %332 = vmax.xlane.f32.xlu1 %v331_v33 }
 0x258   :  { %v327_v34 = vpop.f32.mrb[2].mxu1 }
 0x259   :  { %v8779_v35 = vpop.f32.mrb[3].mxu1  ;;  %v334_v36 = vsel %vm177_vm3, %v327_v34, -inf }
 0x25a   :  { %335 = vmax.xlane.f32.xlu1 %v334_v36 }
 0x26b   :  { %353 = vrot.lane.b32.xlu1 %v9909_v25, %s9776_s0 }
 0x26f   :  { %429 = vrot.lane.b32.xlu1 %v9913_v26, %s9776_s0 }
 0x273   :  { %507 = vrot.lane.b32.xlu1 %v9909_v25, %s9777_s9 }
 0x2e3   :  { %v333_v37 = vpop.xlane.xlu1 %332 }
 0x2e4   :  { %v337_v38 = vsub.f32 %v249_v31, %v333_v37 }
 0x2e6   :  { %v339_v39 = vmul.f32 1.442695, %v337_v38 }
 0x2e7   :  { %v336_v40 = vpop.xlane.xlu1 %335 }
 0x2e8   :  { %9589 = vpow2.f32 %v339_v39  ;;  %v338_v41 = vsub.f32 %v327_v34, %v336_v40 }
 0x2ea   :  { %v341_v42 = vmul.f32 1.442695, %v338_v41 }
 0x2eb   :  { %v354_v43 = vpop.permute.xlu1 %353 }
 0x2ec   :  { %9591 = vpow2.f32 %v341_v42  ;;  %8781 = vmatpush3.msra.mxu1 %v354_v43 }
 0x2ed   :  { %8785 = vmatprep.subr.mxu1 %v9773_v21 }
 0x2ef   :  { %v430_v48 = vpop.permute.xlu1 %429 }
 0x2f2   :  { %v9590_v44 = vpop.eup %9589 }
 0x2f3   :  { %v343_v45 = vsel %vm177_vm3, %v9590_v44, 0.0  ;;  %v508_v49 = vpop.permute.xlu1 %507 }
 0x2f4   :  { %344 = vadd.xlane.f32.xlu0 %v343_v45 }
 0x2f6   :  { %v9592_v46 = vpop.eup %9591 }
 0x2f7   :  { %v346_v47 = vsel %vm177_vm3, %v9592_v46, 0.0 }
 0x2f8   :  { %347 = vadd.xlane.f32.xlu1 %v346_v47 }
 0x309   :  { %505 = vrot.lane.b32.xlu1 %v9920_v28, %s9778_s10 }
 0x30a   :  { %585 = vrot.lane.b32.xlu0 %v9913_v26, %s9777_s9 }
 0x30d   :  { %583 = vrot.lane.b32.xlu1 %v9928_v30, %s9778_s10 }
 0x381   :  { %v345_v50 = vpop.xlane.xlu0 %344 }
 0x382   :  { %9593 = vrcp.f32 %v345_v50 }
 0x385   :  { %v348_v51 = vpop.xlane.xlu1 %347  ;;  %v586_v57 = vpop.permute.xlu0 %585 }
 0x386   :  { %9595 = vrcp.f32 %v348_v51 }
 0x389   :  { %v506_v56 = vpop.permute.xlu1 %505 }
 0x38c   :  { %v9594_v52 = vpop.eup %9593 }
 0x38d   :  { %v351_v53 = vmul.f32 %v9594_v52, %v9590_v44  ;;  %v584_v58 = vpop.permute.xlu1 %583 }
 0x38f   :  { %8783 = vmatmul.mubr.msk.f32.vlgmr.msra.gmra.mrb[4].mxu1 %vm177_vm3, %v351_v53 }
 0x390   :  { %v9596_v54 = vpop.eup %9595  ;;  %8786 = vmatpush3.msra.mxu1 %v430_v48  ;;  %8787 = vmatprep.mubr.msk.f32.mxu1 %vm9774_vm2, %v9773_v21 }
 0x391   :  { %v352_v55 = vmul.f32 %v9596_v54, %v9592_v46  ;;  %8790 = vmatprep.subr.mxu1 %v9773_v21 }
 0x393   :  { %8788 = vmatmul.mubr.msk.f32.vlgmr.msra.gmra.mrb[6].mxu1 %vm177_vm3, %v352_v55 }
 0x394   :  { %8792 = vmatprep.mubr.msk.f32.mxu1 %vm9774_vm2, %v9773_v21 }
 0x397   :  { %8791 = vmatpush3.xpose.msk.msra.mxu1 %vm177_vm3, %v508_v49 }
 0x398   :  { %8795 = vmatprep.subr.mxu1 %v9773_v21 }
 0x39a   :  { %8793 = vmatmul.mubr.msk.f32.vlgmr.msra.gmra.mrb[8].mxu1 %vm177_vm3, %v506_v56 }
 0x39b   :  { %8796 = vmatpush3.xpose.msk.msra.mxu1 %vm177_vm3, %v586_v57  ;;  %8797 = vmatprep.mubr.msk.f32.mxu1 %vm9774_vm2, %v9773_v21 }
 0x39c   :  { %8800 = vmatprep.subr.mxu1 %v9773_v21 }
 0x39e   :  { %8798 = vmatmul.mubr.msk.f32.vlgmr.msra.gmra.mrb[10].mxu1 %vm177_vm3, %v584_v58 }
 0x39f   :  { %8802 = vmatprep.mubr.msk.f32.mxu1 %vm9774_vm2, %v9773_v21 }
 0x462   :  { %v9969_v59 = vpop.f32.mrb[4].mxu1 }
 0x463   :  { %v8784_v60 = vpop.f32.mrb[5].mxu1 }
 0x466   :  { %v9971_v61 = vpop.f32.mrb[6].mxu1 }
 0x467   :  { %v8789_v62 = vpop.f32.mrb[7].mxu1 }
 0x46d   :  { %v579_v63 = vpop.f32.mrb[8].mxu1 }
 0x46e   :  { %v8794_v0 = vpop.f32.mrb[9].mxu1  ;;  %v661_v1 = vsel %vm177_vm3, %v579_v63, -inf }
 0x46f   :  { %662 = vmax.xlane.f32.xlu1 %v661_v1 }
 0x471   :  { %v657_v3 = vpop.f32.mrb[10].mxu1 }
 0x472   :  { %v8799_v4 = vpop.f32.mrb[11].mxu1  ;;  %v664_v5 = vsel %vm177_vm3, %v657_v3, -inf }
 0x473   :  { %665 = vmax.xlane.f32.xlu0 %v664_v5 }
 0x480   :  { %683 = vrot.lane.b32.xlu1 %v9909_v25, %s9779_s11 }
 0x484   :  { %837 = vrot.lane.b32.xlu1 %v9909_v25, %s9780_s12 }
 0x489   :  { %759 = vrot.lane.b32.xlu0 %v9913_v26, %s9779_s11 }
 0x48d   :  { %915 = vrot.lane.b32.xlu0 %v9913_v26, %s9780_s12 }
 0x4fc   :  { %v663_v6 = vpop.xlane.xlu1 %662 }
 0x4fd   :  { %v667_v7 = vsub.f32 %v579_v63, %v663_v6 }
 0x4ff   :  { %v669_v8 = vmul.f32 1.442695, %v667_v7 }
 0x500   :  { %v684_v9 = vpop.permute.xlu1 %683  ;;  %v666_v10 = vpop.xlane.xlu0 %665 }
 0x501   :  { %9597 = vpow2.f32 %v669_v8  ;;  %v668_v11 = vsub.f32 %v657_v3, %v666_v10  ;;  %8801 = vmatpush3.msra.mxu1 %v684_v9 }
 0x502   :  { %8805 = vmatprep.subr.mxu1 %v9773_v21 }
 0x503   :  { %v671_v12 = vmul.f32 1.442695, %v668_v11 }
 0x504   :  { %v838_v17 = vpop.permute.xlu1 %837  ;;  %v760_v23 = vpop.permute.xlu0 %759 }
 0x505   :  { %9599 = vpow2.f32 %v671_v12 }
 0x508   :  { %v916_v31 = vpop.permute.xlu0 %915 }
 0x50b   :  { %v9598_v13 = vpop.eup %9597 }
 0x50c   :  { %v673_v14 = vsel %vm177_vm3, %v9598_v13, 0.0 }
 0x50d   :  { %674 = vadd.xlane.f32.xlu1 %v673_v14 }
 0x50f   :  { %v9600_v15 = vpop.eup %9599 }
 0x510   :  { %v676_v16 = vsel %vm177_vm3, %v9600_v15, 0.0 }
 0x511   :  { %677 = vadd.xlane.f32.xlu1 %v676_v16 }
 0x522   :  { %835 = vrot.lane.b32.xlu1 %v9920_v28, %s9781_s13 }
 0x526   :  { %913 = vrot.lane.b32.xlu1 %v9928_v30, %s9781_s13 }
 0x59a   :  { %v675_v18 = vpop.xlane.xlu1 %674 }
 0x59b   :  { %9601 = vrcp.f32 %v675_v18 }
 0x59e   :  { %v678_v19 = vpop.xlane.xlu1 %677 }
 0x59f   :  { %9603 = vrcp.f32 %v678_v19 }
 0x5a2   :  { %v836_v29 = vpop.permute.xlu1 %835 }
 0x5a5   :  { %v9602_v20 = vpop.eup %9601 }
 0x5a6   :  { %v681_v22 = vmul.f32 %v9602_v20, %v9598_v13  ;;  %v914_v32 = vpop.permute.xlu1 %913 }
 0x5a8   :  { %8803 = vmatmul.mubr.msk.f32.vlgmr.msra.gmra.mrb[12].mxu1 %vm177_vm3, %v681_v22 }
 0x5a9   :  { %v9604_v24 = vpop.eup %9603  ;;  %8806 = vmatpush3.msra.mxu1 %v760_v23  ;;  %8807 = vmatprep.mubr.msk.f32.mxu1 %vm9774_vm2, %v9773_v21 }
 0x5aa   :  { %v682_v27 = vmul.f32 %v9604_v24, %v9600_v15  ;;  %8810 = vmatprep.subr.mxu1 %v9773_v21 }
 0x5ac   :  { %8808 = vmatmul.mubr.msk.f32.vlgmr.msra.gmra.mrb[14].mxu1 %vm177_vm3, %v682_v27 }
 0x5ad   :  { %8812 = vmatprep.mubr.msk.f32.mxu1 %vm9774_vm2, %v9773_v21 }
 0x5b0   :  { %8811 = vmatpush3.xpose.msk.msra.mxu1 %vm177_vm3, %v838_v17 }
 0x5b1   :  { %8815 = vmatprep.subr.mxu1 %v9773_v21 }
 0x5b3   :  { %8813 = vmatmul.mubr.msk.f32.vlgmr.msra.gmra.mrb[16].mxu1 %vm177_vm3, %v836_v29 }
 0x5b4   :  { %8816 = vmatpush3.xpose.msk.msra.mxu1 %vm177_vm3, %v916_v31  ;;  %8817 = vmatprep.mubr.msk.f32.mxu1 %vm9774_vm2, %v9773_v21 }
 0x5b5   :  { %8820 = vmatprep.subr.mxu1 %v9773_v21 }
 0x5b7   :  { %8818 = vmatmul.mubr.msk.f32.vlgmr.msra.gmra.mrb[18].mxu1 %vm177_vm3, %v914_v32 }
 0x5b8   :  { %8822 = vmatprep.mubr.msk.f32.mxu1 %vm9774_vm2, %v9773_v21 }
 0x67b   :  { %v10007_v33 = vpop.f32.mrb[12].mxu1 }
 0x67c   :  { %v8804_v34 = vpop.f32.mrb[13].mxu1 }
 0x67d   :  { %v44_v34 = vld [vmem:[%s11180_s3 + $0x8] sm:$0xff] }
 0x67f   :  { %v10009_v35 = vpop.f32.mrb[14].mxu1 }
 0x680   :  { %v8809_v36 = vpop.f32.mrb[15].mxu1 }
 0x686   :  { %v909_v37 = vpop.f32.mrb[16].mxu1 }
 0x687   :  { %v8814_v38 = vpop.f32.mrb[17].mxu1  ;;  %v991_v39 = vsel %vm177_vm3, %v909_v37, -inf }
 0x688   :  { %992 = vmax.xlane.f32.xlu0 %v991_v39 }
 0x68a   :  { %v987_v40 = vpop.f32.mrb[18].mxu1 }
 0x68b   :  { %v8819_v41 = vpop.f32.mrb[19].mxu1  ;;  %v994_v42 = vsel %vm177_vm3, %v987_v40, -inf }
 0x68c   :  { %995 = vmax.xlane.f32.xlu1 %v994_v42 }
 0x69d   :  { %1013 = vrot.lane.b32.xlu1 %v9909_v25, %s9782_s14 }
 0x6a1   :  { %1167 = vrot.lane.b32.xlu1 %v9909_v25, %s9783_s15 }
 0x6a5   :  { %1165 = vrot.lane.b32.xlu1 %v9920_v28, %s9784_s16 }
 0x6a9   :  { %1243 = vrot.lane.b32.xlu1 %v9928_v30, %s9784_s16 }
 0x715   :  { %v993_v43 = vpop.xlane.xlu0 %992 }
 0x716   :  { %v997_v44 = vsub.f32 %v909_v37, %v993_v43  ;;  %v46_v37 = vld [vmem:[%s11180_s3 + $0x18] sm:$0xff] }
 0x718   :  { %v999_v45 = vmul.f32 1.442695, %v997_v44 }
 0x719   :  { %v996_v46 = vpop.xlane.xlu1 %995 }
 0x71a   :  { %9605 = vpow2.f32 %v999_v45  ;;  %v998_v47 = vsub.f32 %v987_v40, %v996_v46 }
 0x71c   :  { %v1001_v48 = vmul.f32 1.442695, %v998_v47 }
 0x71d   :  { %v1014_v49 = vpop.permute.xlu1 %1013 }
 0x71e   :  { %9607 = vpow2.f32 %v1001_v48  ;;  %8821 = vmatpush3.msra.mxu1 %v1014_v49 }
 0x71f   :  { %8825 = vmatprep.subr.mxu1 %v9773_v21 }
 0x721   :  { %v1168_v58 = vpop.permute.xlu1 %1167 }
 0x724   :  { %v9606_v50 = vpop.eup %9605 }
 0x725   :  { %v1003_v51 = vsel %vm177_vm3, %v9606_v50, 0.0  ;;  %v1166_v62 = vpop.permute.xlu1 %1165 }
 0x726   :  { %1004 = vadd.xlane.f32.xlu0 %v1003_v51 }
 0x728   :  { %v9608_v28 = vpop.eup %9607 }
 0x729   :  { %v1006_v52 = vsel %vm177_vm3, %v9608_v28, 0.0  ;;  %v1244_v0 = vpop.permute.xlu1 %1243 }
 0x72a   :  { %1007 = vadd.xlane.f32.xlu0 %v1006_v52 }
 0x740   :  { %1089 = vrot.lane.b32.xlu0 %v9913_v26, %s9782_s14 }
 0x744   :  { %1245 = vrot.lane.b32.xlu0 %v9913_v26, %s9783_s15 }
 0x7b3   :  { %v1005_v30 = vpop.xlane.xlu0 %1004 }
 0x7b4   :  { %9609 = vrcp.f32 %v1005_v30 }
 0x7b7   :  { %v1008_v53 = vpop.xlane.xlu0 %1007 }
 0x7b8   :  { %9611 = vrcp.f32 %v1008_v53 }
 0x7bb   :  { %v1090_v56 = vpop.permute.xlu0 %1089 }
 0x7be   :  { %v9610_v54 = vpop.eup %9609 }
 0x7bf   :  { %v1011_v55 = vmul.f32 %v9610_v54, %v9606_v50  ;;  %v1246_v63 = vpop.permute.xlu0 %1245 }
 0x7c1   :  { %8823 = vmatmul.mubr.msk.f32.vlgmr.msra.gmra.mrb[20].mxu1 %vm177_vm3, %v1011_v55 }
 0x7c2   :  { %v9612_v57 = vpop.eup %9611  ;;  %8826 = vmatpush3.msra.mxu1 %v1090_v56  ;;  %8827 = vmatprep.mubr.msk.f32.mxu1 %vm9774_vm2, %v9773_v21 }
 0x7c3   :  { %v1012_v60 = vmul.f32 %v9612_v57, %v9608_v28  ;;  %8830 = vmatprep.subr.mxu1 %v9773_v21 }
 0x7c5   :  { %8828 = vmatmul.mubr.msk.f32.vlgmr.msra.gmra.mrb[22].mxu1 %vm177_vm3, %v1012_v60  ;;  %v8228_v60 = vld [vmem:[%s11177_s1 + $0x68] sm:$0xff] }
 0x7c6   :  { %8832 = vmatprep.mubr.msk.f32.mxu1 %vm9774_vm2, %v9773_v21 }
 0x7c9   :  { %8831 = vmatpush3.xpose.msk.msra.mxu1 %vm177_vm3, %v1168_v58  ;;  %v8227_v58 = vld [vmem:[%s11177_s1 + $0x60] sm:$0xff] }
 0x7ca   :  { %8835 = vmatprep.subr.mxu1 %v9773_v21 }
 0x7cc   :  { %8833 = vmatmul.mubr.msk.f32.vlgmr.msra.gmra.mrb[24].mxu1 %vm177_vm3, %v1166_v62  ;;  %v8229_v62 = vld [vmem:[%s11177_s1 + $0x70] sm:$0xff] }
 0x7cd   :  { %8836 = vmatpush3.xpose.msk.msra.mxu1 %vm177_vm3, %v1246_v63  ;;  %8837 = vmatprep.mubr.msk.f32.mxu1 %vm9774_vm2, %v9773_v21  ;;  %v9381_v63 = vpack.c.bf16 %v8228_v60, %v8227_v58 }
 0x7ce   :  { %8840 = vmatprep.subr.mxu1 %v9773_v21 }
 0x7d0   :  { %8838 = vmatmul.mubr.msk.f32.vlgmr.msra.gmra.mrb[26].mxu1 %vm177_vm3, %v1244_v0  ;;  %v8230_v0 = vld [vmem:[%s11177_s1 + $0x78] sm:$0xff] }
 0x7d1   :  { %8842 = vmatprep.mubr.msk.f32.mxu1 %vm9774_vm2, %v9773_v21 }
 0x894   :  { %v1085_v1 = vpop.f32.mrb[20].mxu1 }
 0x895   :  { %v8824_v3 = vpop.f32.mrb[21].mxu1 }
 0x896   :  { %v8231_v3 = vld [vmem:[%s11177_s1 + $0x80] sm:$0xff] }
 0x898   :  { %v1161_v4 = vpop.f32.mrb[22].mxu1 }
 0x899   :  { %v8829_v5 = vpop.f32.mrb[23].mxu1 }
 0x89f   :  { %v1239_v6 = vpop.f32.mrb[24].mxu1 }
 0x8a0   :  { %v8834_v7 = vpop.f32.mrb[25].mxu1  ;;  %v1321_v8 = vsel %vm177_vm3, %v1239_v6, -inf }
 0x8a1   :  { %1322 = vmax.xlane.f32.xlu0 %v1321_v8 }
 0x8a3   :  { %v1317_v9 = vpop.f32.mrb[26].mxu1 }
 0x8a4   :  { %v8839_v10 = vpop.f32.mrb[27].mxu1  ;;  %v1324_v11 = vsel %vm177_vm3, %v1317_v9, -inf }
 0x8a5   :  { %1325 = vmax.xlane.f32.xlu1 %v1324_v11 }
 0x8b6   :  { %1343 = vrot.lane.b32.xlu1 %v9909_v25, %s9785_s17 }
 0x8ba   :  { %1497 = vrot.lane.b32.xlu1 %v10007_v33, %s9786_s18 }
 0x8be   :  { %1499 = vrot.lane.b32.xlu1 %v10009_v35, %s9786_s18  ;;  %v45_v35 = vld [vmem:[%s11180_s3 + $0x10] sm:$0xff] }
 0x8bf   :  { %v9375_v38 = vpack.c.bf16 %v46_v37, %v45_v35  ;;  %v10170_v35 = vld [vmem:[%s11182_s5] ss:$0 sm:$0xff] }
 0x8c0   :  { %v10175_v37 = vld [vmem:[%s11183_s6] ss:$0 sm:$0xff] }
 0x8c2   :  { %1507 = vrot.lane.b32.xlu1 %v1161_v4, %s9787_s19  ;;  %v8232_v4 = vld [vmem:[%s11177_s1 + $0x88] sm:$0xff] }
 0x8c3   :  { %v9393_v5 = vpack.c.bf16 %v8232_v4, %v8231_v3 }
 0x92e   :  { %v1323_v12 = vpop.xlane.xlu0 %1322 }
 0x92f   :  { %v1327_v13 = vsub.f32 %v1239_v6, %v1323_v12 }
 0x931   :  { %v1329_v14 = vmul.f32 1.442695, %v1327_v13 }
 0x932   :  { %v1326_v15 = vpop.xlane.xlu1 %1325 }
 0x933   :  { %9613 = vpow2.f32 %v1329_v14  ;;  %v1328_v16 = vsub.f32 %v1317_v9, %v1326_v15 }
 0x935   :  { %v1331_v17 = vmul.f32 1.442695, %v1328_v16  ;;  %v8233_v16 = vld [vmem:[%s11177_s1 + $0x90] sm:$0xff] }
 0x936   :  { %v1344_v18 = vpop.permute.xlu1 %1343 }
 0x937   :  { %9615 = vpow2.f32 %v1331_v17  ;;  %8841 = vmatpush3.msra.mxu1 %v1344_v18  ;;  %v8234_v17 = vld [vmem:[%s11177_s1 + $0x98] sm:$0xff] }
 0x938   :  { %8845 = vmatprep.subr.mxu1 %v9773_v21  ;;  %v9399_v18 = vpack.c.bf16 %v8234_v17, %v8233_v16 }
 0x93a   :  { %v1498_v43 = vpop.permute.xlu1 %1497 }
 0x93b   :  { %v1519_v46 = vsel %vm177_vm3, %v9969_v59, %v1498_v43  ;;  %v8218_v59 = vld [vmem:[%s11181_s4] ss:$0 sm:$0xff] }
 0x93d   :  { %v9614_v25 = vpop.eup %9613 }
 0x93e   :  { %v1333_v19 = vsel %vm177_vm3, %v9614_v25, 0.0  ;;  %v1500_v44 = vpop.permute.xlu1 %1499 }
 0x93f   :  { %1334 = vadd.xlane.f32.xlu0 %v1333_v19  ;;  %v1520_v51 = vsel %vm177_vm3, %v9971_v61, %v1500_v44  ;;  %v8236_v19 = vld [vmem:[%s11177_s1 + $0xa8] sm:$0xff]  ;;  %v8245_v44 = vld [vmem:[%s11179_s2 + $0x1] ss:$0 sm:$0xff] }
 0x941   :  { %v9616_v20 = vpop.eup %9615 }
 0x942   :  { %v1336_v22 = vsel %vm177_vm3, %v9616_v20, 0.0  ;;  %v1508_v47 = vpop.permute.xlu1 %1507 }
 0x943   :  { %1337 = vadd.xlane.f32.xlu0 %v1336_v22  ;;  %v1523_v28 = vsel %vm1521_vm5, %v1520_v51, %v1508_v47  ;;  %v8237_v22 = vld [vmem:[%s11177_s1 + $0xb0] sm:$0xff] }
 0x959   :  { %1419 = vrot.lane.b32.xlu0 %v9913_v26, %s9785_s17  ;;  %v43_v26 = vld [vmem:[%s11180_s3] sm:$0xff] }
 0x95a   :  { %v9369_v36 = vpack.c.bf16 %v44_v34, %v43_v26 }
 0x95c   :  { %9371 = vmatprep.subr.msk.bf16.mxu0 %vm9837_vm1, %v9369_v36 }
 0x95d   :  { %1505 = vrot.lane.b32.xlu0 %v1085_v1, %s9787_s19  ;;  %9374 = vmatpush3.bf16.xpose.msk.msra.mxu0 %vm9837_vm1, %v9369_v36  ;;  %v9387_v1 = vpack.c.bf16 %v8230_v0, %v8229_v62 }
 0x95e   :  { %9377 = vmatprep.subr.msk.bf16.mxu0 %vm9837_vm1, %v9375_v38 }
 0x965   :  { %9380 = vmatpush3.bf16.xpose.msk.msra.mxu0 %vm9837_vm1, %v9375_v38 }
 0x966   :  { %8888 = vmatprep.subr.mxu0 %v9773_v21 }
 0x9cc   :  { %v1335_v23 = vpop.xlane.xlu0 %1334 }
 0x9cd   :  { %9617 = vrcp.f32 %v1335_v23  ;;  %v8238_v23 = vld [vmem:[%s11177_s1 + $0xb8] sm:$0xff] }
 0x9d0   :  { %v1338_v24 = vpop.xlane.xlu0 %1337 }
 0x9d1   :  { %9619 = vrcp.f32 %v1338_v24  ;;  %v9411_v24 = vpack.c.bf16 %v8238_v23, %v8237_v22 }
 0x9d4   :  { %v1420_v31 = vpop.permute.xlu0 %1419 }
 0x9d7   :  { %v9618_v27 = vpop.eup %9617 }
 0x9d8   :  { %v1341_v29 = vmul.f32 %v9618_v27, %v9614_v25  ;;  %v1506_v45 = vpop.permute.xlu0 %1505  ;;  %v8235_v25 = vld [vmem:[%s11177_s1 + $0xa0] sm:$0xff] }
 0x9d9   :  { %v1522_v48 = vsel %vm1521_vm5, %v1519_v46, %v1506_v45 }
 0x9da   :  { %8843 = vmatmul.mubr.msk.f32.vlgmr.msra.gmra.mrb[28].mxu1 %vm177_vm3, %v1341_v29 }
 0x9db   :  { %v9620_v32 = vpop.eup %9619  ;;  %8846 = vmatpush3.msra.mxu1 %v1420_v31  ;;  %8847 = vmatprep.mubr.msk.f32.mxu1 %vm9774_vm2, %v9773_v21 }
 0x9dc   :  { %v1342_v33 = vmul.f32 %v9620_v32, %v9616_v20  ;;  %9383 = vmatprep.subr.msk.bf16.mxu1 %vm9837_vm1, %v9381_v63  ;;  %v9405_v20 = vpack.c.bf16 %v8236_v19, %v8235_v25 }
 0x9de   :  { %8848 = vmatmul.mubr.msk.f32.vlgmr.msra.gmra.mrb[30].mxu1 %vm177_vm3, %v1342_v33 }
 0x9e2   :  { %9386 = vmatpush3.bf16.xpose.msk.msra.mxu1 %vm9837_vm1, %v9381_v63 }
 0x9e3   :  { %9389 = vmatprep.subr.msk.bf16.mxu1 %vm9837_vm1, %v9387_v1 }
 0x9ea   :  { %9392 = vmatpush3.bf16.xpose.msk.msra.mxu1 %vm9837_vm1, %v9387_v1 }
 0x9eb   :  { %9395 = vmatprep.subr.msk.bf16.mxu1 %vm9837_vm1, %v9393_v5 }
 0x9f2   :  { %9398 = vmatpush3.bf16.xpose.msk.msra.mxu1 %vm9837_vm1, %v9393_v5 }
 0x9f3   :  { %9401 = vmatprep.subr.msk.bf16.mxu1 %vm9837_vm1, %v9399_v18 }
 0x9fa   :  { %9404 = vmatpush3.bf16.xpose.msk.msra.mxu1 %vm9837_vm1, %v9399_v18 }
 0x9fb   :  { %9407 = vmatprep.subr.msk.bf16.mxu1 %vm9837_vm1, %v9405_v20 }
 0xa02   :  { %9410 = vmatpush3.bf16.xpose.msk.msra.mxu1 %vm9837_vm1, %v9405_v20 }
 0xa03   :  { %9413 = vmatprep.subr.msk.bf16.mxu1 %vm9837_vm1, %v9411_v24 }
 0xa0a   :  { %9416 = vmatpush3.bf16.xpose.msk.msra.mxu1 %vm9837_vm1, %v9411_v24 }
 0xa0b   :  { %8933 = vmatprep.subr.mxu1 %v9773_v21 }
 0xaad   :  { %v1415_v39 = vpop.f32.mrb[28].mxu1 }
 0xaae   :  { %1513 = vrot.lane.b32.xlu0 %v1415_v39, %s9788_s28  ;;  %v8844_v40 = vpop.f32.mrb[29].mxu1 }
 0xab1   :  { %v1491_v41 = vpop.f32.mrb[30].mxu1 }
 0xab2   :  { %1515 = vrot.lane.b32.xlu1 %v1491_v41, %s9788_s28  ;;  %v8849_v42 = vpop.f32.mrb[31].mxu1 }
 0xb20   :  { %v1514_v49 = vpop.permute.xlu0 %1513 }
 0xb21   :  { %v1525_v50 = vsel %vm1524_vm4, %v1522_v48, %v1514_v49 }
 0xb22   :  { %8858 = vmatprep.mubr.msk.f32.mxu0 %vm54_vm0, %v1525_v50 }
 0xb24   :  { %v1516_v52 = vpop.permute.xlu1 %1515 }
 0xb25   :  { %v1526_v30 = vsel %vm1524_vm4, %v1523_v28, %v1516_v52 }
 0xb26   :  { %8859 = vmatmul.mubr.msk.f32.vlgmr.msra.gmra.mrb[2].mxu0 %vm54_vm0, %v1526_v30 }
 0xb27   :  { %8890 = vmatprep.mubr.msk.f32.mxu0 %vm9774_vm2, %v9773_v21 }
 0xbf9   :  { %v8860_v53 = vpop.f32.mrb[2].mxu0 }
 0xbfa   :  { %v1623_v54 = vadd.f32 %v8860_v53, %v8218_v59  ;;  %v1617_v55 = vpop.f32.mrb[3].mxu0 }
 0xbfb   :  { %v1618_v56 = vadd.f32 %v8218_v59, %v1617_v55 }
 0xbfc   :  { %v1629_v61 = vsel %vm54_vm0, %v1623_v54, 0.0 }
 0xbfd   :  { %1630 = vadd.xlane.f32.xlu1 %v1629_v61  ;;  %v1626_v57 = vsel %vm54_vm0, %v1618_v56, 0.0 }
 0xbfe   :  { %1627 = vadd.xlane.f32.xlu0 %v1626_v57 }
 0xc8a   :  { %v1631_v6 = vpop.xlane.xlu1 %1630 }
 0xc8b   :  { %v1634_v7 = vmul.f32 0.03125, %v1631_v6  ;;  %v1628_v8 = vpop.xlane.xlu0 %1627 }
 0xc8c   :  { %v1633_v9 = vmul.f32 0.03125, %v1628_v8 }
 0xc8d   :  { %v1636_v10 = vsub.f32 %v1623_v54, %v1634_v7 }
 0xc8e   :  { %v1635_v11 = vsub.f32 %v1618_v56, %v1633_v9 }
 0xc8f   :  { %v1638_v14 = vmul.f32 %v1636_v10, %v1636_v10 }
 0xc90   :  { %v1637_v12 = vmul.f32 %v1635_v11, %v1635_v11 }
 0xc91   :  { %v1642_v15 = vsel %vm54_vm0, %v1638_v14, 0.0 }
 0xc92   :  { %v1639_v13 = vsel %vm54_vm0, %v1637_v12, 0.0 }
 0xc93   :  { %1640 = vadd.xlane.f32.xlu0 %v1639_v13 }
 0xc97   :  { %1643 = vadd.xlane.f32.xlu0 %v1642_v15 }
 0xd20   :  { %v1641_v27 = vpop.xlane.xlu0 %1640 }
 0xd21   :  { %v1645_v29 = vmul.f32 0.03125, %v1641_v27 }
 0xd23   :  { %v1647_v31 = vadd.f32 1e-05, %v1645_v29 }
 0xd24   :  { %v1644_v32 = vpop.xlane.xlu0 %1643 }
 0xd25   :  { %9621 = vrsqrt.f32 %v1647_v31  ;;  %v1646_v33 = vmul.f32 0.03125, %v1644_v32 }
 0xd27   :  { %v1648_v26 = vadd.f32 1e-05, %v1646_v33 }
 0xd29   :  { %9623 = vrsqrt.f32 %v1648_v26 }
 0xd2f   :  { %v9622_v34 = vpop.eup %9621 }
 0xd30   :  { %v1651_v36 = vmul.f32 %v9622_v34, %v1635_v11 }
 0xd32   :  { %v1659_v38 = vmul.f32 %v10170_v35, %v1651_v36 }
 0xd33   :  { %v9624_v39 = vpop.eup %9623 }
 0xd34   :  { %v1652_v40 = vmul.f32 %v9624_v39, %v1636_v10  ;;  %v1667_v41 = vadd.f32 %v10175_v37, %v1659_v38 }
 0xd36   :  { %8885 = vmatprep.mubr.msk.f32.mxu1 %vm54_vm0, %v1667_v41  ;;  %v1660_v42 = vmul.f32 %v10170_v35, %v1652_v40 }
 0xd38   :  { %v1668_v43 = vadd.f32 %v10175_v37, %v1660_v42 }
 0xd3a   :  { %8886 = vmatmul.mubr.msk.f32.vlgmr.msra.gmra.mrb[32].mxu1 %vm54_vm0, %v1668_v43 }
 0xd3b   :  { %8935 = vmatprep.mubr.msk.f32.mxu1 %vm9774_vm2, %v9773_v21 }
 0xe0d   :  { %v8887_v45 = vpop.f32.mrb[32].mxu1 }
 0xe0e   :  { %v10188_v46 = vadd.f32 %v8887_v45, %v8245_v44  ;;  %v1805_v47 = vpop.f32.mrb[33].mxu1 }
 0xe0f   :  { %v10190_v48 = vadd.f32 %v8245_v44, %v1805_v47 }
 0xe10   :  { %1895 = vrot.lane.b32.xlu0 %v10188_v46, %s9775_s8  ;;  %v10207_v28 = vmul.f32 0.35355338, %v10188_v46 }
 0xe11   :  { %1817 = vrot.lane.b32.xlu1 %v10190_v48, %s9775_s8  ;;  %v10198_v50 = vmul.f32 0.35355338, %v10190_v48 }
 0xe82   :  { %v1896_v51 = vpop.permute.xlu0 %1895 }
 0xe83   :  { %v1818_v49 = vpop.permute.xlu1 %1817 }
 0xe84   :  { %8889 = vmatpush3.xpose.msk.msra.mxu0 %vm177_vm3, %v1818_v49 }
 0xe85   :  { %8893 = vmatprep.subr.mxu0 %v9773_v21 }
 0xe87   :  { %8891 = vmatmul.mubr.msk.f32.vlgmr.msra.gmra.mrb[4].mxu0 %vm177_vm3, %v10198_v50 }
 0xe88   :  { %8894 = vmatpush3.xpose.msk.msra.mxu0 %vm177_vm3, %v1896_v51  ;;  %8895 = vmatprep.mubr.msk.f32.mxu0 %vm9774_vm2, %v9773_v21 }
 0xe89   :  { %8898 = vmatprep.subr.mxu0 %v9773_v21 }
 0xe8b   :  { %8896 = vmatmul.mubr.msk.f32.vlgmr.msra.gmra.mrb[6].mxu0 %vm177_vm3, %v10207_v28 }
 0xe8c   :  { %8900 = vmatprep.mubr.msk.f32.mxu0 %vm9774_vm2, %v9773_v21 }
 0xf5a   :  { %v1890_v52 = vpop.f32.mrb[4].mxu0 }
 0xf5b   :  { %v8892_v30 = vpop.f32.mrb[5].mxu0  ;;  %v1972_v59 = vsel %vm177_vm3, %v1890_v52, -inf }
 0xf5c   :  { %1973 = vmax.xlane.f32.xlu1 %v1972_v59 }
 0xf5e   :  { %v1968_v53 = vpop.f32.mrb[6].mxu0 }
 0xf5f   :  { %v8897_v54 = vpop.f32.mrb[7].mxu0  ;;  %v1975_v55 = vsel %vm177_vm3, %v1968_v53, -inf }
 0xf60   :  { %1976 = vmax.xlane.f32.xlu0 %v1975_v55 }
 0xf6d   :  { %1994 = vrot.lane.b32.xlu1 %v10190_v48, %s9776_s0 }
 0xfe9   :  { %v1974_v56 = vpop.xlane.xlu1 %1973 }
 0xfea   :  { %v1978_v61 = vsub.f32 %v1890_v52, %v1974_v56 }
 0xfec   :  { %v1980_v57 = vmul.f32 1.442695, %v1978_v61 }
 0xfed   :  { %v1995_v58 = vpop.permute.xlu1 %1994  ;;  %v1977_v60 = vpop.xlane.xlu0 %1976 }
 0xfee   :  { %9625 = vpow2.f32 %v1980_v57  ;;  %v1979_v62 = vsub.f32 %v1968_v53, %v1977_v60  ;;  %8899 = vmatpush3.msra.mxu0 %v1995_v58 }
 0xfef   :  { %8903 = vmatprep.subr.mxu0 %v9773_v21 }
 0xff0   :  { %v1982_v63 = vmul.f32 1.442695, %v1979_v62 }
 0xff2   :  { %9627 = vpow2.f32 %v1982_v63 }
 0xff8   :  { %v9626_v0 = vpop.eup %9625 }
 0xff9   :  { %v1984_v1 = vsel %vm177_vm3, %v9626_v0, 0.0 }
 0xffa   :  { %1985 = vadd.xlane.f32.xlu1 %v1984_v1 }
 0xffc   :  { %v9628_v3 = vpop.eup %9627 }
 0xffd   :  { %v1987_v4 = vsel %vm177_vm3, %v9628_v3, 0.0 }
 0xffe   :  { %1988 = vadd.xlane.f32.xlu0 %v1987_v4 }
0x100b   :  { %2148 = vrot.lane.b32.xlu1 %v10190_v48, %s9777_s9 }
0x100f   :  { %2146 = vrot.lane.b32.xlu1 %v10198_v50, %s9778_s10 }
0x1013   :  { %2224 = vrot.lane.b32.xlu1 %v10207_v28, %s9778_s10 }
0x1014   :  { %2070 = vrot.lane.b32.xlu0 %v10188_v46, %s9776_s0 }
0x1018   :  { %2226 = vrot.lane.b32.xlu0 %v10188_v46, %s9777_s9 }
0x1087   :  { %v1986_v5 = vpop.xlane.xlu1 %1985 }
0x1088   :  { %9629 = vrcp.f32 %v1986_v5 }
0x108b   :  { %v1989_v6 = vpop.xlane.xlu0 %1988  ;;  %v2149_v11 = vpop.permute.xlu1 %2148 }
0x108c   :  { %9631 = vrcp.f32 %v1989_v6 }
0x108f   :  { %v2071_v9 = vpop.permute.xlu0 %2070  ;;  %v2147_v13 = vpop.permute.xlu1 %2146 }
0x1092   :  { %v9630_v7 = vpop.eup %9629 }
0x1093   :  { %v1992_v8 = vmul.f32 %v9630_v7, %v9626_v0  ;;  %v2227_v14 = vpop.permute.xlu0 %2226  ;;  %v2225_v15 = vpop.permute.xlu1 %2224 }
0x1095   :  { %8901 = vmatmul.mubr.msk.f32.vlgmr.msra.gmra.mrb[8].mxu0 %vm177_vm3, %v1992_v8 }
0x1096   :  { %v9632_v10 = vpop.eup %9631  ;;  %8904 = vmatpush3.msra.mxu0 %v2071_v9  ;;  %8905 = vmatprep.mubr.msk.f32.mxu0 %vm9774_vm2, %v9773_v21 }
0x1097   :  { %v1993_v12 = vmul.f32 %v9632_v10, %v9628_v3  ;;  %8908 = vmatprep.subr.mxu0 %v9773_v21 }
0x1099   :  { %8906 = vmatmul.mubr.msk.f32.vlgmr.msra.gmra.mrb[10].mxu0 %vm177_vm3, %v1993_v12 }
0x109a   :  { %8910 = vmatprep.mubr.msk.f32.mxu0 %vm9774_vm2, %v9773_v21 }
0x109d   :  { %8909 = vmatpush3.xpose.msk.msra.mxu0 %vm177_vm3, %v2149_v11 }
0x109e   :  { %8913 = vmatprep.subr.mxu0 %v9773_v21 }
0x10a0   :  { %8911 = vmatmul.mubr.msk.f32.vlgmr.msra.gmra.mrb[12].mxu0 %vm177_vm3, %v2147_v13 }
0x10a1   :  { %8914 = vmatpush3.xpose.msk.msra.mxu0 %vm177_vm3, %v2227_v14  ;;  %8915 = vmatprep.mubr.msk.f32.mxu0 %vm9774_vm2, %v9773_v21 }
0x10a2   :  { %8918 = vmatprep.subr.mxu0 %v9773_v21 }
0x10a4   :  { %8916 = vmatmul.mubr.msk.f32.vlgmr.msra.gmra.mrb[14].mxu0 %vm177_vm3, %v2225_v15 }
0x10a5   :  { %8920 = vmatprep.mubr.msk.f32.mxu0 %vm9774_vm2, %v9773_v21 }
0x1168   :  { %v10248_v16 = vpop.f32.mrb[8].mxu0 }
0x1169   :  { %v8902_v17 = vpop.f32.mrb[9].mxu0 }
0x116c   :  { %v10250_v18 = vpop.f32.mrb[10].mxu0 }
0x116d   :  { %v8907_v25 = vpop.f32.mrb[11].mxu0 }
0x1173   :  { %v2220_v19 = vpop.f32.mrb[12].mxu0 }
0x1174   :  { %v8912_v20 = vpop.f32.mrb[13].mxu0  ;;  %v2302_v22 = vsel %vm177_vm3, %v2220_v19, -inf }
0x1175   :  { %2303 = vmax.xlane.f32.xlu0 %v2302_v22 }
0x1177   :  { %v2298_v23 = vpop.f32.mrb[14].mxu0 }
0x1178   :  { %v8917_v24 = vpop.f32.mrb[15].mxu0  ;;  %v2305_v27 = vsel %vm177_vm3, %v2298_v23, -inf }
0x1179   :  { %2306 = vmax.xlane.f32.xlu1 %v2305_v27 }
0x118a   :  { %2324 = vrot.lane.b32.xlu1 %v10190_v48, %s9779_s11 }
0x118e   :  { %2478 = vrot.lane.b32.xlu1 %v10190_v48, %s9780_s12 }
0x1192   :  { %2556 = vrot.lane.b32.xlu1 %v10188_v46, %s9780_s12 }
0x1196   :  { %2554 = vrot.lane.b32.xlu1 %v10207_v28, %s9781_s13 }
0x1202   :  { %v2304_v29 = vpop.xlane.xlu0 %2303 }
0x1203   :  { %v2308_v31 = vsub.f32 %v2220_v19, %v2304_v29 }
0x1205   :  { %v2310_v32 = vmul.f32 1.442695, %v2308_v31 }
0x1206   :  { %v2307_v33 = vpop.xlane.xlu1 %2306 }
0x1207   :  { %9633 = vpow2.f32 %v2310_v32  ;;  %v2309_v41 = vsub.f32 %v2298_v23, %v2307_v33 }
0x1209   :  { %v2312_v42 = vmul.f32 1.442695, %v2309_v41 }
0x120a   :  { %v2325_v26 = vpop.permute.xlu1 %2324 }
0x120b   :  { %8919 = vmatpush3.msra.mxu0 %v2325_v26  ;;  %9635 = vpow2.f32 %v2312_v42 }
0x120c   :  { %8923 = vmatprep.subr.mxu0 %v9773_v21 }
0x120e   :  { %v2479_v34 = vpop.permute.xlu1 %2478 }
0x1211   :  { %v9634_v36 = vpop.eup %9633 }
0x1212   :  { %v2557_v38 = vpop.permute.xlu1 %2556  ;;  %v2314_v39 = vsel %vm177_vm3, %v9634_v36, 0.0 }
0x1213   :  { %2315 = vadd.xlane.f32.xlu0 %v2314_v39  ;;  %8934 = vmatpush3.xpose.msk.msra.mxu1 %vm177_vm3, %v2557_v38 }
0x1214   :  { %8943 = vmatprep.subr.mxu1 %v9773_v21 }
0x1215   :  { %v9636_v43 = vpop.eup %9635 }
0x1216   :  { %v2555_v40 = vpop.permute.xlu1 %2554  ;;  %v2317_v44 = vsel %vm177_vm3, %v9636_v43, 0.0 }
0x1217   :  { %8936 = vmatmul.mubr.msk.f32.vlgmr.msra.gmra.mrb[34].mxu1 %vm177_vm3, %v2555_v40 }
0x1218   :  { %8945 = vmatprep.mubr.msk.f32.mxu1 %vm9774_vm2, %v9773_v21 }
0x1229   :  { %2400 = vrot.lane.b32.xlu0 %v10188_v46, %s9779_s11 }
0x1248   :  { %2318 = vadd.xlane.f32.xlu0 %v2317_v44 }
0x125e   :  { %2476 = vrot.lane.b32.xlu0 %v10198_v50, %s9781_s13 }
0x12a0   :  { %v2316_v45 = vpop.xlane.xlu0 %2315 }
0x12a1   :  { %9637 = vrcp.f32 %v2316_v45 }
0x12a4   :  { %v2401_v51 = vpop.permute.xlu0 %2400 }
0x12ab   :  { %v9638_v47 = vpop.eup %9637 }
0x12ac   :  { %v2322_v49 = vmul.f32 %v9638_v47, %v9634_v36 }
0x12ae   :  { %8921 = vmatmul.mubr.msk.f32.vlgmr.msra.gmra.mrb[16].mxu0 %vm177_vm3, %v2322_v49 }
0x12af   :  { %8924 = vmatpush3.msra.mxu0 %v2401_v51  ;;  %8925 = vmatprep.mubr.msk.f32.mxu0 %vm9774_vm2, %v9773_v21 }
0x12b0   :  { %8928 = vmatprep.subr.mxu0 %v9773_v21 }
0x12d5   :  { %v2319_v52 = vpop.xlane.xlu0 %2318 }
0x12d6   :  { %9639 = vrcp.f32 %v2319_v52 }
0x12d9   :  { %v2477_v53 = vpop.permute.xlu0 %2476 }
0x12e0   :  { %v9640_v30 = vpop.eup %9639 }
0x12e1   :  { %v2323_v59 = vmul.f32 %v9640_v30, %v9636_v43 }
0x12e3   :  { %8926 = vmatmul.mubr.msk.f32.vlgmr.msra.gmra.mrb[18].mxu0 %vm177_vm3, %v2323_v59 }
0x12e4   :  { %8929 = vmatpush3.xpose.msk.msra.mxu0 %vm177_vm3, %v2479_v34  ;;  %8930 = vmatprep.mubr.msk.f32.mxu0 %vm9774_vm2, %v9773_v21 }
0x12e5   :  { %8938 = vmatprep.subr.mxu0 %v9773_v21 }
0x12e7   :  { %8931 = vmatmul.mubr.msk.f32.vlgmr.msra.gmra.mrb[20].mxu0 %vm177_vm3, %v2477_v53 }
0x12e8   :  { %8940 = vmatprep.mubr.msk.f32.mxu0 %vm9774_vm2, %v9773_v21 }
0x12ea   :  { %v2628_v54 = vpop.f32.mrb[34].mxu1 }
0x12eb   :  { %v8937_v55 = vpop.f32.mrb[35].mxu1  ;;  %v2635_v56 = vsel %vm177_vm3, %v2628_v54, -inf }
0x12ec   :  { %2636 = vmax.xlane.f32.xlu1 %v2635_v56 }
0x12fd   :  { %2654 = vrot.lane.b32.xlu1 %v10190_v48, %s9782_s14 }
0x1301   :  { %2808 = vrot.lane.b32.xlu1 %v10190_v48, %s9783_s15 }
0x1305   :  { %2886 = vrot.lane.b32.xlu1 %v10188_v46, %s9783_s15 }
0x1309   :  { %2884 = vrot.lane.b32.xlu1 %v10207_v28, %s9784_s16 }
0x1379   :  { %v2637_v61 = vpop.xlane.xlu1 %2636 }
0x137a   :  { %v2639_v62 = vsub.f32 %v2628_v54, %v2637_v61  ;;  %v8241_v61 = vld [vmem:[%s11180_s3 + $0x28] sm:$0xff] }
0x137c   :  { %v2642_v63 = vmul.f32 1.442695, %v2639_v62 }
0x137d   :  { %v2655_v57 = vpop.permute.xlu1 %2654 }
0x137e   :  { %8939 = vmatpush3.msra.mxu0 %v2655_v57  ;;  %9641 = vpow2.f32 %v2642_v63 }
0x137f   :  { %8948 = vmatprep.subr.mxu0 %v9773_v21 }
0x1381   :  { %v2396_v58 = vpop.f32.mrb[16].mxu0  ;;  %v2809_v12 = vpop.permute.xlu1 %2808 }
0x1382   :  { %v8922_v60 = vpop.f32.mrb[17].mxu0 }
0x1383   :  { %v8243_v60 = vld [vmem:[%s11180_s3 + $0x38] sm:$0xff] }
0x1385   :  { %v2887_v15 = vpop.permute.xlu1 %2886 }
0x1388   :  { %v9642_v6 = vpop.eup %9641 }
0x1389   :  { %v2647_v28 = vsel %vm177_vm3, %v9642_v6, 0.0  ;;  %v2885_v19 = vpop.permute.xlu1 %2884 }
0x13b6   :  { %v2472_v0 = vpop.f32.mrb[18].mxu0 }
0x13b7   :  { %v8927_v1 = vpop.f32.mrb[19].mxu0 }
0x13ba   :  { %v2550_v3 = vpop.f32.mrb[20].mxu0 }
0x13bb   :  { %v8932_v4 = vpop.f32.mrb[21].mxu0  ;;  %v2632_v5 = vsel %vm177_vm3, %v2550_v3, -inf }
0x13bc   :  { %2633 = vmax.xlane.f32.xlu0 %v2632_v5 }
0x13c0   :  { %2648 = vadd.xlane.f32.xlu0 %v2647_v28 }
0x13d6   :  { %2730 = vrot.lane.b32.xlu0 %v10188_v46, %s9782_s14 }
0x1449   :  { %v2634_v7 = vpop.xlane.xlu0 %2633 }
0x144a   :  { %v2638_v8 = vsub.f32 %v2550_v3, %v2634_v7 }
0x144c   :  { %v2640_v9 = vmul.f32 1.442695, %v2638_v8 }
0x144d   :  { %v2649_v10 = vpop.xlane.xlu0 %2648 }
0x144e   :  { %9643 = vpow2.f32 %v2640_v9 }
0x144f   :  { %9645 = vrcp.f32 %v2649_v10 }
0x1451   :  { %v2731_v11 = vpop.permute.xlu0 %2730 }
0x1452   :  { %8944 = vmatpush3.msra.mxu1 %v2731_v11 }
0x1453   :  { %8953 = vmatprep.subr.mxu1 %v9773_v21 }
0x1458   :  { %v9644_v13 = vpop.eup %9643 }
0x1459   :  { %v9646_v14 = vpop.eup %9645  ;;  %v2644_v17 = vsel %vm177_vm3, %v9644_v13, 0.0 }
0x145a   :  { %2645 = vadd.xlane.f32.xlu0 %v2644_v17  ;;  %v2653_v25 = vmul.f32 %v9646_v14, %v9642_v6 }
0x145c   :  { %8946 = vmatmul.mubr.msk.f32.vlgmr.msra.gmra.mrb[36].mxu1 %vm177_vm3, %v2653_v25 }
0x145d   :  { %8954 = vmatpush3.xpose.msk.msra.mxu1 %vm177_vm3, %v2887_v15  ;;  %8955 = vmatprep.mubr.msk.f32.mxu1 %vm9774_vm2, %v9773_v21 }
0x145e   :  { %8963 = vmatprep.subr.mxu1 %v9773_v21 }
0x1460   :  { %8956 = vmatmul.mubr.msk.f32.vlgmr.msra.gmra.mrb[38].mxu1 %vm177_vm3, %v2885_v19 }
0x1461   :  { %8965 = vmatprep.mubr.msk.f32.mxu1 %vm9774_vm2, %v9773_v21 }
0x1470   :  { %2806 = vrot.lane.b32.xlu0 %v10198_v50, %s9784_s16 }
0x14e7   :  { %v2646_v20 = vpop.xlane.xlu0 %2645 }
0x14e8   :  { %9647 = vrcp.f32 %v2646_v20 }
0x14eb   :  { %v2807_v24 = vpop.permute.xlu0 %2806 }
0x14f2   :  { %v9648_v22 = vpop.eup %9647 }
0x14f3   :  { %v2652_v23 = vmul.f32 %v9648_v22, %v9644_v13  ;;  %v8291_v22 = vld [vmem:[%s11177_s1 + $0xc0] sm:$0xff] }
0x14f5   :  { %8941 = vmatmul.mubr.msk.f32.vlgmr.msra.gmra.mrb[22].mxu0 %vm177_vm3, %v2652_v23  ;;  %v8292_v23 = vld [vmem:[%s11177_s1 + $0xc8] sm:$0xff] }
0x14f6   :  { %8949 = vmatpush3.xpose.msk.msra.mxu0 %vm177_vm3, %v2809_v12  ;;  %8950 = vmatprep.mubr.msk.f32.mxu0 %vm9774_vm2, %v9773_v21 }
0x14f7   :  { %8958 = vmatprep.subr.mxu0 %v9773_v21 }
0x14f9   :  { %8951 = vmatmul.mubr.msk.f32.vlgmr.msra.gmra.mrb[24].mxu0 %vm177_vm3, %v2807_v24  ;;  %v8293_v24 = vld [vmem:[%s11177_s1 + $0xd0] sm:$0xff] }
0x14fa   :  { %8960 = vmatprep.mubr.msk.f32.mxu0 %vm9774_vm2, %v9773_v21 }
0x152f   :  { %v2802_v50 = vpop.f32.mrb[36].mxu1 }
0x1530   :  { %v8947_v27 = vpop.f32.mrb[37].mxu1 }
0x1531   :  { %v8294_v27 = vld [vmem:[%s11177_s1 + $0xd8] sm:$0xff] }
0x1533   :  { %v2958_v29 = vpop.f32.mrb[38].mxu1 }
0x1534   :  { %v8957_v31 = vpop.f32.mrb[39].mxu1  ;;  %v2965_v32 = vsel %vm177_vm3, %v2958_v29, -inf }
0x1535   :  { %2966 = vmax.xlane.f32.xlu1 %v2965_v32  ;;  %v8295_v31 = vld [vmem:[%s11177_s1 + $0xe0] sm:$0xff]  ;;  %v8296_v32 = vld [vmem:[%s11177_s1 + $0xe8] sm:$0xff] }
0x1546   :  { %2984 = vrot.lane.b32.xlu1 %v10190_v48, %s9785_s17 }
0x154a   :  { %3138 = vrot.lane.b32.xlu1 %v2396_v58, %s9786_s18  ;;  %v8242_v58 = vld [vmem:[%s11180_s3 + $0x30] sm:$0xff] }
0x154b   :  { %v9423_v62 = vpack.c.bf16 %v8243_v60, %v8242_v58 }
0x154e   :  { %3140 = vrot.lane.b32.xlu1 %v2472_v0, %s9786_s18 }
0x1552   :  { %3148 = vrot.lane.b32.xlu1 %v2802_v50, %s9787_s19  ;;  %v9429_v50 = vpack.c.bf16 %v8292_v23, %v8291_v22 }
0x15c2   :  { %v2967_v33 = vpop.xlane.xlu1 %2966 }
0x15c3   :  { %v2969_v26 = vsub.f32 %v2958_v29, %v2967_v33  ;;  %v9435_v29 = vpack.c.bf16 %v8294_v27, %v8293_v24  ;;  %v9441_v33 = vpack.c.bf16 %v8296_v32, %v8295_v31 }
0x15c5   :  { %v2972_v34 = vmul.f32 1.442695, %v2969_v26 }
0x15c6   :  { %v2985_v36 = vpop.permute.xlu1 %2984 }
0x15c7   :  { %9649 = vpow2.f32 %v2972_v34  ;;  %8959 = vmatpush3.msra.mxu0 %v2985_v36 }
0x15c8   :  { %v2726_v38 = vpop.f32.mrb[22].mxu0 }
0x15c9   :  { %v8942_v39 = vpop.f32.mrb[23].mxu0 }
0x15ca   :  { %v3139_v4 = vpop.permute.xlu1 %3138 }
0x15cb   :  { %v3160_v7 = vsel %vm177_vm3, %v10248_v16, %v3139_v4  ;;  %v8284_v16 = vld [vmem:[%s11181_s4 + $0x1] ss:$0 sm:$0xff] }
0x15cc   :  { %v2880_v40 = vpop.f32.mrb[24].mxu0 }
0x15cd   :  { %v8952_v41 = vpop.f32.mrb[25].mxu0  ;;  %v2962_v42 = vsel %vm177_vm3, %v2880_v40, -inf }
0x15ce   :  { %2963 = vmax.xlane.f32.xlu0 %v2962_v42  ;;  %v3141_v5 = vpop.permute.xlu1 %3140 }
0x15cf   :  { %v3161_v9 = vsel %vm177_vm3, %v10250_v18, %v3141_v5  ;;  %v8309_v5 = vld [vmem:[%s11179_s2 + $0x2] ss:$0 sm:$0xff] }
0x15d1   :  { %v9650_v48 = vpop.eup %9649 }
0x15d2   :  { %v2977_v43 = vsel %vm177_vm3, %v9650_v48, 0.0  ;;  %v3149_v6 = vpop.permute.xlu1 %3148 }
0x15d3   :  { %2978 = vadd.xlane.f32.xlu0 %v2977_v43  ;;  %v3163_v12 = vsel %vm1521_vm5, %v3161_v9, %v3149_v6 }
0x165b   :  { %v2964_v44 = vpop.xlane.xlu0 %2963 }
0x165c   :  { %v2968_v45 = vsub.f32 %v2880_v40, %v2964_v44  ;;  %v8297_v44 = vld [vmem:[%s11177_s1 + $0xf0] sm:$0xff] }
0x165e   :  { %v2970_v47 = vmul.f32 1.442695, %v2968_v45  ;;  %v8298_v45 = vld [vmem:[%s11177_s1 + $0xf8] sm:$0xff] }
0x1660   :  { %9651 = vpow2.f32 %v2970_v47  ;;  %v2979_v52 = vpop.xlane.xlu0 %2978  ;;  %v9447_v47 = vpack.c.bf16 %v8298_v45, %v8297_v44 }
0x1661   :  { %9653 = vrcp.f32 %v2979_v52 }
0x166a   :  { %v9652_v49 = vpop.eup %9651 }
0x166b   :  { %v2974_v51 = vsel %vm177_vm3, %v9652_v49, 0.0  ;;  %v9654_v59 = vpop.eup %9653 }
0x166c   :  { %2975 = vadd.xlane.f32.xlu0 %v2974_v51  ;;  %v2983_v54 = vmul.f32 %v9654_v59, %v9650_v48  ;;  %v8300_v51 = vld [vmem:[%s11177_s1 + $0x108] sm:$0xff]  ;;  %v8302_v59 = vld [vmem:[%s11177_s1 + $0x118] sm:$0xff] }
0x1682   :  { %3060 = vrot.lane.b32.xlu0 %v10188_v46, %s9785_s17  ;;  %v8240_v46 = vld [vmem:[%s11180_s3 + $0x20] sm:$0xff] }
0x1683   :  { %v9417_v57 = vpack.c.bf16 %v8241_v61, %v8240_v46 }
0x1685   :  { %9419 = vmatprep.subr.msk.bf16.mxu0 %vm9837_vm1, %v9417_v57 }
0x1686   :  { %3146 = vrot.lane.b32.xlu0 %v2726_v38, %s9787_s19 }
0x16f9   :  { %v2976_v30 = vpop.xlane.xlu0 %2975 }
0x16fa   :  { %9655 = vrcp.f32 %v2976_v30  ;;  %v8301_v30 = vld [vmem:[%s11177_s1 + $0x110] sm:$0xff] }
0x16fd   :  { %v3061_v53 = vpop.permute.xlu0 %3060 }
0x16fe   :  { %8964 = vmatpush3.msra.mxu1 %v3061_v53  ;;  %v9459_v53 = vpack.c.bf16 %v8302_v59, %v8301_v30 }
0x16ff   :  { %8966 = vmatmul.mubr.msk.f32.vlgmr.msra.gmra.mrb[40].mxu1 %vm177_vm3, %v2983_v54  ;;  %9431 = vmatprep.subr.msk.bf16.mxu1 %vm9837_vm1, %v9429_v50 }
0x1701   :  { %v3147_v28 = vpop.permute.xlu0 %3146 }
0x1702   :  { %v3162_v10 = vsel %vm1521_vm5, %v3160_v7, %v3147_v28 }
0x1704   :  { %v9656_v55 = vpop.eup %9655 }
0x1705   :  { %v2982_v56 = vmul.f32 %v9656_v55, %v9652_v49  ;;  %9434 = vmatpush3.bf16.xpose.msk.msra.mxu1 %vm9837_vm1, %v9429_v50  ;;  %v8299_v49 = vld [vmem:[%s11177_s1 + $0x100] sm:$0xff] }
0x1706   :  { %9437 = vmatprep.subr.msk.bf16.mxu1 %vm9837_vm1, %v9435_v29  ;;  %v9453_v52 = vpack.c.bf16 %v8300_v51, %v8299_v49 }
0x1707   :  { %8961 = vmatmul.mubr.msk.f32.vlgmr.msra.gmra.mrb[26].mxu0 %vm177_vm3, %v2982_v56 }
0x1708   :  { %9422 = vmatpush3.bf16.xpose.msk.msra.mxu0 %vm9837_vm1, %v9417_v57 }
0x1709   :  { %9425 = vmatprep.subr.msk.bf16.mxu0 %vm9837_vm1, %v9423_v62 }
0x170d   :  { %9440 = vmatpush3.bf16.xpose.msk.msra.mxu1 %vm9837_vm1, %v9435_v29 }
0x170e   :  { %9443 = vmatprep.subr.msk.bf16.mxu1 %vm9837_vm1, %v9441_v33 }
0x1710   :  { %9428 = vmatpush3.bf16.xpose.msk.msra.mxu0 %vm9837_vm1, %v9423_v62 }
0x1711   :  { %9006 = vmatprep.subr.mxu0 %v9773_v21 }
0x1715   :  { %9446 = vmatpush3.bf16.xpose.msk.msra.mxu1 %vm9837_vm1, %v9441_v33 }
0x1716   :  { %9449 = vmatprep.subr.msk.bf16.mxu1 %vm9837_vm1, %v9447_v47 }
0x171d   :  { %9452 = vmatpush3.bf16.xpose.msk.msra.mxu1 %vm9837_vm1, %v9447_v47 }
0x171e   :  { %9455 = vmatprep.subr.msk.bf16.mxu1 %vm9837_vm1, %v9453_v52 }
0x1725   :  { %9458 = vmatpush3.bf16.xpose.msk.msra.mxu1 %vm9837_vm1, %v9453_v52 }
0x1726   :  { %9461 = vmatprep.subr.msk.bf16.mxu1 %vm9837_vm1, %v9459_v53 }
0x172d   :  { %9464 = vmatpush3.bf16.xpose.msk.msra.mxu1 %vm9837_vm1, %v9459_v53 }
0x172e   :  { %9051 = vmatprep.subr.mxu1 %v9773_v21 }
0x17d2   :  { %v3132_v63 = vpop.f32.mrb[40].mxu1 }
0x17d3   :  { %3156 = vrot.lane.b32.xlu1 %v3132_v63, %s9788_s28  ;;  %v8967_v0 = vpop.f32.mrb[41].mxu1 }
0x17da   :  { %v3056_v1 = vpop.f32.mrb[26].mxu0 }
0x17db   :  { %3154 = vrot.lane.b32.xlu0 %v3056_v1, %s9788_s28  ;;  %v8962_v3 = vpop.f32.mrb[27].mxu0 }
0x1845   :  { %v3157_v8 = vpop.permute.xlu1 %3156 }
0x1846   :  { %v3165_v14 = vsel %vm1524_vm4, %v3163_v12, %v3157_v8 }
0x184d   :  { %v3155_v11 = vpop.permute.xlu0 %3154 }
0x184e   :  { %v3164_v13 = vsel %vm1524_vm4, %v3162_v10, %v3155_v11 }
0x184f   :  { %8976 = vmatprep.mubr.msk.f32.mxu0 %vm54_vm0, %v3164_v13 }
0x1850   :  { %8977 = vmatmul.mubr.msk.f32.vlgmr.msra.gmra.mrb[28].mxu0 %vm54_vm0, %v3165_v14 }
0x1851   :  { %9008 = vmatprep.mubr.msk.f32.mxu0 %vm9774_vm2, %v9773_v21 }
0x1923   :  { %v8978_v18 = vpop.f32.mrb[28].mxu0 }
0x1924   :  { %v3262_v15 = vadd.f32 %v8978_v18, %v8284_v16  ;;  %v3256_v17 = vpop.f32.mrb[29].mxu0 }
0x1925   :  { %v3257_v25 = vadd.f32 %v8284_v16, %v3256_v17 }
0x1926   :  { %v3268_v19 = vsel %vm54_vm0, %v3262_v15, 0.0 }
0x1927   :  { %3269 = vadd.xlane.f32.xlu1 %v3268_v19  ;;  %v3265_v20 = vsel %vm54_vm0, %v3257_v25, 0.0 }
0x1928   :  { %3266 = vadd.xlane.f32.xlu0 %v3265_v20 }
0x19b4   :  { %v3270_v26 = vpop.xlane.xlu1 %3269 }
0x19b5   :  { %v3272_v34 = vmul.f32 0.03125, %v3270_v26  ;;  %v3267_v36 = vpop.xlane.xlu0 %3266 }
0x19b6   :  { %v3271_v38 = vmul.f32 0.03125, %v3267_v36 }
0x19b7   :  { %v3274_v39 = vsub.f32 %v3262_v15, %v3272_v34 }
0x19b8   :  { %v3273_v40 = vsub.f32 %v3257_v25, %v3271_v38 }
0x19b9   :  { %v3276_v48 = vmul.f32 %v3274_v39, %v3274_v39 }
0x19ba   :  { %v3275_v41 = vmul.f32 %v3273_v40, %v3273_v40 }
0x19bb   :  { %v3280_v43 = vsel %vm54_vm0, %v3276_v48, 0.0 }
0x19bc   :  { %v3277_v42 = vsel %vm54_vm0, %v3275_v41, 0.0 }
0x19bd   :  { %3278 = vadd.xlane.f32.xlu0 %v3277_v42 }
0x19c1   :  { %3281 = vadd.xlane.f32.xlu0 %v3280_v43 }
0x1a4a   :  { %v3279_v54 = vpop.xlane.xlu0 %3278 }
0x1a4b   :  { %v3283_v55 = vmul.f32 0.03125, %v3279_v54 }
0x1a4d   :  { %v3285_v56 = vadd.f32 1e-05, %v3283_v55 }
0x1a4e   :  { %v3282_v46 = vpop.xlane.xlu0 %3281 }
0x1a4f   :  { %9657 = vrsqrt.f32 %v3285_v56  ;;  %v3284_v61 = vmul.f32 0.03125, %v3282_v46 }
0x1a51   :  { %v3286_v57 = vadd.f32 1e-05, %v3284_v61 }
0x1a53   :  { %9659 = vrsqrt.f32 %v3286_v57 }
0x1a59   :  { %v9658_v58 = vpop.eup %9657 }
0x1a5a   :  { %v3289_v60 = vmul.f32 %v9658_v58, %v3273_v40 }
0x1a5c   :  { %v3291_v62 = vmul.f32 %v10170_v35, %v3289_v60 }
0x1a5d   :  { %v9660_v63 = vpop.eup %9659 }
0x1a5e   :  { %v3290_v0 = vmul.f32 %v9660_v63, %v3274_v39  ;;  %v3293_v1 = vadd.f32 %v10175_v37, %v3291_v62 }
0x1a60   :  { %9003 = vmatprep.mubr.msk.f32.mxu1 %vm54_vm0, %v3293_v1  ;;  %v3292_v3 = vmul.f32 %v10170_v35, %v3290_v0 }
0x1a62   :  { %v3294_v4 = vadd.f32 %v10175_v37, %v3292_v3 }
0x1a64   :  { %9004 = vmatmul.mubr.msk.f32.vlgmr.msra.gmra.mrb[42].mxu1 %vm54_vm0, %v3294_v4 }
0x1a65   :  { %9053 = vmatprep.mubr.msk.f32.mxu1 %vm9774_vm2, %v9773_v21 }
0x1b37   :  { %v9005_v6 = vpop.f32.mrb[42].mxu1 }
0x1b38   :  { %v10448_v28 = vadd.f32 %v9005_v6, %v8309_v5  ;;  %v3431_v7 = vpop.f32.mrb[43].mxu1 }
0x1b39   :  { %v10450_v8 = vadd.f32 %v8309_v5, %v3431_v7 }
0x1b3a   :  { %3521 = vrot.lane.b32.xlu0 %v10448_v28, %s9775_s8  ;;  %v10467_v10 = vmul.f32 0.35355338, %v10448_v28 }
0x1b3b   :  { %3443 = vrot.lane.b32.xlu1 %v10450_v8, %s9775_s8  ;;  %v10458_v37 = vmul.f32 0.35355338, %v10450_v8 }
0x1bac   :  { %v3522_v9 = vpop.permute.xlu0 %3521 }
0x1bad   :  { %v3444_v35 = vpop.permute.xlu1 %3443 }
0x1bae   :  { %9007 = vmatpush3.xpose.msk.msra.mxu0 %vm177_vm3, %v3444_v35 }
0x1baf   :  { %9011 = vmatprep.subr.mxu0 %v9773_v21 }
0x1bb1   :  { %9009 = vmatmul.mubr.msk.f32.vlgmr.msra.gmra.mrb[30].mxu0 %vm177_vm3, %v10458_v37 }
0x1bb2   :  { %9012 = vmatpush3.xpose.msk.msra.mxu0 %vm177_vm3, %v3522_v9  ;;  %9013 = vmatprep.mubr.msk.f32.mxu0 %vm9774_vm2, %v9773_v21 }
0x1bb3   :  { %9016 = vmatprep.subr.mxu0 %v9773_v21 }
0x1bb5   :  { %9014 = vmatmul.mubr.msk.f32.vlgmr.msra.gmra.mrb[32].mxu0 %vm177_vm3, %v10467_v10 }
0x1bb6   :  { %9018 = vmatprep.mubr.msk.f32.mxu0 %vm9774_vm2, %v9773_v21 }
0x1c84   :  { %v3516_v11 = vpop.f32.mrb[30].mxu0 }
0x1c85   :  { %v9010_v12 = vpop.f32.mrb[31].mxu0  ;;  %v3598_v13 = vsel %vm177_vm3, %v3516_v11, -inf }
0x1c86   :  { %3599 = vmax.xlane.f32.xlu1 %v3598_v13 }
0x1c88   :  { %v3594_v14 = vpop.f32.mrb[32].mxu0 }
0x1c89   :  { %v9015_v16 = vpop.f32.mrb[33].mxu0  ;;  %v3601_v18 = vsel %vm177_vm3, %v3594_v14, -inf }
0x1c8a   :  { %3602 = vmax.xlane.f32.xlu0 %v3601_v18 }
0x1c97   :  { %3620 = vrot.lane.b32.xlu1 %v10450_v8, %s9776_s0 }
0x1d13   :  { %v3600_v15 = vpop.xlane.xlu1 %3599 }
0x1d14   :  { %v3604_v17 = vsub.f32 %v3516_v11, %v3600_v15 }
0x1d16   :  { %v3606_v25 = vmul.f32 1.442695, %v3604_v17 }
0x1d17   :  { %v3621_v19 = vpop.permute.xlu1 %3620  ;;  %v3603_v20 = vpop.xlane.xlu0 %3602 }
0x1d18   :  { %9661 = vpow2.f32 %v3606_v25  ;;  %v3605_v22 = vsub.f32 %v3594_v14, %v3603_v20  ;;  %9017 = vmatpush3.msra.mxu0 %v3621_v19 }
0x1d19   :  { %9021 = vmatprep.subr.mxu0 %v9773_v21 }
0x1d1a   :  { %v3608_v23 = vmul.f32 1.442695, %v3605_v22 }
0x1d1c   :  { %9663 = vpow2.f32 %v3608_v23 }
0x1d22   :  { %v9662_v24 = vpop.eup %9661 }
0x1d23   :  { %v3610_v50 = vsel %vm177_vm3, %v9662_v24, 0.0 }
0x1d24   :  { %3611 = vadd.xlane.f32.xlu1 %v3610_v50 }
0x1d26   :  { %v9664_v27 = vpop.eup %9663 }
0x1d27   :  { %v3613_v29 = vsel %vm177_vm3, %v9664_v27, 0.0 }
0x1d28   :  { %3614 = vadd.xlane.f32.xlu0 %v3613_v29 }
0x1d35   :  { %3774 = vrot.lane.b32.xlu1 %v10450_v8, %s9777_s9 }
0x1d39   :  { %3772 = vrot.lane.b32.xlu1 %v10458_v37, %s9778_s10 }
0x1d3d   :  { %3850 = vrot.lane.b32.xlu1 %v10467_v10, %s9778_s10 }
0x1d3e   :  { %3696 = vrot.lane.b32.xlu0 %v10448_v28, %s9776_s0 }
0x1d42   :  { %3852 = vrot.lane.b32.xlu0 %v10448_v28, %s9777_s9 }
0x1db1   :  { %v3612_v31 = vpop.xlane.xlu1 %3611 }
0x1db2   :  { %9665 = vrcp.f32 %v3612_v31 }
0x1db5   :  { %v3615_v32 = vpop.xlane.xlu0 %3614  ;;  %v3775_v38 = vpop.permute.xlu1 %3774 }
0x1db6   :  { %9667 = vrcp.f32 %v3615_v32 }
0x1db9   :  { %v3697_v34 = vpop.permute.xlu0 %3696  ;;  %v3773_v40 = vpop.permute.xlu1 %3772 }
0x1dbc   :  { %v9666_v33 = vpop.eup %9665 }
0x1dbd   :  { %v3618_v26 = vmul.f32 %v9666_v33, %v9662_v24  ;;  %v3853_v41 = vpop.permute.xlu0 %3852  ;;  %v3851_v42 = vpop.permute.xlu1 %3850 }
0x1dbf   :  { %9019 = vmatmul.mubr.msk.f32.vlgmr.msra.gmra.mrb[34].mxu0 %vm177_vm3, %v3618_v26 }
0x1dc0   :  { %v9668_v36 = vpop.eup %9667  ;;  %9022 = vmatpush3.msra.mxu0 %v3697_v34  ;;  %9023 = vmatprep.mubr.msk.f32.mxu0 %vm9774_vm2, %v9773_v21 }
0x1dc1   :  { %v3619_v39 = vmul.f32 %v9668_v36, %v9664_v27  ;;  %9026 = vmatprep.subr.mxu0 %v9773_v21 }
0x1dc3   :  { %9024 = vmatmul.mubr.msk.f32.vlgmr.msra.gmra.mrb[36].mxu0 %vm177_vm3, %v3619_v39 }
0x1dc4   :  { %9028 = vmatprep.mubr.msk.f32.mxu0 %vm9774_vm2, %v9773_v21 }
0x1dc7   :  { %9027 = vmatpush3.xpose.msk.msra.mxu0 %vm177_vm3, %v3775_v38 }
0x1dc8   :  { %9031 = vmatprep.subr.mxu0 %v9773_v21 }
0x1dca   :  { %9029 = vmatmul.mubr.msk.f32.vlgmr.msra.gmra.mrb[38].mxu0 %vm177_vm3, %v3773_v40 }
0x1dcb   :  { %9032 = vmatpush3.xpose.msk.msra.mxu0 %vm177_vm3, %v3853_v41  ;;  %9033 = vmatprep.mubr.msk.f32.mxu0 %vm9774_vm2, %v9773_v21 }
0x1dcc   :  { %9036 = vmatprep.subr.mxu0 %v9773_v21 }
0x1dce   :  { %9034 = vmatmul.mubr.msk.f32.vlgmr.msra.gmra.mrb[40].mxu0 %vm177_vm3, %v3851_v42 }
0x1dcf   :  { %9038 = vmatprep.mubr.msk.f32.mxu0 %vm9774_vm2, %v9773_v21 }
0x1e92   :  { %v10508_v48 = vpop.f32.mrb[34].mxu0 }
0x1e93   :  { %v9020_v43 = vpop.f32.mrb[35].mxu0 }
0x1e96   :  { %v10510_v44 = vpop.f32.mrb[36].mxu0 }
0x1e97   :  { %v9025_v45 = vpop.f32.mrb[37].mxu0 }
0x1e9d   :  { %v3846_v47 = vpop.f32.mrb[38].mxu0 }
0x1e9e   :  { %v9030_v49 = vpop.f32.mrb[39].mxu0  ;;  %v3928_v51 = vsel %vm177_vm3, %v3846_v47, -inf }
0x1e9f   :  { %3929 = vmax.xlane.f32.xlu0 %v3928_v51 }
0x1ea1   :  { %v3924_v52 = vpop.f32.mrb[40].mxu0 }
0x1ea2   :  { %v9035_v30 = vpop.f32.mrb[41].mxu0  ;;  %v3931_v59 = vsel %vm177_vm3, %v3924_v52, -inf }
0x1ea3   :  { %3932 = vmax.xlane.f32.xlu1 %v3931_v59 }
0x1eb4   :  { %3950 = vrot.lane.b32.xlu1 %v10450_v8, %s9779_s11 }
0x1eb8   :  { %4104 = vrot.lane.b32.xlu1 %v10450_v8, %s9780_s12 }
0x1ebc   :  { %4182 = vrot.lane.b32.xlu1 %v10448_v28, %s9780_s12 }
0x1ec0   :  { %4180 = vrot.lane.b32.xlu1 %v10467_v10, %s9781_s13 }
0x1f2c   :  { %v3930_v53 = vpop.xlane.xlu0 %3929 }
0x1f2d   :  { %v3934_v54 = vsub.f32 %v3846_v47, %v3930_v53 }
0x1f2f   :  { %v3936_v55 = vmul.f32 1.442695, %v3934_v54 }
0x1f30   :  { %v3933_v56 = vpop.xlane.xlu1 %3932 }
0x1f31   :  { %9669 = vpow2.f32 %v3936_v55  ;;  %v3935_v63 = vsub.f32 %v3924_v52, %v3933_v56 }
0x1f33   :  { %v3938_v0 = vmul.f32 1.442695, %v3935_v63 }
0x1f34   :  { %v3951_v46 = vpop.permute.xlu1 %3950 }
0x1f35   :  { %9037 = vmatpush3.msra.mxu0 %v3951_v46  ;;  %9671 = vpow2.f32 %v3938_v0 }
0x1f36   :  { %9041 = vmatprep.subr.mxu0 %v9773_v21 }
0x1f38   :  { %v4105_v61 = vpop.permute.xlu1 %4104 }
0x1f3b   :  { %v9670_v57 = vpop.eup %9669 }
0x1f3c   :  { %v4183_v58 = vpop.permute.xlu1 %4182  ;;  %v3940_v60 = vsel %vm177_vm3, %v9670_v57, 0.0 }
0x1f3d   :  { %3941 = vadd.xlane.f32.xlu0 %v3940_v60  ;;  %9052 = vmatpush3.xpose.msk.msra.mxu1 %vm177_vm3, %v4183_v58 }
0x1f3e   :  { %9061 = vmatprep.subr.mxu1 %v9773_v21 }
0x1f3f   :  { %v9672_v1 = vpop.eup %9671 }
0x1f40   :  { %v4181_v62 = vpop.permute.xlu1 %4180  ;;  %v3943_v3 = vsel %vm177_vm3, %v9672_v1, 0.0 }
0x1f41   :  { %9054 = vmatmul.mubr.msk.f32.vlgmr.msra.gmra.mrb[44].mxu1 %vm177_vm3, %v4181_v62 }
0x1f42   :  { %9063 = vmatprep.mubr.msk.f32.mxu1 %vm9774_vm2, %v9773_v21 }
0x1f53   :  { %4026 = vrot.lane.b32.xlu0 %v10448_v28, %s9779_s11 }
0x1f72   :  { %3944 = vadd.xlane.f32.xlu0 %v3943_v3 }
0x1f88   :  { %4102 = vrot.lane.b32.xlu0 %v10458_v37, %s9781_s13 }
0x1fca   :  { %v3942_v4 = vpop.xlane.xlu0 %3941 }
0x1fcb   :  { %9673 = vrcp.f32 %v3942_v4 }
0x1fce   :  { %v4027_v7 = vpop.permute.xlu0 %4026 }
0x1fd5   :  { %v9674_v5 = vpop.eup %9673 }
0x1fd6   :  { %v3948_v6 = vmul.f32 %v9674_v5, %v9670_v57 }
0x1fd8   :  { %9039 = vmatmul.mubr.msk.f32.vlgmr.msra.gmra.mrb[42].mxu0 %vm177_vm3, %v3948_v6 }
0x1fd9   :  { %9042 = vmatpush3.msra.mxu0 %v4027_v7  ;;  %9043 = vmatprep.mubr.msk.f32.mxu0 %vm9774_vm2, %v9773_v21 }
0x1fda   :  { %9046 = vmatprep.subr.mxu0 %v9773_v21 }
0x1fff   :  { %v3945_v35 = vpop.xlane.xlu0 %3944 }
0x2000   :  { %9675 = vrcp.f32 %v3945_v35 }
0x2003   :  { %v4103_v12 = vpop.permute.xlu0 %4102 }
0x200a   :  { %v9676_v9 = vpop.eup %9675 }
0x200b   :  { %v3949_v11 = vmul.f32 %v9676_v9, %v9672_v1 }
0x200d   :  { %9044 = vmatmul.mubr.msk.f32.vlgmr.msra.gmra.mrb[44].mxu0 %vm177_vm3, %v3949_v11 }
0x200e   :  { %9047 = vmatpush3.xpose.msk.msra.mxu0 %vm177_vm3, %v4105_v61  ;;  %9048 = vmatprep.mubr.msk.f32.mxu0 %vm9774_vm2, %v9773_v21 }
0x200f   :  { %9056 = vmatprep.subr.mxu0 %v9773_v21 }
0x2011   :  { %9049 = vmatmul.mubr.msk.f32.vlgmr.msra.gmra.mrb[46].mxu0 %vm177_vm3, %v4103_v12 }
0x2012   :  { %9058 = vmatprep.mubr.msk.f32.mxu0 %vm9774_vm2, %v9773_v21 }
0x2014   :  { %v4254_v13 = vpop.f32.mrb[44].mxu1 }
0x2015   :  { %v9055_v14 = vpop.f32.mrb[45].mxu1  ;;  %v4261_v16 = vsel %vm177_vm3, %v4254_v13, -inf }
0x2016   :  { %4262 = vmax.xlane.f32.xlu1 %v4261_v16  ;;  %v8305_v14 = vld [vmem:[%s11180_s3 + $0x48] sm:$0xff] }
0x2027   :  { %4280 = vrot.lane.b32.xlu1 %v10450_v8, %s9782_s14 }
0x202b   :  { %4434 = vrot.lane.b32.xlu1 %v10450_v8, %s9783_s15 }
0x202f   :  { %4512 = vrot.lane.b32.xlu1 %v10448_v28, %s9783_s15 }
0x2033   :  { %4510 = vrot.lane.b32.xlu1 %v10467_v10, %s9784_s16 }
0x20a3   :  { %v4263_v18 = vpop.xlane.xlu1 %4262 }
0x20a4   :  { %v4265_v19 = vsub.f32 %v4254_v13, %v4263_v18  ;;  %v8306_v18 = vld [vmem:[%s11180_s3 + $0x50] sm:$0xff] }
0x20a6   :  { %v4268_v20 = vmul.f32 1.442695, %v4265_v19 }
0x20a7   :  { %v4281_v15 = vpop.permute.xlu1 %4280 }
0x20a8   :  { %9057 = vmatpush3.msra.mxu0 %v4281_v15  ;;  %9677 = vpow2.f32 %v4268_v20  ;;  %v8307_v15 = vld [vmem:[%s11180_s3 + $0x58] sm:$0xff] }
0x20a9   :  { %9066 = vmatprep.subr.mxu0 %v9773_v21 }
0x20ab   :  { %v4022_v17 = vpop.f32.mrb[42].mxu0  ;;  %v4435_v36 = vpop.permute.xlu1 %4434 }
0x20ac   :  { %v9040_v25 = vpop.f32.mrb[43].mxu0 }
0x20af   :  { %v4513_v40 = vpop.permute.xlu1 %4512 }
0x20b2   :  { %v9678_v29 = vpop.eup %9677 }
0x20b3   :  { %v4273_v10 = vsel %vm177_vm3, %v9678_v29, 0.0  ;;  %v4511_v43 = vpop.permute.xlu1 %4510 }
0x20e0   :  { %v4098_v22 = vpop.f32.mrb[44].mxu0 }
0x20e1   :  { %v9045_v23 = vpop.f32.mrb[45].mxu0 }
0x20e4   :  { %v4176_v24 = vpop.f32.mrb[46].mxu0 }
0x20e5   :  { %v9050_v50 = vpop.f32.mrb[47].mxu0  ;;  %v4258_v27 = vsel %vm177_vm3, %v4176_v24, -inf }
0x20e6   :  { %4259 = vmax.xlane.f32.xlu0 %v4258_v27 }
0x20ea   :  { %4274 = vadd.xlane.f32.xlu0 %v4273_v10 }
0x2100   :  { %4356 = vrot.lane.b32.xlu0 %v10448_v28, %s9782_s14 }
0x2173   :  { %v4260_v31 = vpop.xlane.xlu0 %4259 }
0x2174   :  { %v4264_v32 = vsub.f32 %v4176_v24, %v4260_v31 }
0x2176   :  { %v4266_v33 = vmul.f32 1.442695, %v4264_v32 }
0x2177   :  { %v4275_v26 = vpop.xlane.xlu0 %4274 }
0x2178   :  { %9679 = vpow2.f32 %v4266_v33 }
0x2179   :  { %9681 = vrcp.f32 %v4275_v26 }
0x217b   :  { %v4357_v34 = vpop.permute.xlu0 %4356 }
0x217c   :  { %9062 = vmatpush3.msra.mxu1 %v4357_v34 }
0x217d   :  { %9071 = vmatprep.subr.mxu1 %v9773_v21 }
0x2182   :  { %v9680_v38 = vpop.eup %9679 }
0x2183   :  { %v9682_v39 = vpop.eup %9681  ;;  %v4270_v41 = vsel %vm177_vm3, %v9680_v38, 0.0 }
0x2184   :  { %4271 = vadd.xlane.f32.xlu0 %v4270_v41  ;;  %v4279_v42 = vmul.f32 %v9682_v39, %v9678_v29 }
0x2186   :  { %9064 = vmatmul.mubr.msk.f32.vlgmr.msra.gmra.mrb[46].mxu1 %vm177_vm3, %v4279_v42 }
0x2187   :  { %9072 = vmatpush3.xpose.msk.msra.mxu1 %vm177_vm3, %v4513_v40  ;;  %9073 = vmatprep.mubr.msk.f32.mxu1 %vm9774_vm2, %v9773_v21 }
0x2188   :  { %9081 = vmatprep.subr.mxu1 %v9773_v21 }
0x218a   :  { %9074 = vmatmul.mubr.msk.f32.vlgmr.msra.gmra.mrb[48].mxu1 %vm177_vm3, %v4511_v43  ;;  %v8355_v43 = vld [vmem:[%s11177_s1 + $0x120] sm:$0xff] }
0x218b   :  { %9083 = vmatprep.mubr.msk.f32.mxu1 %vm9774_vm2, %v9773_v21 }
0x219a   :  { %4432 = vrot.lane.b32.xlu0 %v10458_v37, %s9784_s16 }
0x2211   :  { %v4272_v45 = vpop.xlane.xlu0 %4271 }
0x2212   :  { %9683 = vrcp.f32 %v4272_v45  ;;  %v8356_v45 = vld [vmem:[%s11177_s1 + $0x128] sm:$0xff] }
0x2215   :  { %v4433_v51 = vpop.permute.xlu0 %4432 }
0x221c   :  { %v9684_v47 = vpop.eup %9683 }
0x221d   :  { %v4278_v49 = vmul.f32 %v9684_v47, %v9680_v38  ;;  %v8357_v47 = vld [vmem:[%s11177_s1 + $0x130] sm:$0xff] }
0x221f   :  { %9059 = vmatmul.mubr.msk.f32.vlgmr.msra.gmra.mrb[48].mxu0 %vm177_vm3, %v4278_v49  ;;  %v9477_v49 = vpack.c.bf16 %v8356_v45, %v8355_v43 }
0x2220   :  { %9067 = vmatpush3.xpose.msk.msra.mxu0 %vm177_vm3, %v4435_v36  ;;  %9068 = vmatprep.mubr.msk.f32.mxu0 %vm9774_vm2, %v9773_v21 }
0x2221   :  { %9076 = vmatprep.subr.mxu0 %v9773_v21 }
0x2223   :  { %9069 = vmatmul.mubr.msk.f32.vlgmr.msra.gmra.mrb[50].mxu0 %vm177_vm3, %v4433_v51  ;;  %v8358_v51 = vld [vmem:[%s11177_s1 + $0x138] sm:$0xff] }
0x2224   :  { %9078 = vmatprep.mubr.msk.f32.mxu0 %vm9774_vm2, %v9773_v21 }
0x2259   :  { %v4428_v37 = vpop.f32.mrb[46].mxu1 }
0x225a   :  { %v9065_v52 = vpop.f32.mrb[47].mxu1 }
0x225b   :  { %v8359_v52 = vld [vmem:[%s11177_s1 + $0x140] sm:$0xff] }
0x225d   :  { %v4584_v30 = vpop.f32.mrb[48].mxu1 }
0x225e   :  { %v9075_v59 = vpop.f32.mrb[49].mxu1  ;;  %v4591_v53 = vsel %vm177_vm3, %v4584_v30, -inf }
0x225f   :  { %4592 = vmax.xlane.f32.xlu1 %v4591_v53 }
0x2270   :  { %4610 = vrot.lane.b32.xlu1 %v10450_v8, %s9785_s17 }
0x2274   :  { %4764 = vrot.lane.b32.xlu1 %v4022_v17, %s9786_s18  ;;  %v9471_v17 = vpack.c.bf16 %v8307_v15, %v8306_v18  ;;  %v10700_v18 = vld [vmem:[%s11182_s5] ss:$0 sm:$0xff] }
0x2278   :  { %4766 = vrot.lane.b32.xlu1 %v4098_v22, %s9786_s18 }
0x227c   :  { %4774 = vrot.lane.b32.xlu1 %v4428_v37, %s9787_s19  ;;  %v9483_v37 = vpack.c.bf16 %v8358_v51, %v8357_v47 }
0x22ec   :  { %v4593_v54 = vpop.xlane.xlu1 %4592 }
0x22ed   :  { %v4595_v55 = vsub.f32 %v4584_v30, %v4593_v54  ;;  %v8360_v30 = vld [vmem:[%s11177_s1 + $0x148] sm:$0xff] }
0x22ee   :  { %v9489_v59 = vpack.c.bf16 %v8360_v30, %v8359_v52 }
0x22ef   :  { %v4598_v56 = vmul.f32 1.442695, %v4595_v55 }
0x22f0   :  { %v4611_v46 = vpop.permute.xlu1 %4610 }
0x22f1   :  { %9685 = vpow2.f32 %v4598_v56  ;;  %9077 = vmatpush3.msra.mxu0 %v4611_v46 }
0x22f2   :  { %v4352_v61 = vpop.f32.mrb[48].mxu0 }
0x22f3   :  { %v9060_v57 = vpop.f32.mrb[49].mxu0 }
0x22f4   :  { %v4765_v23 = vpop.permute.xlu1 %4764 }
0x22f5   :  { %v4786_v29 = vsel %vm177_vm3, %v10508_v48, %v4765_v23  ;;  %v8348_v48 = vld [vmem:[%s11181_s4 + $0x2] ss:$0 sm:$0xff] }
0x22f6   :  { %v4506_v58 = vpop.f32.mrb[50].mxu0 }
0x22f7   :  { %v9070_v60 = vpop.f32.mrb[51].mxu0  ;;  %v4588_v62 = vsel %vm177_vm3, %v4506_v58, -inf }
0x22f8   :  { %4589 = vmax.xlane.f32.xlu0 %v4588_v62  ;;  %v4767_v24 = vpop.permute.xlu1 %4766 }
0x22f9   :  { %v4787_v31 = vsel %vm177_vm3, %v10510_v44, %v4767_v24  ;;  %v8373_v24 = vld [vmem:[%s11179_s2 + $0x3] ss:$0 sm:$0xff] }
0x22fb   :  { %v9686_v8 = vpop.eup %9685 }
0x22fc   :  { %v4603_v63 = vsel %vm177_vm3, %v9686_v8, 0.0  ;;  %v4775_v50 = vpop.permute.xlu1 %4774 }
0x22fd   :  { %4604 = vadd.xlane.f32.xlu0 %v4603_v63  ;;  %v4789_v26 = vsel %vm1521_vm5, %v4787_v31, %v4775_v50  ;;  %v8362_v63 = vld [vmem:[%s11177_s1 + $0x158] sm:$0xff] }
0x2385   :  { %v4590_v0 = vpop.xlane.xlu0 %4589 }
0x2386   :  { %v4594_v1 = vsub.f32 %v4506_v58, %v4590_v0 }
0x2388   :  { %v4596_v3 = vmul.f32 1.442695, %v4594_v1  ;;  %v8363_v1 = vld [vmem:[%s11177_s1 + $0x160] sm:$0xff] }
0x238a   :  { %9687 = vpow2.f32 %v4596_v3  ;;  %v4605_v6 = vpop.xlane.xlu0 %4604  ;;  %v8364_v3 = vld [vmem:[%s11177_s1 + $0x168] sm:$0xff] }
0x238b   :  { %9689 = vrcp.f32 %v4605_v6  ;;  %v8366_v6 = vld [vmem:[%s11177_s1 + $0x178] sm:$0xff] }
0x2394   :  { %v9688_v4 = vpop.eup %9687 }
0x2395   :  { %v4600_v5 = vsel %vm177_vm3, %v9688_v4, 0.0  ;;  %v9690_v35 = vpop.eup %9689 }
0x2396   :  { %4601 = vadd.xlane.f32.xlu0 %v4600_v5  ;;  %v4609_v11 = vmul.f32 %v9690_v35, %v9686_v8  ;;  %v8361_v8 = vld [vmem:[%s11177_s1 + $0x150] sm:$0xff] }
0x2397   :  { %v9495_v0 = vpack.c.bf16 %v8362_v63, %v8361_v8  ;;  %v8365_v5 = vld [vmem:[%s11177_s1 + $0x170] sm:$0xff] }
0x23ac   :  { %4686 = vrot.lane.b32.xlu0 %v10448_v28, %s9785_s17  ;;  %v8304_v28 = vld [vmem:[%s11180_s3 + $0x40] sm:$0xff] }
0x23ad   :  { %v9465_v16 = vpack.c.bf16 %v8305_v14, %v8304_v28 }
0x23af   :  { %9467 = vmatprep.subr.msk.bf16.mxu0 %vm9837_vm1, %v9465_v16 }
0x23b0   :  { %4772 = vrot.lane.b32.xlu0 %v4352_v61, %s9787_s19 }
0x2423   :  { %v4602_v7 = vpop.xlane.xlu0 %4601 }
0x2424   :  { %9691 = vrcp.f32 %v4602_v7  ;;  %v9507_v7 = vpack.c.bf16 %v8366_v6, %v8365_v5 }
0x2427   :  { %v4687_v9 = vpop.permute.xlu0 %4686 }
0x2428   :  { %9082 = vmatpush3.msra.mxu1 %v4687_v9 }
0x2429   :  { %9084 = vmatmul.mubr.msk.f32.vlgmr.msra.gmra.mrb[50].mxu1 %vm177_vm3, %v4609_v11  ;;  %9479 = vmatprep.subr.msk.bf16.mxu1 %vm9837_vm1, %v9477_v49 }
0x242b   :  { %v4773_v27 = vpop.permute.xlu0 %4772 }
0x242c   :  { %v4788_v32 = vsel %vm1521_vm5, %v4786_v29, %v4773_v27 }
0x242e   :  { %v9692_v12 = vpop.eup %9691 }
0x242f   :  { %v4608_v13 = vmul.f32 %v9692_v12, %v9688_v4  ;;  %9482 = vmatpush3.bf16.xpose.msk.msra.mxu1 %vm9837_vm1, %v9477_v49  ;;  %v9501_v4 = vpack.c.bf16 %v8364_v3, %v8363_v1 }
0x2430   :  { %9485 = vmatprep.subr.msk.bf16.mxu1 %vm9837_vm1, %v9483_v37 }
0x2431   :  { %9079 = vmatmul.mubr.msk.f32.vlgmr.msra.gmra.mrb[52].mxu0 %vm177_vm3, %v4608_v13 }
0x2432   :  { %9470 = vmatpush3.bf16.xpose.msk.msra.mxu0 %vm9837_vm1, %v9465_v16 }
0x2433   :  { %9473 = vmatprep.subr.msk.bf16.mxu0 %vm9837_vm1, %v9471_v17 }
0x2437   :  { %9488 = vmatpush3.bf16.xpose.msk.msra.mxu1 %vm9837_vm1, %v9483_v37 }
0x2438   :  { %9491 = vmatprep.subr.msk.bf16.mxu1 %vm9837_vm1, %v9489_v59 }
0x243a   :  { %9476 = vmatpush3.bf16.xpose.msk.msra.mxu0 %vm9837_vm1, %v9471_v17 }
0x243b   :  { %9124 = vmatprep.subr.mxu0 %v9773_v21 }
0x243f   :  { %9494 = vmatpush3.bf16.xpose.msk.msra.mxu1 %vm9837_vm1, %v9489_v59 }
0x2440   :  { %9497 = vmatprep.subr.msk.bf16.mxu1 %vm9837_vm1, %v9495_v0 }
0x2447   :  { %9500 = vmatpush3.bf16.xpose.msk.msra.mxu1 %vm9837_vm1, %v9495_v0 }
0x2448   :  { %9503 = vmatprep.subr.msk.bf16.mxu1 %vm9837_vm1, %v9501_v4 }
0x244f   :  { %9506 = vmatpush3.bf16.xpose.msk.msra.mxu1 %vm9837_vm1, %v9501_v4 }
0x2450   :  { %9509 = vmatprep.subr.msk.bf16.mxu1 %vm9837_vm1, %v9507_v7 }
0x2457   :  { %9512 = vmatpush3.bf16.xpose.msk.msra.mxu1 %vm9837_vm1, %v9507_v7 }
0x2458   :  { %9169 = vmatprep.subr.mxu1 %v9773_v21 }
0x24fc   :  { %v4758_v25 = vpop.f32.mrb[50].mxu1 }
0x24fd   :  { %4782 = vrot.lane.b32.xlu1 %v4758_v25, %s9788_s28  ;;  %v9085_v19 = vpop.f32.mrb[51].mxu1 }
0x24fe   :  { %v10706_v19 = vld [vmem:[%s11183_s6] ss:$0 sm:$0xff] }
0x2504   :  { %v4682_v20 = vpop.f32.mrb[52].mxu0 }
0x2505   :  { %4780 = vrot.lane.b32.xlu0 %v4682_v20, %s9788_s28  ;;  %v9080_v22 = vpop.f32.mrb[53].mxu0 }
0x256f   :  { %v4783_v10 = vpop.permute.xlu1 %4782 }
0x2570   :  { %v4791_v36 = vsel %vm1524_vm4, %v4789_v26, %v4783_v10 }
0x2577   :  { %v4781_v33 = vpop.permute.xlu0 %4780 }
0x2578   :  { %v4790_v34 = vsel %vm1524_vm4, %v4788_v32, %v4781_v33 }
0x2579   :  { %9094 = vmatprep.mubr.msk.f32.mxu0 %vm54_vm0, %v4790_v34 }
0x257a   :  { %9095 = vmatmul.mubr.msk.f32.vlgmr.msra.gmra.mrb[54].mxu0 %vm54_vm0, %v4791_v36 }
0x257b   :  { %9126 = vmatprep.mubr.msk.f32.mxu0 %vm9774_vm2, %v9773_v21 }
0x264d   :  { %v9096_v44 = vpop.f32.mrb[54].mxu0 }
0x264e   :  { %v4888_v38 = vadd.f32 %v9096_v44, %v8348_v48  ;;  %v4882_v39 = vpop.f32.mrb[55].mxu0 }
0x264f   :  { %v4883_v40 = vadd.f32 %v8348_v48, %v4882_v39 }
0x2650   :  { %v4894_v41 = vsel %vm54_vm0, %v4888_v38, 0.0 }
0x2651   :  { %4895 = vadd.xlane.f32.xlu1 %v4894_v41  ;;  %v4891_v42 = vsel %vm54_vm0, %v4883_v40, 0.0 }
0x2652   :  { %4892 = vadd.xlane.f32.xlu0 %v4891_v42 }
0x26de   :  { %v4896_v53 = vpop.xlane.xlu1 %4895 }
0x26df   :  { %v4898_v54 = vmul.f32 0.03125, %v4896_v53  ;;  %v4893_v55 = vpop.xlane.xlu0 %4892 }
0x26e0   :  { %v4897_v56 = vmul.f32 0.03125, %v4893_v55 }
0x26e1   :  { %v4900_v46 = vsub.f32 %v4888_v38, %v4898_v54 }
0x26e2   :  { %v4899_v61 = vsub.f32 %v4883_v40, %v4897_v56 }
0x26e3   :  { %v4902_v60 = vmul.f32 %v4900_v46, %v4900_v46 }
0x26e4   :  { %v4901_v57 = vmul.f32 %v4899_v61, %v4899_v61 }
0x26e5   :  { %v4906_v62 = vsel %vm54_vm0, %v4902_v60, 0.0 }
0x26e6   :  { %v4903_v58 = vsel %vm54_vm0, %v4901_v57, 0.0 }
0x26e7   :  { %4904 = vadd.xlane.f32.xlu0 %v4903_v58 }
0x26eb   :  { %4907 = vadd.xlane.f32.xlu0 %v4906_v62 }
0x2774   :  { %v4905_v35 = vpop.xlane.xlu0 %4904 }
0x2775   :  { %v4909_v9 = vmul.f32 0.03125, %v4905_v35 }
0x2777   :  { %v4911_v11 = vadd.f32 1e-05, %v4909_v9 }
0x2778   :  { %v4908_v12 = vpop.xlane.xlu0 %4907 }
0x2779   :  { %9693 = vrsqrt.f32 %v4911_v11  ;;  %v4910_v13 = vmul.f32 0.03125, %v4908_v12 }
0x277b   :  { %v4912_v28 = vadd.f32 1e-05, %v4910_v13 }
0x277d   :  { %9695 = vrsqrt.f32 %v4912_v28 }
0x2783   :  { %v9694_v14 = vpop.eup %9693 }
0x2784   :  { %v4915_v16 = vmul.f32 %v9694_v14, %v4899_v61 }
0x2786   :  { %v4917_v15 = vmul.f32 %v10700_v18, %v4915_v16 }
0x2787   :  { %v9696_v17 = vpop.eup %9695 }
0x2788   :  { %v4916_v25 = vmul.f32 %v9696_v17, %v4900_v46  ;;  %v4919_v20 = vadd.f32 %v10706_v19, %v4917_v15 }
0x278a   :  { %9121 = vmatprep.mubr.msk.f32.mxu1 %vm54_vm0, %v4919_v20  ;;  %v4918_v22 = vmul.f32 %v10700_v18, %v4916_v25 }
0x278c   :  { %v4920_v23 = vadd.f32 %v10706_v19, %v4918_v22 }
0x278e   :  { %9122 = vmatmul.mubr.msk.f32.vlgmr.msra.gmra.mrb[52].mxu1 %vm54_vm0, %v4920_v23 }
0x278f   :  { %9171 = vmatprep.mubr.msk.f32.mxu1 %vm9774_vm2, %v9773_v21 }
0x2861   :  { %v9123_v50 = vpop.f32.mrb[52].mxu1 }
0x2862   :  { %v10718_v27 = vadd.f32 %v9123_v50, %v8373_v24  ;;  %v5057_v29 = vpop.f32.mrb[53].mxu1 }
0x2863   :  { %v10720_v10 = vadd.f32 %v8373_v24, %v5057_v29 }
0x2864   :  { %5147 = vrot.lane.b32.xlu0 %v10718_v27, %s9775_s8  ;;  %v10737_v26 = vmul.f32 0.35355338, %v10718_v27 }
0x2865   :  { %5069 = vrot.lane.b32.xlu1 %v10720_v10, %s9775_s8  ;;  %v10728_v32 = vmul.f32 0.35355338, %v10720_v10 }
0x28d6   :  { %v5148_v33 = vpop.permute.xlu0 %5147 }
0x28d7   :  { %v5070_v31 = vpop.permute.xlu1 %5069 }
0x28d8   :  { %9125 = vmatpush3.xpose.msk.msra.mxu0 %vm177_vm3, %v5070_v31 }
0x28d9   :  { %9129 = vmatprep.subr.mxu0 %v9773_v21 }
0x28db   :  { %9127 = vmatmul.mubr.msk.f32.vlgmr.msra.gmra.mrb[56].mxu0 %vm177_vm3, %v10728_v32 }
0x28dc   :  { %9130 = vmatpush3.xpose.msk.msra.mxu0 %vm177_vm3, %v5148_v33  ;;  %9131 = vmatprep.mubr.msk.f32.mxu0 %vm9774_vm2, %v9773_v21 }
0x28dd   :  { %9134 = vmatprep.subr.mxu0 %v9773_v21 }
0x28df   :  { %9132 = vmatmul.mubr.msk.f32.vlgmr.msra.gmra.mrb[58].mxu0 %vm177_vm3, %v10737_v26 }
0x28e0   :  { %9136 = vmatprep.mubr.msk.f32.mxu0 %vm9774_vm2, %v9773_v21 }
0x29ae   :  { %v5142_v34 = vpop.f32.mrb[56].mxu0 }
0x29af   :  { %v9128_v36 = vpop.f32.mrb[57].mxu0  ;;  %v5224_v48 = vsel %vm177_vm3, %v5142_v34, -inf }
0x29b0   :  { %5225 = vmax.xlane.f32.xlu1 %v5224_v48 }
0x29b2   :  { %v5220_v44 = vpop.f32.mrb[58].mxu0 }
0x29b3   :  { %v9133_v38 = vpop.f32.mrb[59].mxu0  ;;  %v5227_v39 = vsel %vm177_vm3, %v5220_v44, -inf }
0x29b4   :  { %5228 = vmax.xlane.f32.xlu0 %v5227_v39 }
0x29c1   :  { %5246 = vrot.lane.b32.xlu1 %v10720_v10, %s9776_s0 }
0x2a3d   :  { %v5226_v40 = vpop.xlane.xlu1 %5225 }
0x2a3e   :  { %v5230_v41 = vsub.f32 %v5142_v34, %v5226_v40 }
0x2a40   :  { %v5232_v42 = vmul.f32 1.442695, %v5230_v41 }
0x2a41   :  { %v5247_v43 = vpop.permute.xlu1 %5246  ;;  %v5229_v45 = vpop.xlane.xlu0 %5228 }
0x2a42   :  { %9697 = vpow2.f32 %v5232_v42  ;;  %v5231_v47 = vsub.f32 %v5220_v44, %v5229_v45  ;;  %9135 = vmatpush3.msra.mxu0 %v5247_v43 }
0x2a43   :  { %9139 = vmatprep.subr.mxu0 %v9773_v21 }
0x2a44   :  { %v5234_v49 = vmul.f32 1.442695, %v5231_v47 }
0x2a46   :  { %9699 = vpow2.f32 %v5234_v49 }
0x2a4c   :  { %v9698_v51 = vpop.eup %9697 }
0x2a4d   :  { %v5236_v37 = vsel %vm177_vm3, %v9698_v51, 0.0 }
0x2a4e   :  { %5237 = vadd.xlane.f32.xlu1 %v5236_v37 }
0x2a50   :  { %v9700_v52 = vpop.eup %9699 }
0x2a51   :  { %v5239_v30 = vsel %vm177_vm3, %v9700_v52, 0.0 }
0x2a52   :  { %5240 = vadd.xlane.f32.xlu0 %v5239_v30 }
0x2a5f   :  { %5400 = vrot.lane.b32.xlu1 %v10720_v10, %s9777_s9 }
0x2a63   :  { %5398 = vrot.lane.b32.xlu1 %v10728_v32, %s9778_s10 }
0x2a67   :  { %5476 = vrot.lane.b32.xlu1 %v10737_v26, %s9778_s10 }
0x2a68   :  { %5322 = vrot.lane.b32.xlu0 %v10718_v27, %s9776_s0 }
0x2a6c   :  { %5478 = vrot.lane.b32.xlu0 %v10718_v27, %s9777_s9 }
0x2adb   :  { %v5238_v59 = vpop.xlane.xlu1 %5237 }
0x2adc   :  { %9701 = vrcp.f32 %v5238_v59 }
0x2adf   :  { %v5241_v53 = vpop.xlane.xlu0 %5240  ;;  %v5401_v61 = vpop.permute.xlu1 %5400 }
0x2ae0   :  { %9703 = vrcp.f32 %v5241_v53 }
0x2ae3   :  { %v5323_v56 = vpop.permute.xlu0 %5322  ;;  %v5399_v58 = vpop.permute.xlu1 %5398 }
0x2ae6   :  { %v9702_v54 = vpop.eup %9701 }
0x2ae7   :  { %v5244_v55 = vmul.f32 %v9702_v54, %v9698_v51  ;;  %v5479_v60 = vpop.permute.xlu0 %5478  ;;  %v5477_v62 = vpop.permute.xlu1 %5476 }
0x2ae9   :  { %9137 = vmatmul.mubr.msk.f32.vlgmr.msra.gmra.mrb[60].mxu0 %vm177_vm3, %v5244_v55 }
0x2aea   :  { %v9704_v46 = vpop.eup %9703  ;;  %9140 = vmatpush3.msra.mxu0 %v5323_v56  ;;  %9141 = vmatprep.mubr.msk.f32.mxu0 %vm9774_vm2, %v9773_v21 }
0x2aeb   :  { %v5245_v57 = vmul.f32 %v9704_v46, %v9700_v52  ;;  %9144 = vmatprep.subr.mxu0 %v9773_v21 }
0x2aed   :  { %9142 = vmatmul.mubr.msk.f32.vlgmr.msra.gmra.mrb[62].mxu0 %vm177_vm3, %v5245_v57 }
0x2aee   :  { %9146 = vmatprep.mubr.msk.f32.mxu0 %vm9774_vm2, %v9773_v21 }
0x2af1   :  { %9145 = vmatpush3.xpose.msk.msra.mxu0 %vm177_vm3, %v5401_v61 }
0x2af2   :  { %9149 = vmatprep.subr.mxu0 %v9773_v21 }
0x2af4   :  { %9147 = vmatmul.mubr.msk.f32.vlgmr.msra.gmra.mrb[64].mxu0 %vm177_vm3, %v5399_v58 }
0x2af5   :  { %9150 = vmatpush3.xpose.msk.msra.mxu0 %vm177_vm3, %v5479_v60  ;;  %9151 = vmatprep.mubr.msk.f32.mxu0 %vm9774_vm2, %v9773_v21 }
0x2af6   :  { %9154 = vmatprep.subr.mxu0 %v9773_v21 }
0x2af8   :  { %9152 = vmatmul.mubr.msk.f32.vlgmr.msra.gmra.mrb[66].mxu0 %vm177_vm3, %v5477_v62 }
0x2af9   :  { %9156 = vmatprep.mubr.msk.f32.mxu0 %vm9774_vm2, %v9773_v21 }
0x2bbc   :  { %v10778_v8 = vpop.f32.mrb[60].mxu0 }
0x2bbd   :  { %v9138_v63 = vpop.f32.mrb[61].mxu0 }
0x2bc0   :  { %v10780_v0 = vpop.f32.mrb[62].mxu0 }
0x2bc1   :  { %v9143_v1 = vpop.f32.mrb[63].mxu0 }
0x2bc7   :  { %v5472_v3 = vpop.f32.mrb[64].mxu0 }
0x2bc8   :  { %v9148_v4 = vpop.f32.mrb[65].mxu0  ;;  %v5554_v5 = vsel %vm177_vm3, %v5472_v3, -inf }
0x2bc9   :  { %5555 = vmax.xlane.f32.xlu0 %v5554_v5 }
0x2bcb   :  { %v5550_v6 = vpop.f32.mrb[66].mxu0 }
0x2bcc   :  { %v9153_v7 = vpop.f32.mrb[67].mxu0  ;;  %v5557_v35 = vsel %vm177_vm3, %v5550_v6, -inf }
0x2bcd   :  { %5558 = vmax.xlane.f32.xlu1 %v5557_v35 }
0x2bde   :  { %5576 = vrot.lane.b32.xlu1 %v10720_v10, %s9779_s11 }
0x2be2   :  { %5730 = vrot.lane.b32.xlu1 %v10720_v10, %s9780_s12 }
0x2be6   :  { %5808 = vrot.lane.b32.xlu1 %v10718_v27, %s9780_s12 }
0x2bea   :  { %5806 = vrot.lane.b32.xlu1 %v10737_v26, %s9781_s13 }
0x2c56   :  { %v5556_v9 = vpop.xlane.xlu0 %5555 }
0x2c57   :  { %v5560_v11 = vsub.f32 %v5472_v3, %v5556_v9 }
0x2c59   :  { %v5562_v12 = vmul.f32 1.442695, %v5560_v11 }
0x2c5a   :  { %v5559_v13 = vpop.xlane.xlu1 %5558 }
0x2c5b   :  { %9705 = vpow2.f32 %v5562_v12  ;;  %v5561_v20 = vsub.f32 %v5550_v6, %v5559_v13 }
0x2c5d   :  { %v5564_v22 = vmul.f32 1.442695, %v5561_v20 }
0x2c5e   :  { %v5577_v28 = vpop.permute.xlu1 %5576 }
0x2c5f   :  { %9155 = vmatpush3.msra.mxu0 %v5577_v28  ;;  %9707 = vpow2.f32 %v5564_v22 }
0x2c60   :  { %9159 = vmatprep.subr.mxu0 %v9773_v21 }
0x2c62   :  { %v5731_v14 = vpop.permute.xlu1 %5730 }
0x2c65   :  { %v9706_v16 = vpop.eup %9705 }
0x2c66   :  { %v5809_v15 = vpop.permute.xlu1 %5808  ;;  %v5566_v17 = vsel %vm177_vm3, %v9706_v16, 0.0 }
0x2c67   :  { %5567 = vadd.xlane.f32.xlu0 %v5566_v17  ;;  %9170 = vmatpush3.xpose.msk.msra.mxu1 %vm177_vm3, %v5809_v15 }
0x2c68   :  { %9179 = vmatprep.subr.mxu1 %v9773_v21 }
0x2c69   :  { %v9708_v23 = vpop.eup %9707 }
0x2c6a   :  { %v5807_v25 = vpop.permute.xlu1 %5806  ;;  %v5569_v24 = vsel %vm177_vm3, %v9708_v23, 0.0 }
0x2c6b   :  { %9172 = vmatmul.mubr.msk.f32.vlgmr.msra.gmra.mrb[54].mxu1 %vm177_vm3, %v5807_v25 }
0x2c6c   :  { %9181 = vmatprep.mubr.msk.f32.mxu1 %vm9774_vm2, %v9773_v21 }
0x2c7d   :  { %5652 = vrot.lane.b32.xlu0 %v10718_v27, %s9779_s11 }
0x2c9c   :  { %5570 = vadd.xlane.f32.xlu0 %v5569_v24 }
0x2cb2   :  { %5728 = vrot.lane.b32.xlu0 %v10728_v32, %s9781_s13 }
0x2cf4   :  { %v5568_v50 = vpop.xlane.xlu0 %5567 }
0x2cf5   :  { %9709 = vrcp.f32 %v5568_v50 }
0x2cf8   :  { %v5653_v33 = vpop.permute.xlu0 %5652 }
0x2cff   :  { %v9710_v29 = vpop.eup %9709 }
0x2d00   :  { %v5574_v31 = vmul.f32 %v9710_v29, %v9706_v16 }
0x2d02   :  { %9157 = vmatmul.mubr.msk.f32.vlgmr.msra.gmra.mrb[68].mxu0 %vm177_vm3, %v5574_v31 }
0x2d03   :  { %9160 = vmatpush3.msra.mxu0 %v5653_v33  ;;  %9161 = vmatprep.mubr.msk.f32.mxu0 %vm9774_vm2, %v9773_v21 }
0x2d04   :  { %9164 = vmatprep.subr.mxu0 %v9773_v21 }
0x2d29   :  { %v5571_v34 = vpop.xlane.xlu0 %5570 }
0x2d2a   :  { %9711 = vrcp.f32 %v5571_v34 }
0x2d2d   :  { %v5729_v44 = vpop.permute.xlu0 %5728 }
0x2d34   :  { %v9712_v36 = vpop.eup %9711 }
0x2d35   :  { %v5575_v48 = vmul.f32 %v9712_v36, %v9708_v23 }
0x2d37   :  { %9162 = vmatmul.mubr.msk.f32.vlgmr.msra.gmra.mrb[70].mxu0 %vm177_vm3, %v5575_v48 }
0x2d38   :  { %9165 = vmatpush3.xpose.msk.msra.mxu0 %vm177_vm3, %v5731_v14  ;;  %9166 = vmatprep.mubr.msk.f32.mxu0 %vm9774_vm2, %v9773_v21 }
0x2d39   :  { %9174 = vmatprep.subr.mxu0 %v9773_v21 }
0x2d3b   :  { %9167 = vmatmul.mubr.msk.f32.vlgmr.msra.gmra.mrb[72].mxu0 %vm177_vm3, %v5729_v44 }
0x2d3c   :  { %9176 = vmatprep.mubr.msk.f32.mxu0 %vm9774_vm2, %v9773_v21 }
0x2d3e   :  { %v5880_v38 = vpop.f32.mrb[54].mxu1 }
0x2d3f   :  { %v9173_v39 = vpop.f32.mrb[55].mxu1  ;;  %v5887_v40 = vsel %vm177_vm3, %v5880_v38, -inf }
0x2d40   :  { %5888 = vmax.xlane.f32.xlu1 %v5887_v40 }
0x2d51   :  { %5906 = vrot.lane.b32.xlu1 %v10720_v10, %s9782_s14 }
0x2d55   :  { %6060 = vrot.lane.b32.xlu1 %v10720_v10, %s9783_s15 }
0x2d59   :  { %6138 = vrot.lane.b32.xlu1 %v10718_v27, %s9783_s15 }
0x2d5d   :  { %6136 = vrot.lane.b32.xlu1 %v10737_v26, %s9784_s16 }
0x2dcd   :  { %v5889_v41 = vpop.xlane.xlu1 %5888 }
0x2dce   :  { %v5891_v47 = vsub.f32 %v5880_v38, %v5889_v41  ;;  %v8369_v41 = vld [vmem:[%s11180_s3 + $0x68] sm:$0xff] }
0x2dd0   :  { %v5894_v49 = vmul.f32 1.442695, %v5891_v47 }
0x2dd1   :  { %v5907_v42 = vpop.permute.xlu1 %5906 }
0x2dd2   :  { %9175 = vmatpush3.msra.mxu0 %v5907_v42  ;;  %9713 = vpow2.f32 %v5894_v49 }
0x2dd3   :  { %9184 = vmatprep.subr.mxu0 %v9773_v21 }
0x2dd5   :  { %v5648_v43 = vpop.f32.mrb[68].mxu0  ;;  %v6061_v57 = vpop.permute.xlu1 %6060 }
0x2dd6   :  { %v9158_v45 = vpop.f32.mrb[69].mxu0 }
0x2dd7   :  { %v8371_v45 = vld [vmem:[%s11180_s3 + $0x78] sm:$0xff] }
0x2dd9   :  { %v6139_v62 = vpop.permute.xlu1 %6138 }
0x2ddc   :  { %v9714_v53 = vpop.eup %9713 }
0x2ddd   :  { %v5899_v26 = vsel %vm177_vm3, %v9714_v53, 0.0  ;;  %v6137_v3 = vpop.permute.xlu1 %6136 }
0x2e0a   :  { %v5724_v51 = vpop.f32.mrb[70].mxu0 }
0x2e0b   :  { %v9163_v37 = vpop.f32.mrb[71].mxu0 }
0x2e0e   :  { %v5802_v52 = vpop.f32.mrb[72].mxu0 }
0x2e0f   :  { %v9168_v30 = vpop.f32.mrb[73].mxu0  ;;  %v5884_v59 = vsel %vm177_vm3, %v5802_v52, -inf }
0x2e10   :  { %5885 = vmax.xlane.f32.xlu0 %v5884_v59 }
0x2e14   :  { %5900 = vadd.xlane.f32.xlu0 %v5899_v26 }
0x2e2a   :  { %5982 = vrot.lane.b32.xlu0 %v10718_v27, %s9782_s14 }
0x2e9d   :  { %v5886_v54 = vpop.xlane.xlu0 %5885 }
0x2e9e   :  { %v5890_v55 = vsub.f32 %v5802_v52, %v5886_v54 }
0x2ea0   :  { %v5892_v56 = vmul.f32 1.442695, %v5890_v55 }
0x2ea1   :  { %v5901_v46 = vpop.xlane.xlu0 %5900 }
0x2ea2   :  { %9715 = vpow2.f32 %v5892_v56 }
0x2ea3   :  { %9717 = vrcp.f32 %v5901_v46 }
0x2ea5   :  { %v5983_v61 = vpop.permute.xlu0 %5982 }
0x2ea6   :  { %9180 = vmatpush3.msra.mxu1 %v5983_v61 }
0x2ea7   :  { %9189 = vmatprep.subr.mxu1 %v9773_v21 }
0x2eac   :  { %v9716_v58 = vpop.eup %9715 }
0x2ead   :  { %v9718_v60 = vpop.eup %9717  ;;  %v5896_v63 = vsel %vm177_vm3, %v9716_v58, 0.0 }
0x2eae   :  { %v5905_v1 = vmul.f32 %v9718_v60, %v9714_v53  ;;  %5897 = vadd.xlane.f32.xlu0 %v5896_v63 }
0x2eb0   :  { %9182 = vmatmul.mubr.msk.f32.vlgmr.msra.gmra.mrb[56].mxu1 %vm177_vm3, %v5905_v1 }
0x2eb1   :  { %9190 = vmatpush3.xpose.msk.msra.mxu1 %vm177_vm3, %v6139_v62  ;;  %9191 = vmatprep.mubr.msk.f32.mxu1 %vm9774_vm2, %v9773_v21 }
0x2eb2   :  { %9199 = vmatprep.subr.mxu1 %v9773_v21 }
0x2eb4   :  { %9192 = vmatmul.mubr.msk.f32.vlgmr.msra.gmra.mrb[58].mxu1 %vm177_vm3, %v6137_v3 }
0x2eb5   :  { %9201 = vmatprep.mubr.msk.f32.mxu1 %vm9774_vm2, %v9773_v21 }
0x2ec4   :  { %6058 = vrot.lane.b32.xlu0 %v10728_v32, %s9784_s16 }
0x2f3b   :  { %v5898_v4 = vpop.xlane.xlu0 %5897 }
0x2f3c   :  { %9719 = vrcp.f32 %v5898_v4 }
0x2f3f   :  { %v6059_v7 = vpop.permute.xlu0 %6058 }
0x2f46   :  { %v9720_v5 = vpop.eup %9719 }
0x2f47   :  { %v5904_v6 = vmul.f32 %v9720_v5, %v9716_v58  ;;  %v8419_v5 = vld [vmem:[%s11177_s1 + $0x180] sm:$0xff] }
0x2f49   :  { %9177 = vmatmul.mubr.msk.f32.vlgmr.msra.gmra.mrb[74].mxu0 %vm177_vm3, %v5904_v6  ;;  %v8420_v6 = vld [vmem:[%s11177_s1 + $0x188] sm:$0xff] }
0x2f4a   :  { %9185 = vmatpush3.xpose.msk.msra.mxu0 %vm177_vm3, %v6061_v57  ;;  %9186 = vmatprep.mubr.msk.f32.mxu0 %vm9774_vm2, %v9773_v21 }
0x2f4b   :  { %9194 = vmatprep.subr.mxu0 %v9773_v21 }
0x2f4d   :  { %9187 = vmatmul.mubr.msk.f32.vlgmr.msra.gmra.mrb[76].mxu0 %vm177_vm3, %v6059_v7  ;;  %v8421_v7 = vld [vmem:[%s11177_s1 + $0x190] sm:$0xff] }
0x2f4e   :  { %9196 = vmatprep.mubr.msk.f32.mxu0 %vm9774_vm2, %v9773_v21 }
0x2f83   :  { %v6054_v32 = vpop.f32.mrb[56].mxu1 }
0x2f84   :  { %v9183_v35 = vpop.f32.mrb[57].mxu1 }
0x2f85   :  { %v8422_v35 = vld [vmem:[%s11177_s1 + $0x198] sm:$0xff] }
0x2f87   :  { %v6210_v9 = vpop.f32.mrb[58].mxu1 }
0x2f88   :  { %v9193_v11 = vpop.f32.mrb[59].mxu1  ;;  %v6217_v12 = vsel %vm177_vm3, %v6210_v9, -inf }
0x2f89   :  { %6218 = vmax.xlane.f32.xlu1 %v6217_v12  ;;  %v8423_v11 = vld [vmem:[%s11177_s1 + $0x1a0] sm:$0xff]  ;;  %v8424_v12 = vld [vmem:[%s11177_s1 + $0x1a8] sm:$0xff] }
0x2f9a   :  { %6236 = vrot.lane.b32.xlu1 %v10720_v10, %s9785_s17 }
0x2f9e   :  { %6390 = vrot.lane.b32.xlu1 %v5648_v43, %s9786_s18  ;;  %v8370_v43 = vld [vmem:[%s11180_s3 + $0x70] sm:$0xff] }
0x2f9f   :  { %v9519_v47 = vpack.c.bf16 %v8371_v45, %v8370_v43 }
0x2fa2   :  { %6392 = vrot.lane.b32.xlu1 %v5724_v51, %s9786_s18 }
0x2fa6   :  { %6400 = vrot.lane.b32.xlu1 %v6054_v32, %s9787_s19  ;;  %v9525_v32 = vpack.c.bf16 %v8420_v6, %v8419_v5 }
0x3016   :  { %v6219_v13 = vpop.xlane.xlu1 %6218 }
0x3017   :  { %v6221_v28 = vsub.f32 %v6210_v9, %v6219_v13  ;;  %v9531_v9 = vpack.c.bf16 %v8422_v35, %v8421_v7  ;;  %v9537_v13 = vpack.c.bf16 %v8424_v12, %v8423_v11 }
0x3019   :  { %v6224_v14 = vmul.f32 1.442695, %v6221_v28 }
0x301a   :  { %v6237_v16 = vpop.permute.xlu1 %6236 }
0x301b   :  { %9721 = vpow2.f32 %v6224_v14  ;;  %9195 = vmatpush3.msra.mxu0 %v6237_v16 }
0x301c   :  { %v5978_v15 = vpop.f32.mrb[74].mxu0 }
0x301d   :  { %v9178_v17 = vpop.f32.mrb[75].mxu0 }
0x301e   :  { %v6391_v30 = vpop.permute.xlu1 %6390 }
0x301f   :  { %v6412_v54 = vsel %vm177_vm3, %v10778_v8, %v6391_v30  ;;  %v8412_v8 = vld [vmem:[%s11181_s4 + $0x3] ss:$0 sm:$0xff] }
0x3020   :  { %v6132_v25 = vpop.f32.mrb[76].mxu0 }
0x3021   :  { %v9188_v20 = vpop.f32.mrb[77].mxu0  ;;  %v6214_v22 = vsel %vm177_vm3, %v6132_v25, -inf }
0x3022   :  { %6215 = vmax.xlane.f32.xlu0 %v6214_v22  ;;  %v6393_v59 = vpop.permute.xlu1 %6392 }
0x3023   :  { %v6413_v56 = vsel %vm177_vm3, %v10780_v0, %v6393_v59  ;;  %v8437_v59 = vld [vmem:[%s11179_s2 + $0x4] ss:$0 sm:$0xff] }
0x3025   :  { %v9722_v10 = vpop.eup %9721 }
0x3026   :  { %v6229_v23 = vsel %vm177_vm3, %v9722_v10, 0.0  ;;  %v6401_v53 = vpop.permute.xlu1 %6400 }
0x3027   :  { %6230 = vadd.xlane.f32.xlu0 %v6229_v23  ;;  %v6415_v57 = vsel %vm1521_vm5, %v6413_v56, %v6401_v53 }
0x30af   :  { %v6216_v24 = vpop.xlane.xlu0 %6215 }
0x30b0   :  { %v6220_v50 = vsub.f32 %v6132_v25, %v6216_v24  ;;  %v8425_v24 = vld [vmem:[%s11177_s1 + $0x1b0] sm:$0xff] }
0x30b2   :  { %v6222_v29 = vmul.f32 1.442695, %v6220_v50  ;;  %v8426_v50 = vld [vmem:[%s11177_s1 + $0x1b8] sm:$0xff] }
0x30b4   :  { %9723 = vpow2.f32 %v6222_v29  ;;  %v6231_v34 = vpop.xlane.xlu0 %6230  ;;  %v9543_v29 = vpack.c.bf16 %v8426_v50, %v8425_v24 }
0x30b5   :  { %9725 = vrcp.f32 %v6231_v34 }
0x30be   :  { %v9724_v31 = vpop.eup %9723 }
0x30bf   :  { %v6226_v33 = vsel %vm177_vm3, %v9724_v31, 0.0  ;;  %v9726_v48 = vpop.eup %9725 }
0x30c0   :  { %6227 = vadd.xlane.f32.xlu0 %v6226_v33  ;;  %v6235_v44 = vmul.f32 %v9726_v48, %v9722_v10  ;;  %v8428_v33 = vld [vmem:[%s11177_s1 + $0x1c8] sm:$0xff]  ;;  %v8430_v48 = vld [vmem:[%s11177_s1 + $0x1d8] sm:$0xff] }
0x30d6   :  { %6312 = vrot.lane.b32.xlu0 %v10718_v27, %s9785_s17  ;;  %v8368_v27 = vld [vmem:[%s11180_s3 + $0x60] sm:$0xff] }
0x30d7   :  { %v9513_v42 = vpack.c.bf16 %v8369_v41, %v8368_v27 }
0x30d9   :  { %9515 = vmatprep.subr.msk.bf16.mxu0 %vm9837_vm1, %v9513_v42 }
0x30da   :  { %6398 = vrot.lane.b32.xlu0 %v5978_v15, %s9787_s19 }
0x314d   :  { %v6228_v36 = vpop.xlane.xlu0 %6227 }
0x314e   :  { %9727 = vrcp.f32 %v6228_v36  ;;  %v8429_v36 = vld [vmem:[%s11177_s1 + $0x1d0] sm:$0xff] }
0x3151   :  { %v6313_v38 = vpop.permute.xlu0 %6312 }
0x3152   :  { %9200 = vmatpush3.msra.mxu1 %v6313_v38 }
0x3153   :  { %9202 = vmatmul.mubr.msk.f32.vlgmr.msra.gmra.mrb[60].mxu1 %vm177_vm3, %v6235_v44  ;;  %9527 = vmatprep.subr.msk.bf16.mxu1 %vm9837_vm1, %v9525_v32  ;;  %v9555_v44 = vpack.c.bf16 %v8430_v48, %v8429_v36 }
0x3155   :  { %v6399_v26 = vpop.permute.xlu0 %6398 }
0x3156   :  { %v6414_v46 = vsel %vm1521_vm5, %v6412_v54, %v6399_v26 }
0x3158   :  { %v9728_v39 = vpop.eup %9727 }
0x3159   :  { %v6234_v40 = vmul.f32 %v9728_v39, %v9724_v31  ;;  %9530 = vmatpush3.bf16.xpose.msk.msra.mxu1 %vm9837_vm1, %v9525_v32  ;;  %v8427_v31 = vld [vmem:[%s11177_s1 + $0x1c0] sm:$0xff] }
0x315a   :  { %9533 = vmatprep.subr.msk.bf16.mxu1 %vm9837_vm1, %v9531_v9  ;;  %v9549_v34 = vpack.c.bf16 %v8428_v33, %v8427_v31 }
0x315b   :  { %9197 = vmatmul.mubr.msk.f32.vlgmr.msra.gmra.mrb[78].mxu0 %vm177_vm3, %v6234_v40 }
0x315c   :  { %9518 = vmatpush3.bf16.xpose.msk.msra.mxu0 %vm9837_vm1, %v9513_v42 }
0x315d   :  { %9521 = vmatprep.subr.msk.bf16.mxu0 %vm9837_vm1, %v9519_v47 }
0x3161   :  { %9536 = vmatpush3.bf16.xpose.msk.msra.mxu1 %vm9837_vm1, %v9531_v9 }
0x3162   :  { %9539 = vmatprep.subr.msk.bf16.mxu1 %vm9837_vm1, %v9537_v13 }
0x3164   :  { %9524 = vmatpush3.bf16.xpose.msk.msra.mxu0 %vm9837_vm1, %v9519_v47 }
0x3165   :  { %9242 = vmatprep.subr.mxu0 %v9773_v21 }
0x3169   :  { %9542 = vmatpush3.bf16.xpose.msk.msra.mxu1 %vm9837_vm1, %v9537_v13 }
0x316a   :  { %9545 = vmatprep.subr.msk.bf16.mxu1 %vm9837_vm1, %v9543_v29 }
0x3171   :  { %9548 = vmatpush3.bf16.xpose.msk.msra.mxu1 %vm9837_vm1, %v9543_v29 }
0x3172   :  { %9551 = vmatprep.subr.msk.bf16.mxu1 %vm9837_vm1, %v9549_v34 }
0x3179   :  { %9554 = vmatpush3.bf16.xpose.msk.msra.mxu1 %vm9837_vm1, %v9549_v34 }
0x317a   :  { %9557 = vmatprep.subr.msk.bf16.mxu1 %vm9837_vm1, %v9555_v44 }
0x3181   :  { %9560 = vmatpush3.bf16.xpose.msk.msra.mxu1 %vm9837_vm1, %v9555_v44 }
0x3182   :  { %9287 = vmatprep.subr.mxu1 %v9773_v21 }
0x3226   :  { %v6384_v49 = vpop.f32.mrb[60].mxu1 }
0x3227   :  { %6408 = vrot.lane.b32.xlu1 %v6384_v49, %s9788_s28  ;;  %v9203_v51 = vpop.f32.mrb[61].mxu1 }
0x322e   :  { %v6308_v37 = vpop.f32.mrb[78].mxu0 }
0x322f   :  { %6406 = vrot.lane.b32.xlu0 %v6308_v37, %s9788_s28  ;;  %v9198_v52 = vpop.f32.mrb[79].mxu0 }
0x3299   :  { %v6409_v55 = vpop.permute.xlu1 %6408 }
0x329a   :  { %v6417_v60 = vsel %vm1524_vm4, %v6415_v57, %v6409_v55 }
0x32a1   :  { %v6407_v61 = vpop.permute.xlu0 %6406 }
0x32a2   :  { %v6416_v58 = vsel %vm1524_vm4, %v6414_v46, %v6407_v61 }
0x32a3   :  { %9212 = vmatprep.mubr.msk.f32.mxu0 %vm54_vm0, %v6416_v58 }
0x32a4   :  { %9213 = vmatmul.mubr.msk.f32.vlgmr.msra.gmra.mrb[80].mxu0 %vm54_vm0, %v6417_v60 }
0x32a5   :  { %9244 = vmatprep.mubr.msk.f32.mxu0 %vm9774_vm2, %v9773_v21 }
0x3377   :  { %v9214_v0 = vpop.f32.mrb[80].mxu0 }
0x3378   :  { %v6514_v62 = vadd.f32 %v9214_v0, %v8412_v8  ;;  %v6508_v63 = vpop.f32.mrb[81].mxu0 }
0x3379   :  { %v6509_v1 = vadd.f32 %v8412_v8, %v6508_v63 }
0x337a   :  { %v6520_v3 = vsel %vm54_vm0, %v6514_v62, 0.0 }
0x337b   :  { %6521 = vadd.xlane.f32.xlu1 %v6520_v3  ;;  %v6517_v4 = vsel %vm54_vm0, %v6509_v1, 0.0 }
0x337c   :  { %6518 = vadd.xlane.f32.xlu0 %v6517_v4 }
0x3408   :  { %v6522_v28 = vpop.xlane.xlu1 %6521 }
0x3409   :  { %v6524_v14 = vmul.f32 0.03125, %v6522_v28  ;;  %v6519_v16 = vpop.xlane.xlu0 %6518 }
0x340a   :  { %v6523_v15 = vmul.f32 0.03125, %v6519_v16 }
0x340b   :  { %v6526_v17 = vsub.f32 %v6514_v62, %v6524_v14 }
0x340c   :  { %v6525_v25 = vsub.f32 %v6509_v1, %v6523_v15 }
0x340d   :  { %v6528_v10 = vmul.f32 %v6526_v17, %v6526_v17 }
0x340e   :  { %v6527_v20 = vmul.f32 %v6525_v25, %v6525_v25 }
0x340f   :  { %v6532_v23 = vsel %vm54_vm0, %v6528_v10, 0.0 }
0x3410   :  { %v6529_v22 = vsel %vm54_vm0, %v6527_v20, 0.0 }
0x3411   :  { %6530 = vadd.xlane.f32.xlu0 %v6529_v22 }
0x3415   :  { %6533 = vadd.xlane.f32.xlu0 %v6532_v23 }
0x349e   :  { %v6531_v38 = vpop.xlane.xlu0 %6530 }
0x349f   :  { %v6535_v39 = vmul.f32 0.03125, %v6531_v38 }
0x34a1   :  { %v6537_v40 = vadd.f32 1e-05, %v6535_v39 }
0x34a2   :  { %v6534_v27 = vpop.xlane.xlu0 %6533 }
0x34a3   :  { %9729 = vrsqrt.f32 %v6537_v40  ;;  %v6536_v41 = vmul.f32 0.03125, %v6534_v27 }
0x34a5   :  { %v6538_v42 = vadd.f32 1e-05, %v6536_v41 }
0x34a7   :  { %9731 = vrsqrt.f32 %v6538_v42 }
0x34ad   :  { %v9730_v43 = vpop.eup %9729 }
0x34ae   :  { %v6541_v45 = vmul.f32 %v9730_v43, %v6525_v25 }
0x34b0   :  { %v6543_v47 = vmul.f32 %v10700_v18, %v6541_v45 }
0x34b1   :  { %v9732_v49 = vpop.eup %9731 }
0x34b2   :  { %v6542_v51 = vmul.f32 %v9732_v49, %v6526_v17  ;;  %v6545_v37 = vadd.f32 %v10706_v19, %v6543_v47 }
0x34b4   :  { %9239 = vmatprep.mubr.msk.f32.mxu1 %vm54_vm0, %v6545_v37  ;;  %v6544_v52 = vmul.f32 %v10700_v18, %v6542_v51 }
0x34b6   :  { %v6546_v30 = vadd.f32 %v10706_v19, %v6544_v52 }
0x34b8   :  { %9240 = vmatmul.mubr.msk.f32.vlgmr.msra.gmra.mrb[62].mxu1 %vm54_vm0, %v6546_v30 }
0x34b9   :  { %9289 = vmatprep.mubr.msk.f32.mxu1 %vm9774_vm2, %v9773_v21 }
0x358b   :  { %v9241_v53 = vpop.f32.mrb[62].mxu1 }
0x358c   :  { %v10978_v26 = vadd.f32 %v9241_v53, %v8437_v59  ;;  %v6683_v54 = vpop.f32.mrb[63].mxu1 }
0x358d   :  { %v10980_v55 = vadd.f32 %v8437_v59, %v6683_v54 }
0x358e   :  { %6773 = vrot.lane.b32.xlu0 %v10978_v26, %s9775_s8  ;;  %v10997_v46 = vmul.f32 0.35355338, %v10978_v26 }
0x358f   :  { %6695 = vrot.lane.b32.xlu1 %v10980_v55, %s9775_s8  ;;  %v10988_v19 = vmul.f32 0.35355338, %v10980_v55 }
0x3600   :  { %v6774_v56 = vpop.permute.xlu0 %6773 }
0x3601   :  { %v6696_v18 = vpop.permute.xlu1 %6695 }
0x3602   :  { %9243 = vmatpush3.xpose.msk.msra.mxu0 %vm177_vm3, %v6696_v18 }
0x3603   :  { %9247 = vmatprep.subr.mxu0 %v9773_v21 }
0x3605   :  { %9245 = vmatmul.mubr.msk.f32.vlgmr.msra.gmra.mrb[82].mxu0 %vm177_vm3, %v10988_v19 }
0x3606   :  { %9248 = vmatpush3.xpose.msk.msra.mxu0 %vm177_vm3, %v6774_v56  ;;  %9249 = vmatprep.mubr.msk.f32.mxu0 %vm9774_vm2, %v9773_v21 }
0x3607   :  { %9252 = vmatprep.subr.mxu0 %v9773_v21 }
0x3609   :  { %9250 = vmatmul.mubr.msk.f32.vlgmr.msra.gmra.mrb[84].mxu0 %vm177_vm3, %v10997_v46 }
0x360a   :  { %9254 = vmatprep.mubr.msk.f32.mxu0 %vm9774_vm2, %v9773_v21 }
0x36d8   :  { %v6768_v61 = vpop.f32.mrb[82].mxu0 }
0x36d9   :  { %v9246_v57 = vpop.f32.mrb[83].mxu0  ;;  %v6850_v58 = vsel %vm177_vm3, %v6768_v61, -inf }
0x36da   :  { %6851 = vmax.xlane.f32.xlu1 %v6850_v58 }
0x36dc   :  { %v6846_v60 = vpop.f32.mrb[84].mxu0 }
0x36dd   :  { %v9251_v8 = vpop.f32.mrb[85].mxu0  ;;  %v6853_v0 = vsel %vm177_vm3, %v6846_v60, -inf }
0x36de   :  { %6854 = vmax.xlane.f32.xlu0 %v6853_v0 }
0x36eb   :  { %6872 = vrot.lane.b32.xlu1 %v10980_v55, %s9776_s0 }
0x3767   :  { %v6852_v62 = vpop.xlane.xlu1 %6851 }
0x3768   :  { %v6856_v63 = vsub.f32 %v6768_v61, %v6852_v62 }
0x376a   :  { %v6858_v1 = vmul.f32 1.442695, %v6856_v63 }
0x376b   :  { %v6873_v3 = vpop.permute.xlu1 %6872  ;;  %v6855_v4 = vpop.xlane.xlu0 %6854 }
0x376c   :  { %9733 = vpow2.f32 %v6858_v1  ;;  %v6857_v5 = vsub.f32 %v6846_v60, %v6855_v4  ;;  %9253 = vmatpush3.msra.mxu0 %v6873_v3 }
0x376d   :  { %9257 = vmatprep.subr.mxu0 %v9773_v21 }
0x376e   :  { %v6860_v6 = vmul.f32 1.442695, %v6857_v5 }
0x3770   :  { %9735 = vpow2.f32 %v6860_v6 }
0x3776   :  { %v9734_v7 = vpop.eup %9733 }
0x3777   :  { %v6862_v32 = vsel %vm177_vm3, %v9734_v7, 0.0 }
0x3778   :  { %6863 = vadd.xlane.f32.xlu1 %v6862_v32 }
0x377a   :  { %v9736_v35 = vpop.eup %9735 }
0x377b   :  { %v6865_v9 = vsel %vm177_vm3, %v9736_v35, 0.0 }
0x377c   :  { %6866 = vadd.xlane.f32.xlu0 %v6865_v9 }
0x3789   :  { %7026 = vrot.lane.b32.xlu1 %v10980_v55, %s9777_s9 }
0x378d   :  { %7024 = vrot.lane.b32.xlu1 %v10988_v19, %s9778_s10 }
0x3791   :  { %7102 = vrot.lane.b32.xlu1 %v10997_v46, %s9778_s10 }
0x3792   :  { %6948 = vrot.lane.b32.xlu0 %v10978_v26, %s9776_s0 }
0x3796   :  { %7104 = vrot.lane.b32.xlu0 %v10978_v26, %s9777_s9 }
0x3805   :  { %v6864_v11 = vpop.xlane.xlu1 %6863 }
0x3806   :  { %9737 = vrcp.f32 %v6864_v11 }
0x3809   :  { %v6867_v12 = vpop.xlane.xlu0 %6866  ;;  %v7027_v15 = vpop.permute.xlu1 %7026 }
0x380a   :  { %9739 = vrcp.f32 %v6867_v12 }
0x380d   :  { %v6949_v14 = vpop.permute.xlu0 %6948  ;;  %v7025_v25 = vpop.permute.xlu1 %7024 }
0x3810   :  { %v9738_v13 = vpop.eup %9737 }
0x3811   :  { %v6870_v28 = vmul.f32 %v9738_v13, %v9734_v7  ;;  %v7105_v20 = vpop.permute.xlu0 %7104  ;;  %v7103_v22 = vpop.permute.xlu1 %7102 }
0x3813   :  { %9255 = vmatmul.mubr.msk.f32.vlgmr.msra.gmra.mrb[86].mxu0 %vm177_vm3, %v6870_v28 }
0x3814   :  { %v9740_v16 = vpop.eup %9739  ;;  %9258 = vmatpush3.msra.mxu0 %v6949_v14  ;;  %9259 = vmatprep.mubr.msk.f32.mxu0 %vm9774_vm2, %v9773_v21 }
0x3815   :  { %v6871_v17 = vmul.f32 %v9740_v16, %v9736_v35  ;;  %9262 = vmatprep.subr.mxu0 %v9773_v21 }
0x3817   :  { %9260 = vmatmul.mubr.msk.f32.vlgmr.msra.gmra.mrb[88].mxu0 %vm177_vm3, %v6871_v17 }
0x3818   :  { %9264 = vmatprep.mubr.msk.f32.mxu0 %vm9774_vm2, %v9773_v21 }
0x381b   :  { %9263 = vmatpush3.xpose.msk.msra.mxu0 %vm177_vm3, %v7027_v15 }
0x381c   :  { %9267 = vmatprep.subr.mxu0 %v9773_v21 }
0x381e   :  { %9265 = vmatmul.mubr.msk.f32.vlgmr.msra.gmra.mrb[90].mxu0 %vm177_vm3, %v7025_v25 }
0x381f   :  { %9268 = vmatpush3.xpose.msk.msra.mxu0 %vm177_vm3, %v7105_v20  ;;  %9269 = vmatprep.mubr.msk.f32.mxu0 %vm9774_vm2, %v9773_v21 }
0x3820   :  { %9272 = vmatprep.subr.mxu0 %v9773_v21 }
0x3822   :  { %9270 = vmatmul.mubr.msk.f32.vlgmr.msra.gmra.mrb[92].mxu0 %vm177_vm3, %v7103_v22 }
0x3823   :  { %9274 = vmatprep.mubr.msk.f32.mxu0 %vm9774_vm2, %v9773_v21 }
0x38e6   :  { %v11038_v10 = vpop.f32.mrb[86].mxu0 }
0x38e7   :  { %v9256_v23 = vpop.f32.mrb[87].mxu0 }
0x38ea   :  { %v11040_v24 = vpop.f32.mrb[88].mxu0 }
0x38eb   :  { %v9261_v50 = vpop.f32.mrb[89].mxu0 }
0x38f1   :  { %v7098_v29 = vpop.f32.mrb[90].mxu0 }
0x38f2   :  { %v9266_v31 = vpop.f32.mrb[91].mxu0  ;;  %v7180_v33 = vsel %vm177_vm3, %v7098_v29, -inf }
0x38f3   :  { %7181 = vmax.xlane.f32.xlu0 %v7180_v33 }
0x38f5   :  { %v7176_v34 = vpop.f32.mrb[92].mxu0 }
0x38f6   :  { %v9271_v36 = vpop.f32.mrb[93].mxu0  ;;  %v7183_v48 = vsel %vm177_vm3, %v7176_v34, -inf }
0x38f7   :  { %7184 = vmax.xlane.f32.xlu1 %v7183_v48 }
0x3908   :  { %7202 = vrot.lane.b32.xlu1 %v10980_v55, %s9779_s11 }
0x390c   :  { %7356 = vrot.lane.b32.xlu1 %v10980_v55, %s9780_s12 }
0x3910   :  { %7434 = vrot.lane.b32.xlu1 %v10978_v26, %s9780_s12 }
0x3914   :  { %7432 = vrot.lane.b32.xlu1 %v10997_v46, %s9781_s13 }
0x3980   :  { %v7182_v44 = vpop.xlane.xlu0 %7181 }
0x3981   :  { %v7186_v38 = vsub.f32 %v7098_v29, %v7182_v44 }
0x3983   :  { %v7188_v39 = vmul.f32 1.442695, %v7186_v38 }
0x3984   :  { %v7185_v40 = vpop.xlane.xlu1 %7184 }
0x3985   :  { %9741 = vpow2.f32 %v7188_v39  ;;  %v7187_v49 = vsub.f32 %v7176_v34, %v7185_v40 }
0x3987   :  { %v7190_v51 = vmul.f32 1.442695, %v7187_v49 }
0x3988   :  { %v7203_v27 = vpop.permute.xlu1 %7202 }
0x3989   :  { %9273 = vmatpush3.msra.mxu0 %v7203_v27  ;;  %9743 = vpow2.f32 %v7190_v51 }
0x398a   :  { %9277 = vmatprep.subr.mxu0 %v9773_v21 }
0x398c   :  { %v7357_v41 = vpop.permute.xlu1 %7356 }
0x398f   :  { %v9742_v42 = vpop.eup %9741 }
0x3990   :  { %v7435_v43 = vpop.permute.xlu1 %7434  ;;  %v7192_v45 = vsel %vm177_vm3, %v9742_v42, 0.0 }
0x3991   :  { %7193 = vadd.xlane.f32.xlu0 %v7192_v45  ;;  %9288 = vmatpush3.xpose.msk.msra.mxu1 %vm177_vm3, %v7435_v43 }
0x3992   :  { %9297 = vmatprep.subr.mxu1 %v9773_v21 }
0x3993   :  { %v9744_v37 = vpop.eup %9743 }
0x3994   :  { %v7433_v47 = vpop.permute.xlu1 %7432  ;;  %v7195_v52 = vsel %vm177_vm3, %v9744_v37, 0.0 }
0x3995   :  { %9290 = vmatmul.mubr.msk.f32.vlgmr.msra.gmra.mrb[64].mxu1 %vm177_vm3, %v7433_v47 }
0x3996   :  { %9299 = vmatprep.mubr.msk.f32.mxu1 %vm9774_vm2, %v9773_v21 }
0x39a7   :  { %7278 = vrot.lane.b32.xlu0 %v10978_v26, %s9779_s11 }
0x39c6   :  { %7196 = vadd.xlane.f32.xlu0 %v7195_v52 }
0x39dc   :  { %7354 = vrot.lane.b32.xlu0 %v10988_v19, %s9781_s13 }
0x3a1e   :  { %v7194_v30 = vpop.xlane.xlu0 %7193 }
0x3a1f   :  { %9745 = vrcp.f32 %v7194_v30 }
0x3a22   :  { %v7279_v54 = vpop.permute.xlu0 %7278 }
0x3a29   :  { %v9746_v59 = vpop.eup %9745 }
0x3a2a   :  { %v7200_v53 = vmul.f32 %v9746_v59, %v9742_v42 }
0x3a2c   :  { %9275 = vmatmul.mubr.msk.f32.vlgmr.msra.gmra.mrb[94].mxu0 %vm177_vm3, %v7200_v53 }
0x3a2d   :  { %9278 = vmatpush3.msra.mxu0 %v7279_v54  ;;  %9279 = vmatprep.mubr.msk.f32.mxu0 %vm9774_vm2, %v9773_v21 }
0x3a2e   :  { %9282 = vmatprep.subr.mxu0 %v9773_v21 }
0x3a53   :  { %v7197_v18 = vpop.xlane.xlu0 %7196 }
0x3a54   :  { %9747 = vrcp.f32 %v7197_v18 }
0x3a57   :  { %v7355_v57 = vpop.permute.xlu0 %7354 }
0x3a5e   :  { %v9748_v56 = vpop.eup %9747 }
0x3a5f   :  { %v7201_v61 = vmul.f32 %v9748_v56, %v9744_v37 }
0x3a61   :  { %9280 = vmatmul.mubr.msk.f32.vlgmr.msra.gmra.mrb[96].mxu0 %vm177_vm3, %v7201_v61 }
0x3a62   :  { %9283 = vmatpush3.xpose.msk.msra.mxu0 %vm177_vm3, %v7357_v41  ;;  %9284 = vmatprep.mubr.msk.f32.mxu0 %vm9774_vm2, %v9773_v21 }
0x3a63   :  { %9292 = vmatprep.subr.mxu0 %v9773_v21 }
0x3a65   :  { %9285 = vmatmul.mubr.msk.f32.vlgmr.msra.gmra.mrb[98].mxu0 %vm177_vm3, %v7355_v57 }
0x3a66   :  { %9294 = vmatprep.mubr.msk.f32.mxu0 %vm9774_vm2, %v9773_v21 }
0x3a68   :  { %v7506_v58 = vpop.f32.mrb[64].mxu1 }
0x3a69   :  { %v9291_v60 = vpop.f32.mrb[65].mxu1  ;;  %v7513_v8 = vsel %vm177_vm3, %v7506_v58, -inf }
0x3a6a   :  { %7514 = vmax.xlane.f32.xlu1 %v7513_v8  ;;  %v8434_v8 = vld [vmem:[%s11180_s3 + $0x90] sm:$0xff] }
0x3a7b   :  { %7532 = vrot.lane.b32.xlu1 %v10980_v55, %s9782_s14 }
0x3a7f   :  { %7686 = vrot.lane.b32.xlu1 %v10980_v55, %s9783_s15 }
0x3a83   :  { %7764 = vrot.lane.b32.xlu1 %v10978_v26, %s9783_s15 }
0x3a87   :  { %7762 = vrot.lane.b32.xlu1 %v10997_v46, %s9784_s16 }
0x3af7   :  { %v7515_v0 = vpop.xlane.xlu1 %7514 }
0x3af8   :  { %v7517_v3 = vsub.f32 %v7506_v58, %v7515_v0  ;;  %v8433_v58 = vld [vmem:[%s11180_s3 + $0x88] sm:$0xff]  ;;  %v8435_v0 = vld [vmem:[%s11180_s3 + $0x98] sm:$0xff] }
0x3afa   :  { %v7520_v4 = vmul.f32 1.442695, %v7517_v3 }
0x3afb   :  { %v7533_v62 = vpop.permute.xlu1 %7532 }
0x3afc   :  { %9293 = vmatpush3.msra.mxu0 %v7533_v62  ;;  %9749 = vpow2.f32 %v7520_v4  ;;  %v9567_v62 = vpack.c.bf16 %v8435_v0, %v8434_v8 }
0x3afd   :  { %9302 = vmatprep.subr.mxu0 %v9773_v21 }
0x3aff   :  { %v7274_v63 = vpop.f32.mrb[94].mxu0  ;;  %v7687_v16 = vpop.permute.xlu1 %7686 }
0x3b00   :  { %v9276_v1 = vpop.f32.mrb[95].mxu0 }
0x3b03   :  { %v7765_v25 = vpop.permute.xlu1 %7764 }
0x3b06   :  { %v9750_v9 = vpop.eup %9749 }
0x3b07   :  { %v7525_v46 = vsel %vm177_vm3, %v9750_v9, 0.0  ;;  %v7763_v23 = vpop.permute.xlu1 %7762 }
0x3b34   :  { %v7350_v5 = vpop.f32.mrb[96].mxu0 }
0x3b35   :  { %v9281_v6 = vpop.f32.mrb[97].mxu0 }
0x3b38   :  { %v7428_v7 = vpop.f32.mrb[98].mxu0 }
0x3b39   :  { %v9286_v32 = vpop.f32.mrb[99].mxu0  ;;  %v7510_v35 = vsel %vm177_vm3, %v7428_v7, -inf }
0x3b3a   :  { %7511 = vmax.xlane.f32.xlu0 %v7510_v35 }
0x3b3e   :  { %7526 = vadd.xlane.f32.xlu0 %v7525_v46 }
0x3b54   :  { %7608 = vrot.lane.b32.xlu0 %v10978_v26, %s9782_s14 }
0x3bc7   :  { %v7512_v11 = vpop.xlane.xlu0 %7511 }
0x3bc8   :  { %v7516_v12 = vsub.f32 %v7428_v7, %v7512_v11 }
0x3bca   :  { %v7518_v13 = vmul.f32 1.442695, %v7516_v12 }
0x3bcb   :  { %v7527_v28 = vpop.xlane.xlu0 %7526 }
0x3bcc   :  { %9751 = vpow2.f32 %v7518_v13 }
0x3bcd   :  { %9753 = vrcp.f32 %v7527_v28 }
0x3bcf   :  { %v7609_v14 = vpop.permute.xlu0 %7608 }
0x3bd0   :  { %9298 = vmatpush3.msra.mxu1 %v7609_v14 }
0x3bd1   :  { %9307 = vmatprep.subr.mxu1 %v9773_v21 }
0x3bd6   :  { %v9752_v15 = vpop.eup %9751 }
0x3bd7   :  { %v9754_v17 = vpop.eup %9753  ;;  %v7522_v20 = vsel %vm177_vm3, %v9752_v15, 0.0 }
0x3bd8   :  { %v7531_v22 = vmul.f32 %v9754_v17, %v9750_v9  ;;  %7523 = vadd.xlane.f32.xlu0 %v7522_v20 }
0x3bda   :  { %9300 = vmatmul.mubr.msk.f32.vlgmr.msra.gmra.mrb[66].mxu1 %vm177_vm3, %v7531_v22 }
0x3bdb   :  { %9308 = vmatpush3.xpose.msk.msra.mxu1 %vm177_vm3, %v7765_v25  ;;  %9309 = vmatprep.mubr.msk.f32.mxu1 %vm9774_vm2, %v9773_v21 }
0x3bdc   :  { %9317 = vmatprep.subr.mxu1 %v9773_v21 }
0x3bde   :  { %9310 = vmatmul.mubr.msk.f32.vlgmr.msra.gmra.mrb[68].mxu1 %vm177_vm3, %v7763_v23 }
0x3bdf   :  { %9319 = vmatprep.mubr.msk.f32.mxu1 %vm9774_vm2, %v9773_v21 }
0x3bee   :  { %7684 = vrot.lane.b32.xlu0 %v10988_v19, %s9784_s16 }
0x3c65   :  { %v7524_v50 = vpop.xlane.xlu0 %7523 }
0x3c66   :  { %9755 = vrcp.f32 %v7524_v50 }
0x3c69   :  { %v7685_v33 = vpop.permute.xlu0 %7684 }
0x3c70   :  { %v9756_v29 = vpop.eup %9755 }
0x3c71   :  { %v7530_v31 = vmul.f32 %v9756_v29, %v9752_v15 }
0x3c73   :  { %9295 = vmatmul.mubr.msk.f32.vlgmr.msra.gmra.mrb[100].mxu0 %vm177_vm3, %v7530_v31 }
0x3c74   :  { %9303 = vmatpush3.xpose.msk.msra.mxu0 %vm177_vm3, %v7687_v16  ;;  %9304 = vmatprep.mubr.msk.f32.mxu0 %vm9774_vm2, %v9773_v21 }
0x3c75   :  { %9312 = vmatprep.subr.mxu0 %v9773_v21 }
0x3c77   :  { %9305 = vmatmul.mubr.msk.f32.vlgmr.msra.gmra.mrb[102].mxu0 %vm177_vm3, %v7685_v33 }
0x3c78   :  { %9314 = vmatprep.mubr.msk.f32.mxu0 %vm9774_vm2, %v9773_v21 }
0x3cad   :  { %v7680_v19 = vpop.f32.mrb[66].mxu1 }
0x3cae   :  { %v9301_v34 = vpop.f32.mrb[67].mxu1 }
0x3cb1   :  { %v7836_v36 = vpop.f32.mrb[68].mxu1 }
0x3cb2   :  { %v9311_v48 = vpop.f32.mrb[69].mxu1  ;;  %v7843_v44 = vsel %vm177_vm3, %v7836_v36, -inf }
0x3cb3   :  { %7844 = vmax.xlane.f32.xlu1 %v7843_v44 }
0x3cc4   :  { %7862 = vrot.lane.b32.xlu1 %v10980_v55, %s9785_s17 }
0x3cc8   :  { %8016 = vrot.lane.b32.xlu1 %v7274_v63, %s9786_s18 }
0x3ccc   :  { %8018 = vrot.lane.b32.xlu1 %v7350_v5, %s9786_s18 }
0x3cd0   :  { %8026 = vrot.lane.b32.xlu1 %v7680_v19, %s9787_s19 }
0x3d40   :  { %v7845_v38 = vpop.xlane.xlu1 %7844 }
0x3d41   :  { %v7847_v39 = vsub.f32 %v7836_v36, %v7845_v38 }
0x3d43   :  { %v7850_v40 = vmul.f32 1.442695, %v7847_v39 }
0x3d44   :  { %v7863_v21 = vpop.permute.xlu1 %7862 }
0x3d45   :  { %9757 = vpow2.f32 %v7850_v40  ;;  %9313 = vmatpush3.msra.mxu0 %v7863_v21 }
0x3d46   :  { %v7604_v27 = vpop.f32.mrb[100].mxu0 }
0x3d47   :  { %v9296_v41 = vpop.f32.mrb[101].mxu0 }
0x3d48   :  { %v8017_v5 = vpop.permute.xlu1 %8016 }
0x3d49   :  { %v8038_v35 = vsel %vm177_vm3, %v11038_v10, %v8017_v5  ;;  %v8476_v10 = vld [vmem:[%s11181_s4 + $0x4] ss:$0 sm:$0xff] }
0x3d4a   :  { %v7758_v42 = vpop.f32.mrb[102].mxu0 }
0x3d4b   :  { %v9306_v43 = vpop.f32.mrb[103].mxu0  ;;  %v7840_v45 = vsel %vm177_vm3, %v7758_v42, -inf }
0x3d4c   :  { %7841 = vmax.xlane.f32.xlu0 %v7840_v45  ;;  %v8019_v6 = vpop.permute.xlu1 %8018 }
0x3d4d   :  { %v8039_v2 = vsel %vm177_vm3, %v11040_v24, %v8019_v6 }
0x3d4f   :  { %v9758_v55 = vpop.eup %9757 }
0x3d50   :  { %v7855_v47 = vsel %vm177_vm3, %v9758_v55, 0.0  ;;  %v8027_v7 = vpop.permute.xlu1 %8026 }
0x3d51   :  { %7856 = vadd.xlane.f32.xlu0 %v7855_v47  ;;  %v8041_v12 = vsel %vm1521_vm5, %v8039_v2, %v8027_v7 }
0x3dd9   :  { %v7842_v49 = vpop.xlane.xlu0 %7841 }
0x3dda   :  { %v7846_v51 = vsub.f32 %v7758_v42, %v7842_v49  ;;  %v9771_v42 = vld [vmem:[%s11182_s5] ss:$0 sm:$0xff] }
0x3ddc   :  { %v7848_v37 = vmul.f32 1.442695, %v7846_v51 }
0x3dde   :  { %9759 = vpow2.f32 %v7848_v37  ;;  %v7857_v59 = vpop.xlane.xlu0 %7856 }
0x3ddf   :  { %9761 = vrcp.f32 %v7857_v59 }
0x3de8   :  { %v9760_v52 = vpop.eup %9759 }
0x3de9   :  { %v7852_v30 = vsel %vm177_vm3, %v9760_v52, 0.0  ;;  %v9762_v54 = vpop.eup %9761 }
0x3dea   :  { %7853 = vadd.xlane.f32.xlu0 %v7852_v30  ;;  %v7861_v18 = vmul.f32 %v9762_v54, %v9758_v55  ;;  %v9772_v55 = vld [vmem:[%s11183_s6] ss:$0 sm:$0xff] }
0x3e00   :  { %7938 = vrot.lane.b32.xlu0 %v10978_v26, %s9785_s17  ;;  %v8432_v26 = vld [vmem:[%s11180_s3 + $0x80] sm:$0xff] }
0x3e01   :  { %v9561_v60 = vpack.c.bf16 %v8433_v58, %v8432_v26 }
0x3e03   :  { %9563 = vmatprep.subr.msk.bf16.mxu0 %vm9837_vm1, %v9561_v60 }
0x3e04   :  { %8024 = vrot.lane.b32.xlu0 %v7604_v27, %s9787_s19 }
0x3e77   :  { %v7854_v53 = vpop.xlane.xlu0 %7853 }
0x3e78   :  { %9763 = vrcp.f32 %v7854_v53 }
0x3e7b   :  { %v7939_v56 = vpop.permute.xlu0 %7938 }
0x3e7c   :  { %9318 = vmatpush3.msra.mxu1 %v7939_v56 }
0x3e7d   :  { %9320 = vmatmul.mubr.msk.f32.vlgmr.msra.gmra.mrb[70].mxu1 %vm177_vm3, %v7861_v18 }
0x3e7f   :  { %v8025_v32 = vpop.permute.xlu0 %8024 }
0x3e80   :  { %v8040_v46 = vsel %vm1521_vm5, %v8038_v35, %v8025_v32 }
0x3e82   :  { %v9764_v61 = vpop.eup %9763 }
0x3e83   :  { %v7860_v57 = vmul.f32 %v9764_v61, %v9760_v52 }
0x3e85   :  { %9315 = vmatmul.mubr.msk.f32.vlgmr.msra.gmra.mrb[104].mxu0 %vm177_vm3, %v7860_v57 }
0x3e86   :  { %9566 = vmatpush3.bf16.xpose.msk.msra.mxu0 %vm9837_vm1, %v9561_v60 }
0x3e87   :  { %9569 = vmatprep.subr.msk.bf16.mxu0 %vm9837_vm1, %v9567_v62 }
0x3e8e   :  { %9572 = vmatpush3.bf16.xpose.msk.msra.mxu0 %vm9837_vm1, %v9567_v62 }
0x3f50   :  { %v8010_v63 = vpop.f32.mrb[70].mxu1 }
0x3f51   :  { %8034 = vrot.lane.b32.xlu1 %v8010_v63, %s9788_s28  ;;  %v9321_v1 = vpop.f32.mrb[71].mxu1 }
0x3f58   :  { %v7934_v3 = vpop.f32.mrb[104].mxu0 }
0x3f59   :  { %8032 = vrot.lane.b32.xlu0 %v7934_v3, %s9788_s28  ;;  %v9316_v4 = vpop.f32.mrb[105].mxu0 }
0x3fc3   :  { %v8035_v9 = vpop.permute.xlu1 %8034 }
0x3fc4   :  { %v8043_v28 = vsel %vm1524_vm4, %v8041_v12, %v8035_v9 }
0x3fcb   :  { %v8033_v11 = vpop.permute.xlu0 %8032 }
0x3fcc   :  { %v8042_v13 = vsel %vm1524_vm4, %v8040_v46, %v8033_v11 }
0x3fcd   :  { %9330 = vmatprep.mubr.msk.f32.mxu0 %vm54_vm0, %v8042_v13 }
0x3fce   :  { %9331 = vmatmul.mubr.msk.f32.vlgmr.msra.gmra.mrb[106].mxu0 %vm54_vm0, %v8043_v28 }
0x40a1   :  { %v9332_v14 = vpop.f32.mrb[106].mxu0 }
0x40a2   :  { %v8140_v16 = vadd.f32 %v9332_v14, %v8476_v10  ;;  %v8134_v24 = vpop.f32.mrb[107].mxu0 }
0x40a3   :  { %v8135_v15 = vadd.f32 %v8476_v10, %v8134_v24 }
0x40a4   :  { %v8146_v17 = vsel %vm54_vm0, %v8140_v16, 0.0 }
0x40a5   :  { %8147 = vadd.xlane.f32.xlu1 %v8146_v17  ;;  %v8143_v25 = vsel %vm54_vm0, %v8135_v15, 0.0 }
0x40a6   :  { %8144 = vadd.xlane.f32.xlu0 %v8143_v25 }
0x4132   :  { %v8148_v20 = vpop.xlane.xlu1 %8147 }
0x4133   :  { %v8150_v22 = vmul.f32 0.03125, %v8148_v20  ;;  %v8145_v23 = vpop.xlane.xlu0 %8144 }
0x4134   :  { %v8149_v50 = vmul.f32 0.03125, %v8145_v23 }
0x4135   :  { %v8152_v29 = vsub.f32 %v8140_v16, %v8150_v22 }
0x4136   :  { %v8151_v31 = vsub.f32 %v8135_v15, %v8149_v50 }
0x4137   :  { %v8154_v34 = vmul.f32 %v8152_v29, %v8152_v29 }
0x4138   :  { %v8153_v33 = vmul.f32 %v8151_v31, %v8151_v31 }
0x4139   :  { %v8158_v36 = vsel %vm54_vm0, %v8154_v34, 0.0 }
0x413a   :  { %v8155_v19 = vsel %vm54_vm0, %v8153_v33, 0.0 }
0x413b   :  { %8156 = vadd.xlane.f32.xlu0 %v8155_v19 }
0x413f   :  { %8159 = vadd.xlane.f32.xlu0 %v8158_v36 }
0x41c8   :  { %v8157_v48 = vpop.xlane.xlu0 %8156 }
0x41c9   :  { %v8161_v44 = vmul.f32 0.03125, %v8157_v48 }
0x41cb   :  { %v8163_v38 = vadd.f32 1e-05, %v8161_v44 }
0x41cc   :  { %v8160_v39 = vpop.xlane.xlu0 %8159 }
0x41cd   :  { %9765 = vrsqrt.f32 %v8163_v38  ;;  %v8162_v40 = vmul.f32 0.03125, %v8160_v39 }
0x41cf   :  { %v8164_v21 = vadd.f32 1e-05, %v8162_v40 }
0x41d1   :  { %9767 = vrsqrt.f32 %v8164_v21 }
0x41d7   :  { %v9766_v27 = vpop.eup %9765 }
0x41d8   :  { %v8167_v41 = vmul.f32 %v9766_v27, %v8151_v31 }
0x41da   :  { %v8169_v43 = vmul.f32 %v9771_v42, %v8167_v41 }
0x41db   :  { %v9768_v45 = vpop.eup %9767 }
0x41dc   :  { %v8171_v47 = vadd.f32 %v9772_v55, %v8169_v43  ;;  %v8168_v49 = vmul.f32 %v9768_v45, %v8152_v29 }
0x41de   :  { %8173 = vst.msk [vmem:[%s11184_s7] sm:$0xff] %vm54_vm0, %v8171_v47  ;;  %v8170_v51 = vmul.f32 %v9771_v42, %v8168_v49 }
0x41e0   :  { %v8172_v37 = vadd.f32 %v9772_v55, %v8170_v51 }
0x41e2   :  { %8174 = vst.msk [vmem:[%s11184_s7 + $0x8] sm:$0xff] %vm54_vm0, %v8172_v37 }

</bundles_post_ra>
